<compile_context>
chip_gen: v5e
topology: v5e:2x2
jax: 0.10.0
libtpu: 0.0.40
codegen_flags: <defaults>
</compile_context>

<pallas_src>
import functools

import jax
import jax.numpy as jnp
import numpy as np
from jax import lax
from jax.experimental import pallas as pl
from jax.experimental.pallas import tpu as pltpu


def _round_up(x, m):
    return (x + m - 1) // m * m


def _pad_gates(w, H, H_pad):
    """Pad gate-packed (rows, 3H) weights/bias to (rows, 3*H_pad), per gate (r,z,n)."""
    rows = w.shape[0]
    out = jnp.zeros((rows, 3 * H_pad), w.dtype)
    for g in range(3):
        out = out.at[:, g * H_pad:g * H_pad + H].set(w[:, g * H:(g + 1) * H])
    return out


def _vmem_budget_bytes():
    """Per-generation scoped VMEM budget: ~70% of physical, capped at 100 MiB."""
    try:
        cap = int(pltpu.get_tpu_info().vmem_capacity_bytes)
    except Exception:
        cap = 64 << 20          # conservative (v7x-sized) fallback
    return int(min(int(cap * 0.7), 100 << 20))


def _gru_kernel(gx_ref, obs_ref, whh_ref, bhh_ref, hout_ref, *, unroll):
    """One (batch-tile, time-block) grid step: TT recurrent GRU steps.

    hout_ref is both the output and the recurrent carry: its block index is constant
    along the time grid axis, so it stays VMEM-resident across time blocks and is
    written back to HBM only once per batch tile.
    """
    @pl.when(pl.program_id(1) == 0)
    def _():
        hout_ref[...] = jnp.zeros_like(hout_ref)       # z0 = zeros per batch tile

    whh = whh_ref[...]                                  # (H_pad, 3*H_pad), hoisted
    bhh = bhh_ref[...]                                  # (1, 3*H_pad), f32
    HP = whh.shape[0]
    TT = gx_ref.shape[0]

    def step(i, h):
        gx = gx_ref[i]                                  # (TB, 3*H_pad) precomputed input proj
        obs = obs_ref[i]                                # (TB, 1) observation gate in {0, 1}
        # Only the h-dependent matmul lives in the sequential loop. Operands in the
        # streaming/compute dtype (bf16 by default, MXU-native); f32 accumulate+carry.
        gh = jnp.dot(h.astype(whh.dtype), whh,
                     preferred_element_type=jnp.float32) + bhh
        r = jax.nn.sigmoid(gx[:, 0 * HP:1 * HP] + gh[:, 0 * HP:1 * HP])
        z = jax.nn.sigmoid(gx[:, 1 * HP:2 * HP] + gh[:, 1 * HP:2 * HP])
        n = jnp.tanh(gx[:, 2 * HP:3 * HP] + r * gh[:, 2 * HP:3 * HP])
        new_h = (1.0 - z) * n + z * h
        return h + obs * (new_h - h)                    # masked state update (pure VPU)

    hout_ref[...] = lax.fori_loop(0, TT, step, hout_ref[...], unroll=unroll)


def gru_forward_pallas(X, M, t, params, *, time_block=None, batch_block=None,
                       unroll=8, compute_dtype=jnp.bfloat16):
    """X, M: (B, T, C); t: (B, T, 1). Returns (B, O)."""
    B, T, C = X.shape
    wih_t, whh_t, bih, bhh, wl_t, bl = params
    H = whh_t.shape[0]
    f32 = jnp.float32

    H_pad = _round_up(H, 128)

    # Batch tile: fill the 128 MXU rows whenever B allows; 8-row fallback for tiny B.
    # TODO(synk): on v7x (2 TCs) prefer a TB that yields >= 2 batch tiles when B > 128.
    if batch_block is None:
        TB = min(128, _round_up(B, 8))
    else:
        TB = max(8, _round_up(min(batch_block, _round_up(B, 8)), 8))
    B_pad = _round_up(B, TB)

    # Time block: as large as the per-generation VMEM budget allows (<= 64).
    itemsize = jnp.dtype(compute_dtype).itemsize
    budget = _vmem_budget_bytes()
    fixed = (2 * H_pad * 3 * H_pad * itemsize      # W_hh^T (counted double-buffered, safe)
             + 2 * 3 * H_pad * 4                   # b_hh
             + 2 * TB * H_pad * 4)                 # h carry / output block
    per_step = TB * (3 * H_pad * itemsize + 4)     # gx + obs bytes per time step
    tt_cap = max(8, (budget - fixed - (4 << 20)) // (2 * per_step))
    TT = int(min(time_block if time_block is not None else 64, tt_cap, T))
    if TT >= 8:
        TT -= TT % 8
    TT = max(1, TT)
    T_pad = _round_up(T, TT)
    unroll = max(1, min(unroll, TT))

    # Per-gate padding so gate slices in the kernel are 128-lane aligned.
    wih_p = _pad_gates(wih_t.astype(f32), H, H_pad)                      # (Din, 3*H_pad)
    bih_p = _pad_gates(bih.astype(f32), H, H_pad)                        # (1, 3*H_pad)
    whh_p = jnp.zeros((H_pad, 3 * H_pad), f32).at[:H, :].set(
        _pad_gates(whh_t.astype(f32), H, H_pad)).astype(compute_dtype)   # (H_pad, 3*H_pad)
    bhh_p = _pad_gates(bhh.astype(f32), H, H_pad)                        # (1, 3*H_pad)

    # Hoisted input projection: ONE big GEMM over all timesteps, emitted directly in
    # time-major layout, then cast to the streaming dtype (bf16 halves HBM traffic).
    tc = t - t[0]                                                        # literal `tc -= t[0, :]`
    U = jnp.concatenate([X, M, tc], axis=-1).astype(f32)                 # (B, T, 2C+1)
    gx = (jnp.einsum('btd,dg->tbg', U, wih_p,
                     preferred_element_type=f32) + bih_p).astype(compute_dtype)

    # Precomputed observation gate: removes per-step cross-lane reduce and (B,C) DMA.
    obs = (jnp.max(M, axis=-1, keepdims=True) > 0.5).astype(f32)         # (B, T, 1)
    obs_tm = jnp.transpose(obs, (1, 0, 2))                               # (T, B, 1)

    # Pad time (padded steps: gx = 0, obs = 0 -> h unchanged) and batch.
    gx = jnp.pad(gx, ((0, T_pad - T), (0, B_pad - B), (0, 0)))
    obs_tm = jnp.pad(obs_tm, ((0, T_pad - T), (0, B_pad - B), (0, 0)))

    grid = (B_pad // TB, T_pad // TT)
    kernel = functools.partial(_gru_kernel, unroll=unroll)

    def _call(single_buffer_weights):
        wspec_kw = ({"pipeline_mode": pl.Buffered(1)}
                    if single_buffer_weights else {})
        grid_spec = pltpu.PrefetchScalarGridSpec(
            num_scalar_prefetch=0,
            grid=grid,
            in_specs=[
                pl.BlockSpec((TT, TB, 3 * H_pad), lambda b, s: (s, b, 0)),   # gx block
                pl.BlockSpec((TT, TB, 1), lambda b, s: (s, b, 0)),           # obs block
                pl.BlockSpec((H_pad, 3 * H_pad), lambda b, s: (0, 0),        # W_hh^T
                             **wspec_kw),
                pl.BlockSpec((1, 3 * H_pad), lambda b, s: (0, 0),            # b_hh
                             **wspec_kw),
            ],
            out_specs=pl.BlockSpec((TB, H_pad), lambda b, s: (b, 0)),
        )
        return pl.pallas_call(
            kernel,
            out_shape=jax.ShapeDtypeStruct((B_pad, H_pad), f32),
            grid_spec=grid_spec,
            compiler_params=pltpu.CompilerParams(
                dimension_semantics=("parallel", "arbitrary"),
                vmem_limit_bytes=int(budget)),
        )(gx, obs_tm, whh_p, bhh_p)

    try:
        h_pad_out = _call(True)
    except Exception:
        # Fallback: pl.Buffered(1) single-buffering of the invariant weights not
        # accepted on this JAX/Mosaic version; default double-buffering still fits
        # the budget (it was sized counting W_hh twice).
        h_pad_out = _call(False)

    h = h_pad_out[:B, :H]
    # Linear head in XLA: keeps its weights out of VMEM during the recurrent loop.
    return h @ wl_t + bl


def gru_forward_reference(X, M, t, params):
    """Pure-JAX reference mirroring the PyTorch module (evolve = identity)."""
    wih_t, whh_t, bih, bhh, wl_t, bl = params
    B, T, C = X.shape
    H = whh_t.shape[0]
    tc = t - t[0]
    h = jnp.zeros((B, H), jnp.float32)
    for i in range(T):
        u = jnp.concatenate([X[:, i], M[:, i], tc[:, i]], axis=-1)
        gx = u @ wih_t + bih
        gh = h @ whh_t + bhh
        r = jax.nn.sigmoid(gx[:, :H] + gh[:, :H])
        z = jax.nn.sigmoid(gx[:, H:2 * H] + gh[:, H:2 * H])
        n = jnp.tanh(gx[:, 2 * H:] + r * gh[:, 2 * H:])
        new_h = (1.0 - z) * n + z * h
        obs = jnp.max(M[:, i], axis=1, keepdims=True) > 0.5
        h = jnp.where(obs, new_h, h)
    return h @ wl_t + bl


def make_params(key, input_channels, hidden_channels, output_channels):
    """Deterministic init matching torch.nn.GRUCell / Linear shapes."""
    Din = 2 * input_channels + 1
    H = hidden_channels
    O = output_channels
    ks = jax.random.split(key, 6)
    s_cell = 1.0 / np.sqrt(H)
    s_lin = 1.0 / np.sqrt(H)
    w_ih = jax.random.uniform(ks[0], (3 * H, Din), jnp.float32, -s_cell, s_cell)
    w_hh = jax.random.uniform(ks[1], (3 * H, H), jnp.float32, -s_cell, s_cell)
    b_ih = jax.random.uniform(ks[2], (3 * H,), jnp.float32, -s_cell, s_cell)
    b_hh = jax.random.uniform(ks[3], (3 * H,), jnp.float32, -s_cell, s_cell)
    w_l = jax.random.uniform(ks[4], (O, H), jnp.float32, -s_lin, s_lin)
    b_l = jax.random.uniform(ks[5], (O,), jnp.float32, -s_lin, s_lin)
    # Pre-transpose for matmul-friendly (in, out) layout; biases as (1, N) rows.
    return (w_ih.T, w_hh.T, b_ih[None, :], b_hh[None, :], w_l.T, b_l[None, :])


if __name__ == "__main__":
    B, T, C, H, O = 2, 8, 4, 32, 8

    key = jax.random.PRNGKey(0)
    k_x, k_m, k_t, k_p = jax.random.split(key, 4)

    X = jax.random.normal(k_x, (B, T, C), jnp.float32)
    # Mask with some all-zero feature rows so the observation gating is exercised.
    M = (jax.random.uniform(k_m, (B, T, C)) > 0.4).astype(jnp.float32)
    M = M.at[0, 3, :].set(0.0).at[1, 5, :].set(0.0)
    # Cumulative times, increasing along T.
    t = jnp.cumsum(jax.random.uniform(k_t, (B, T, 1), jnp.float32, 0.1, 1.0), axis=1)

    params = make_params(k_p, C, H, O)
    ref = gru_forward_reference(X, M, t, params)

    # f32 path: exact kernel-logic check against the pure-JAX reference.
    out_f32 = gru_forward_pallas(X, M, t, params, compute_dtype=jnp.float32)
    out_f32 = jax.block_until_ready(out_f32)
    np.testing.assert_allclose(np.asarray(out_f32), np.asarray(ref),
                               rtol=1e-5, atol=1e-5)

    # Default (bf16 matmul operands + bf16 gx stream) path: looser tolerance.
    out_bf16 = gru_forward_pallas(X, M, t, params)
    out_bf16 = jax.block_until_ready(out_bf16)
    np.testing.assert_allclose(np.asarray(out_bf16), np.asarray(ref),
                               rtol=5e-2, atol=5e-2)

    print("KERNEL_OK")
</pallas_src>

<mosaic_0001>
module attributes {stable_mosaic.version = 11 : i64} {
  func.func @_gru_kernel(%arg0: i32, %arg1: i32, %arg2: memref<8x8x384xf32, #tpu.memory_space<vmem>>, %arg3: memref<8x8x1xf32, #tpu.memory_space<vmem>>, %arg4: memref<128x384xf32, #tpu.memory_space<vmem>>, %arg5: memref<1x384xf32, #tpu.memory_space<vmem>>, %arg6: memref<8x128xf32, #tpu.memory_space<vmem>>) attributes {dimension_semantics = [#tpu.dimension_semantics<parallel>, #tpu.dimension_semantics<arbitrary>], iteration_bounds = array<i64: 1, 1>, scalar_prefetch = 0 : i64, scratch_operands = 0 : i64, tpu.core_type = #tpu.core_type<tc>, window_params = [{transform_indices = @transform_0, window_bounds = array<i64: 8, 8, 384>}, {transform_indices = @transform_1, window_bounds = array<i64: 8, 8, 1>}, {pipeline_mode = #tpu.pipeline_mode<synchronous>, transform_indices = @transform_2, window_bounds = array<i64: 128, 384>}, {pipeline_mode = #tpu.pipeline_mode<synchronous>, transform_indices = @transform_3, window_bounds = array<i64: 1, 384>}, {transform_indices = @transform_4, window_bounds = array<i64: 8, 128>}]} {
    %c0_i32 = arith.constant 0 : i32
    %0 = arith.cmpi eq, %arg1, %c0_i32 : i32
    %1 = arith.extui %0 : i1 to i32
    %c0_i32_0 = arith.constant 0 : i32
    %2 = arith.cmpi ne, %1, %c0_i32_0 : i32
    scf.if %2 {
      %cst_72 = arith.constant 0.000000e+00 : f32
      %319 = vector.broadcast %cst_72 : f32 to vector<8x128xf32>
      %c0_73 = arith.constant 0 : index
      %c0_74 = arith.constant 0 : index
      %320 = vector.load %arg6[%c0_73, %c0_74] : memref<8x128xf32, #tpu.memory_space<vmem>>, vector<8x128xf32>
      tpu.vector_store %arg6[%c0_73, %c0_74], %319 {strides = array<i32>} : memref<8x128xf32, #tpu.memory_space<vmem>>, vector<8x128xf32>,
    } else {
    }
    %c0 = arith.constant 0 : index
    %c0_1 = arith.constant 0 : index
    %3 = vector.load %arg4[%c0, %c0_1] : memref<128x384xf32, #tpu.memory_space<vmem>>, vector<128x384xf32>
    %c0_2 = arith.constant 0 : index
    %c0_3 = arith.constant 0 : index
    %4 = vector.load %arg5[%c0_2, %c0_3] : memref<1x384xf32, #tpu.memory_space<vmem>>, vector<1x384xf32>
    %c0_4 = arith.constant 0 : index
    %c0_5 = arith.constant 0 : index
    %5 = vector.load %arg6[%c0_4, %c0_5] : memref<8x128xf32, #tpu.memory_space<vmem>>, vector<8x128xf32>
    %c0_i32_6 = arith.constant 0 : i32
    %6 = arith.index_cast %c0_i32_6 : i32 to index
    %c0_7 = arith.constant 0 : index
    %c0_8 = arith.constant 0 : index
    %7 = vector.load %arg2[%6, %c0_7, %c0_8] : memref<8x8x384xf32, #tpu.memory_space<vmem>>, vector<1x8x384xf32>
    %8 = vector.shape_cast %7 : vector<1x8x384xf32> to vector<8x384xf32>
    %9 = arith.index_cast %c0_i32_6 : i32 to index
    %c0_9 = arith.constant 0 : index
    %c0_10 = arith.constant 0 : index
    %10 = vector.load %arg3[%9, %c0_9, %c0_10] : memref<8x8x1xf32, #tpu.memory_space<vmem>>, vector<1x8x1xf32>
    %11 = vector.shape_cast %10 : vector<1x8x1xf32> to vector<8x1xf32>
    %cst = arith.constant dense<0.000000e+00> : vector<8x384xf32>
    %12 = tpu.matmul %5, %3, %cst {dimension_numbers = #tpu.dot_dimension_numbers<[1], [0], [0], [1], [0, 0, 1, 1], [], []>} : vector<8x128xf32>, vector<128x384xf32>, vector<8x384xf32> -> vector<8x384xf32>
    %13 = vector.broadcast %4 : vector<1x384xf32> to vector<8x384xf32>
    %14 = arith.addf %12, %13 : vector<8x384xf32>
    %15 = vector.extract_strided_slice %8 {offsets = [0, 0], sizes = [8, 128], strides = [1, 1]} : vector<8x384xf32> to vector<8x128xf32>
    %16 = vector.extract_strided_slice %14 {offsets = [0, 0], sizes = [8, 128], strides = [1, 1]} : vector<8x384xf32> to vector<8x128xf32>
    %17 = arith.addf %15, %16 : vector<8x128xf32>
    %18 = arith.negf %17 : vector<8x128xf32>
    %19 = math.exp %18 : vector<8x128xf32>
    %cst_11 = arith.constant 1.000000e+00 : f32
    %20 = vector.broadcast %cst_11 : f32 to vector<8x128xf32>
    %21 = arith.addf %20, %19 : vector<8x128xf32>
    %22 = arith.divf %20, %21 : vector<8x128xf32>
    %23 = vector.extract_strided_slice %8 {offsets = [0, 128], sizes = [8, 128], strides = [1, 1]} : vector<8x384xf32> to vector<8x128xf32>
    %24 = vector.extract_strided_slice %14 {offsets = [0, 128], sizes = [8, 128], strides = [1, 1]} : vector<8x384xf32> to vector<8x128xf32>
    %25 = arith.addf %23, %24 : vector<8x128xf32>
    %26 = arith.negf %25 : vector<8x128xf32>
    %27 = math.exp %26 : vector<8x128xf32>
    %cst_12 = arith.constant 1.000000e+00 : f32
    %28 = vector.broadcast %cst_12 : f32 to vector<8x128xf32>
    %29 = arith.addf %28, %27 : vector<8x128xf32>
    %30 = arith.divf %28, %29 : vector<8x128xf32>
    %31 = vector.extract_strided_slice %8 {offsets = [0, 256], sizes = [8, 128], strides = [1, 1]} : vector<8x384xf32> to vector<8x128xf32>
    %32 = vector.extract_strided_slice %14 {offsets = [0, 256], sizes = [8, 128], strides = [1, 1]} : vector<8x384xf32> to vector<8x128xf32>
    %33 = arith.mulf %22, %32 : vector<8x128xf32>
    %34 = arith.addf %31, %33 : vector<8x128xf32>
    %35 = math.tanh %34 : vector<8x128xf32>
    %cst_13 = arith.constant 1.000000e+00 : f32
    %36 = vector.broadcast %cst_13 : f32 to vector<8x128xf32>
    %37 = arith.subf %36, %30 : vector<8x128xf32>
    %38 = arith.mulf %37, %35 : vector<8x128xf32>
    %39 = arith.mulf %30, %5 : vector<8x128xf32>
    %40 = arith.addf %38, %39 : vector<8x128xf32>
    %41 = arith.subf %40, %5 : vector<8x128xf32>
    %42 = vector.broadcast %11 : vector<8x1xf32> to vector<8x128xf32>
    %43 = arith.mulf %42, %41 : vector<8x128xf32>
    %44 = arith.addf %5, %43 : vector<8x128xf32>
    %c1_i32 = arith.constant 1 : i32
    %45 = arith.index_cast %c1_i32 : i32 to index
    %c0_14 = arith.constant 0 : index
    %c0_15 = arith.constant 0 : index
    %46 = vector.load %arg2[%45, %c0_14, %c0_15] : memref<8x8x384xf32, #tpu.memory_space<vmem>>, vector<1x8x384xf32>
    %47 = vector.shape_cast %46 : vector<1x8x384xf32> to vector<8x384xf32>
    %48 = arith.index_cast %c1_i32 : i32 to index
    %c0_16 = arith.constant 0 : index
    %c0_17 = arith.constant 0 : index
    %49 = vector.load %arg3[%48, %c0_16, %c0_17] : memref<8x8x1xf32, #tpu.memory_space<vmem>>, vector<1x8x1xf32>
    %50 = vector.shape_cast %49 : vector<1x8x1xf32> to vector<8x1xf32>
    %cst_18 = arith.constant dense<0.000000e+00> : vector<8x384xf32>
    %51 = tpu.matmul %44, %3, %cst_18 {dimension_numbers = #tpu.dot_dimension_numbers<[1], [0], [0], [1], [0, 0, 1, 1], [], []>} : vector<8x128xf32>, vector<128x384xf32>, vector<8x384xf32> -> vector<8x384xf32>
    %52 = vector.broadcast %4 : vector<1x384xf32> to vector<8x384xf32>
    %53 = arith.addf %51, %52 : vector<8x384xf32>
    %54 = vector.extract_strided_slice %47 {offsets = [0, 0], sizes = [8, 128], strides = [1, 1]} : vector<8x384xf32> to vector<8x128xf32>
    %55 = vector.extract_strided_slice %53 {offsets = [0, 0], sizes = [8, 128], strides = [1, 1]} : vector<8x384xf32> to vector<8x128xf32>
    %56 = arith.addf %54, %55 : vector<8x128xf32>
    %57 = arith.negf %56 : vector<8x128xf32>
    %58 = math.exp %57 : vector<8x128xf32>
    %cst_19 = arith.constant 1.000000e+00 : f32
    %59 = vector.broadcast %cst_19 : f32 to vector<8x128xf32>
    %60 = arith.addf %59, %58 : vector<8x128xf32>
    %61 = arith.divf %59, %60 : vector<8x128xf32>
    %62 = vector.extract_strided_slice %47 {offsets = [0, 128], sizes = [8, 128], strides = [1, 1]} : vector<8x384xf32> to vector<8x128xf32>
    %63 = vector.extract_strided_slice %53 {offsets = [0, 128], sizes = [8, 128], strides = [1, 1]} : vector<8x384xf32> to vector<8x128xf32>
    %64 = arith.addf %62, %63 : vector<8x128xf32>
    %65 = arith.negf %64 : vector<8x128xf32>
    %66 = math.exp %65 : vector<8x128xf32>
    %cst_20 = arith.constant 1.000000e+00 : f32
    %67 = vector.broadcast %cst_20 : f32 to vector<8x128xf32>
    %68 = arith.addf %67, %66 : vector<8x128xf32>
    %69 = arith.divf %67, %68 : vector<8x128xf32>
    %70 = vector.extract_strided_slice %47 {offsets = [0, 256], sizes = [8, 128], strides = [1, 1]} : vector<8x384xf32> to vector<8x128xf32>
    %71 = vector.extract_strided_slice %53 {offsets = [0, 256], sizes = [8, 128], strides = [1, 1]} : vector<8x384xf32> to vector<8x128xf32>
    %72 = arith.mulf %61, %71 : vector<8x128xf32>
    %73 = arith.addf %70, %72 : vector<8x128xf32>
    %74 = math.tanh %73 : vector<8x128xf32>
    %cst_21 = arith.constant 1.000000e+00 : f32
    %75 = vector.broadcast %cst_21 : f32 to vector<8x128xf32>
    %76 = arith.subf %75, %69 : vector<8x128xf32>
    %77 = arith.mulf %76, %74 : vector<8x128xf32>
    %78 = arith.mulf %69, %44 : vector<8x128xf32>
    %79 = arith.addf %77, %78 : vector<8x128xf32>
    %80 = arith.subf %79, %44 : vector<8x128xf32>
    %81 = vector.broadcast %50 : vector<8x1xf32> to vector<8x128xf32>
    %82 = arith.mulf %81, %80 : vector<8x128xf32>
    %83 = arith.addf %44, %82 : vector<8x128xf32>
    %c2_i32 = arith.constant 2 : i32
    %84 = arith.index_cast %c2_i32 : i32 to index
    %c0_22 = arith.constant 0 : index
    %c0_23 = arith.constant 0 : index
    %85 = vector.load %arg2[%84, %c0_22, %c0_23] : memref<8x8x384xf32, #tpu.memory_space<vmem>>, vector<1x8x384xf32>
    %86 = vector.shape_cast %85 : vector<1x8x384xf32> to vector<8x384xf32>
    %87 = arith.index_cast %c2_i32 : i32 to index
    %c0_24 = arith.constant 0 : index
    %c0_25 = arith.constant 0 : index
    %88 = vector.load %arg3[%87, %c0_24, %c0_25] : memref<8x8x1xf32, #tpu.memory_space<vmem>>, vector<1x8x1xf32>
    %89 = vector.shape_cast %88 : vector<1x8x1xf32> to vector<8x1xf32>
    %cst_26 = arith.constant dense<0.000000e+00> : vector<8x384xf32>
    %90 = tpu.matmul %83, %3, %cst_26 {dimension_numbers = #tpu.dot_dimension_numbers<[1], [0], [0], [1], [0, 0, 1, 1], [], []>} : vector<8x128xf32>, vector<128x384xf32>, vector<8x384xf32> -> vector<8x384xf32>
    %91 = vector.broadcast %4 : vector<1x384xf32> to vector<8x384xf32>
    %92 = arith.addf %90, %91 : vector<8x384xf32>
    %93 = vector.extract_strided_slice %86 {offsets = [0, 0], sizes = [8, 128], strides = [1, 1]} : vector<8x384xf32> to vector<8x128xf32>
    %94 = vector.extract_strided_slice %92 {offsets = [0, 0], sizes = [8, 128], strides = [1, 1]} : vector<8x384xf32> to vector<8x128xf32>
    %95 = arith.addf %93, %94 : vector<8x128xf32>
    %96 = arith.negf %95 : vector<8x128xf32>
    %97 = math.exp %96 : vector<8x128xf32>
    %cst_27 = arith.constant 1.000000e+00 : f32
    %98 = vector.broadcast %cst_27 : f32 to vector<8x128xf32>
    %99 = arith.addf %98, %97 : vector<8x128xf32>
    %100 = arith.divf %98, %99 : vector<8x128xf32>
    %101 = vector.extract_strided_slice %86 {offsets = [0, 128], sizes = [8, 128], strides = [1, 1]} : vector<8x384xf32> to vector<8x128xf32>
    %102 = vector.extract_strided_slice %92 {offsets = [0, 128], sizes = [8, 128], strides = [1, 1]} : vector<8x384xf32> to vector<8x128xf32>
    %103 = arith.addf %101, %102 : vector<8x128xf32>
    %104 = arith.negf %103 : vector<8x128xf32>
    %105 = math.exp %104 : vector<8x128xf32>
    %cst_28 = arith.constant 1.000000e+00 : f32
    %106 = vector.broadcast %cst_28 : f32 to vector<8x128xf32>
    %107 = arith.addf %106, %105 : vector<8x128xf32>
    %108 = arith.divf %106, %107 : vector<8x128xf32>
    %109 = vector.extract_strided_slice %86 {offsets = [0, 256], sizes = [8, 128], strides = [1, 1]} : vector<8x384xf32> to vector<8x128xf32>
    %110 = vector.extract_strided_slice %92 {offsets = [0, 256], sizes = [8, 128], strides = [1, 1]} : vector<8x384xf32> to vector<8x128xf32>
    %111 = arith.mulf %100, %110 : vector<8x128xf32>
    %112 = arith.addf %109, %111 : vector<8x128xf32>
    %113 = math.tanh %112 : vector<8x128xf32>
    %cst_29 = arith.constant 1.000000e+00 : f32
    %114 = vector.broadcast %cst_29 : f32 to vector<8x128xf32>
    %115 = arith.subf %114, %108 : vector<8x128xf32>
    %116 = arith.mulf %115, %113 : vector<8x128xf32>
    %117 = arith.mulf %108, %83 : vector<8x128xf32>
    %118 = arith.addf %116, %117 : vector<8x128xf32>
    %119 = arith.subf %118, %83 : vector<8x128xf32>
    %120 = vector.broadcast %89 : vector<8x1xf32> to vector<8x128xf32>
    %121 = arith.mulf %120, %119 : vector<8x128xf32>
    %122 = arith.addf %83, %121 : vector<8x128xf32>
    %c3_i32 = arith.constant 3 : i32
    %123 = arith.index_cast %c3_i32 : i32 to index
    %c0_30 = arith.constant 0 : index
    %c0_31 = arith.constant 0 : index
    %124 = vector.load %arg2[%123, %c0_30, %c0_31] : memref<8x8x384xf32, #tpu.memory_space<vmem>>, vector<1x8x384xf32>
    %125 = vector.shape_cast %124 : vector<1x8x384xf32> to vector<8x384xf32>
    %126 = arith.index_cast %c3_i32 : i32 to index
    %c0_32 = arith.constant 0 : index
    %c0_33 = arith.constant 0 : index
    %127 = vector.load %arg3[%126, %c0_32, %c0_33] : memref<8x8x1xf32, #tpu.memory_space<vmem>>, vector<1x8x1xf32>
    %128 = vector.shape_cast %127 : vector<1x8x1xf32> to vector<8x1xf32>
    %cst_34 = arith.constant dense<0.000000e+00> : vector<8x384xf32>
    %129 = tpu.matmul %122, %3, %cst_34 {dimension_numbers = #tpu.dot_dimension_numbers<[1], [0], [0], [1], [0, 0, 1, 1], [], []>} : vector<8x128xf32>, vector<128x384xf32>, vector<8x384xf32> -> vector<8x384xf32>
    %130 = vector.broadcast %4 : vector<1x384xf32> to vector<8x384xf32>
    %131 = arith.addf %129, %130 : vector<8x384xf32>
    %132 = vector.extract_strided_slice %125 {offsets = [0, 0], sizes = [8, 128], strides = [1, 1]} : vector<8x384xf32> to vector<8x128xf32>
    %133 = vector.extract_strided_slice %131 {offsets = [0, 0], sizes = [8, 128], strides = [1, 1]} : vector<8x384xf32> to vector<8x128xf32>
    %134 = arith.addf %132, %133 : vector<8x128xf32>
    %135 = arith.negf %134 : vector<8x128xf32>
    %136 = math.exp %135 : vector<8x128xf32>
    %cst_35 = arith.constant 1.000000e+00 : f32
    %137 = vector.broadcast %cst_35 : f32 to vector<8x128xf32>
    %138 = arith.addf %137, %136 : vector<8x128xf32>
    %139 = arith.divf %137, %138 : vector<8x128xf32>
    %140 = vector.extract_strided_slice %125 {offsets = [0, 128], sizes = [8, 128], strides = [1, 1]} : vector<8x384xf32> to vector<8x128xf32>
    %141 = vector.extract_strided_slice %131 {offsets = [0, 128], sizes = [8, 128], strides = [1, 1]} : vector<8x384xf32> to vector<8x128xf32>
    %142 = arith.addf %140, %141 : vector<8x128xf32>
    %143 = arith.negf %142 : vector<8x128xf32>
    %144 = math.exp %143 : vector<8x128xf32>
    %cst_36 = arith.constant 1.000000e+00 : f32
    %145 = vector.broadcast %cst_36 : f32 to vector<8x128xf32>
    %146 = arith.addf %145, %144 : vector<8x128xf32>
    %147 = arith.divf %145, %146 : vector<8x128xf32>
    %148 = vector.extract_strided_slice %125 {offsets = [0, 256], sizes = [8, 128], strides = [1, 1]} : vector<8x384xf32> to vector<8x128xf32>
    %149 = vector.extract_strided_slice %131 {offsets = [0, 256], sizes = [8, 128], strides = [1, 1]} : vector<8x384xf32> to vector<8x128xf32>
    %150 = arith.mulf %139, %149 : vector<8x128xf32>
    %151 = arith.addf %148, %150 : vector<8x128xf32>
    %152 = math.tanh %151 : vector<8x128xf32>
    %cst_37 = arith.constant 1.000000e+00 : f32
    %153 = vector.broadcast %cst_37 : f32 to vector<8x128xf32>
    %154 = arith.subf %153, %147 : vector<8x128xf32>
    %155 = arith.mulf %154, %152 : vector<8x128xf32>
    %156 = arith.mulf %147, %122 : vector<8x128xf32>
    %157 = arith.addf %155, %156 : vector<8x128xf32>
    %158 = arith.subf %157, %122 : vector<8x128xf32>
    %159 = vector.broadcast %128 : vector<8x1xf32> to vector<8x128xf32>
    %160 = arith.mulf %159, %158 : vector<8x128xf32>
    %161 = arith.addf %122, %160 : vector<8x128xf32>
    %c4_i32 = arith.constant 4 : i32
    %162 = arith.index_cast %c4_i32 : i32 to index
    %c0_38 = arith.constant 0 : index
    %c0_39 = arith.constant 0 : index
    %163 = vector.load %arg2[%162, %c0_38, %c0_39] : memref<8x8x384xf32, #tpu.memory_space<vmem>>, vector<1x8x384xf32>
    %164 = vector.shape_cast %163 : vector<1x8x384xf32> to vector<8x384xf32>
    %165 = arith.index_cast %c4_i32 : i32 to index
    %c0_40 = arith.constant 0 : index
    %c0_41 = arith.constant 0 : index
    %166 = vector.load %arg3[%165, %c0_40, %c0_41] : memref<8x8x1xf32, #tpu.memory_space<vmem>>, vector<1x8x1xf32>
    %167 = vector.shape_cast %166 : vector<1x8x1xf32> to vector<8x1xf32>
    %cst_42 = arith.constant dense<0.000000e+00> : vector<8x384xf32>
    %168 = tpu.matmul %161, %3, %cst_42 {dimension_numbers = #tpu.dot_dimension_numbers<[1], [0], [0], [1], [0, 0, 1, 1], [], []>} : vector<8x128xf32>, vector<128x384xf32>, vector<8x384xf32> -> vector<8x384xf32>
    %169 = vector.broadcast %4 : vector<1x384xf32> to vector<8x384xf32>
    %170 = arith.addf %168, %169 : vector<8x384xf32>
    %171 = vector.extract_strided_slice %164 {offsets = [0, 0], sizes = [8, 128], strides = [1, 1]} : vector<8x384xf32> to vector<8x128xf32>
    %172 = vector.extract_strided_slice %170 {offsets = [0, 0], sizes = [8, 128], strides = [1, 1]} : vector<8x384xf32> to vector<8x128xf32>
    %173 = arith.addf %171, %172 : vector<8x128xf32>
    %174 = arith.negf %173 : vector<8x128xf32>
    %175 = math.exp %174 : vector<8x128xf32>
    %cst_43 = arith.constant 1.000000e+00 : f32
    %176 = vector.broadcast %cst_43 : f32 to vector<8x128xf32>
    %177 = arith.addf %176, %175 : vector<8x128xf32>
    %178 = arith.divf %176, %177 : vector<8x128xf32>
    %179 = vector.extract_strided_slice %164 {offsets = [0, 128], sizes = [8, 128], strides = [1, 1]} : vector<8x384xf32> to vector<8x128xf32>
    %180 = vector.extract_strided_slice %170 {offsets = [0, 128], sizes = [8, 128], strides = [1, 1]} : vector<8x384xf32> to vector<8x128xf32>
    %181 = arith.addf %179, %180 : vector<8x128xf32>
    %182 = arith.negf %181 : vector<8x128xf32>
    %183 = math.exp %182 : vector<8x128xf32>
    %cst_44 = arith.constant 1.000000e+00 : f32
    %184 = vector.broadcast %cst_44 : f32 to vector<8x128xf32>
    %185 = arith.addf %184, %183 : vector<8x128xf32>
    %186 = arith.divf %184, %185 : vector<8x128xf32>
    %187 = vector.extract_strided_slice %164 {offsets = [0, 256], sizes = [8, 128], strides = [1, 1]} : vector<8x384xf32> to vector<8x128xf32>
    %188 = vector.extract_strided_slice %170 {offsets = [0, 256], sizes = [8, 128], strides = [1, 1]} : vector<8x384xf32> to vector<8x128xf32>
    %189 = arith.mulf %178, %188 : vector<8x128xf32>
    %190 = arith.addf %187, %189 : vector<8x128xf32>
    %191 = math.tanh %190 : vector<8x128xf32>
    %cst_45 = arith.constant 1.000000e+00 : f32
    %192 = vector.broadcast %cst_45 : f32 to vector<8x128xf32>
    %193 = arith.subf %192, %186 : vector<8x128xf32>
    %194 = arith.mulf %193, %191 : vector<8x128xf32>
    %195 = arith.mulf %186, %161 : vector<8x128xf32>
    %196 = arith.addf %194, %195 : vector<8x128xf32>
    %197 = arith.subf %196, %161 : vector<8x128xf32>
    %198 = vector.broadcast %167 : vector<8x1xf32> to vector<8x128xf32>
    %199 = arith.mulf %198, %197 : vector<8x128xf32>
    %200 = arith.addf %161, %199 : vector<8x128xf32>
    %c5_i32 = arith.constant 5 : i32
    %201 = arith.index_cast %c5_i32 : i32 to index
    %c0_46 = arith.constant 0 : index
    %c0_47 = arith.constant 0 : index
    %202 = vector.load %arg2[%201, %c0_46, %c0_47] : memref<8x8x384xf32, #tpu.memory_space<vmem>>, vector<1x8x384xf32>
    %203 = vector.shape_cast %202 : vector<1x8x384xf32> to vector<8x384xf32>
    %204 = arith.index_cast %c5_i32 : i32 to index
    %c0_48 = arith.constant 0 : index
    %c0_49 = arith.constant 0 : index
    %205 = vector.load %arg3[%204, %c0_48, %c0_49] : memref<8x8x1xf32, #tpu.memory_space<vmem>>, vector<1x8x1xf32>
    %206 = vector.shape_cast %205 : vector<1x8x1xf32> to vector<8x1xf32>
    %cst_50 = arith.constant dense<0.000000e+00> : vector<8x384xf32>
    %207 = tpu.matmul %200, %3, %cst_50 {dimension_numbers = #tpu.dot_dimension_numbers<[1], [0], [0], [1], [0, 0, 1, 1], [], []>} : vector<8x128xf32>, vector<128x384xf32>, vector<8x384xf32> -> vector<8x384xf32>
    %208 = vector.broadcast %4 : vector<1x384xf32> to vector<8x384xf32>
    %209 = arith.addf %207, %208 : vector<8x384xf32>
    %210 = vector.extract_strided_slice %203 {offsets = [0, 0], sizes = [8, 128], strides = [1, 1]} : vector<8x384xf32> to vector<8x128xf32>
    %211 = vector.extract_strided_slice %209 {offsets = [0, 0], sizes = [8, 128], strides = [1, 1]} : vector<8x384xf32> to vector<8x128xf32>
    %212 = arith.addf %210, %211 : vector<8x128xf32>
    %213 = arith.negf %212 : vector<8x128xf32>
    %214 = math.exp %213 : vector<8x128xf32>
    %cst_51 = arith.constant 1.000000e+00 : f32
    %215 = vector.broadcast %cst_51 : f32 to vector<8x128xf32>
    %216 = arith.addf %215, %214 : vector<8x128xf32>
    %217 = arith.divf %215, %216 : vector<8x128xf32>
    %218 = vector.extract_strided_slice %203 {offsets = [0, 128], sizes = [8, 128], strides = [1, 1]} : vector<8x384xf32> to vector<8x128xf32>
    %219 = vector.extract_strided_slice %209 {offsets = [0, 128], sizes = [8, 128], strides = [1, 1]} : vector<8x384xf32> to vector<8x128xf32>
    %220 = arith.addf %218, %219 : vector<8x128xf32>
    %221 = arith.negf %220 : vector<8x128xf32>
    %222 = math.exp %221 : vector<8x128xf32>
    %cst_52 = arith.constant 1.000000e+00 : f32
    %223 = vector.broadcast %cst_52 : f32 to vector<8x128xf32>
    %224 = arith.addf %223, %222 : vector<8x128xf32>
    %225 = arith.divf %223, %224 : vector<8x128xf32>
    %226 = vector.extract_strided_slice %203 {offsets = [0, 256], sizes = [8, 128], strides = [1, 1]} : vector<8x384xf32> to vector<8x128xf32>
    %227 = vector.extract_strided_slice %209 {offsets = [0, 256], sizes = [8, 128], strides = [1, 1]} : vector<8x384xf32> to vector<8x128xf32>
    %228 = arith.mulf %217, %227 : vector<8x128xf32>
    %229 = arith.addf %226, %228 : vector<8x128xf32>
    %230 = math.tanh %229 : vector<8x128xf32>
    %cst_53 = arith.constant 1.000000e+00 : f32
    %231 = vector.broadcast %cst_53 : f32 to vector<8x128xf32>
    %232 = arith.subf %231, %225 : vector<8x128xf32>
    %233 = arith.mulf %232, %230 : vector<8x128xf32>
    %234 = arith.mulf %225, %200 : vector<8x128xf32>
    %235 = arith.addf %233, %234 : vector<8x128xf32>
    %236 = arith.subf %235, %200 : vector<8x128xf32>
    %237 = vector.broadcast %206 : vector<8x1xf32> to vector<8x128xf32>
    %238 = arith.mulf %237, %236 : vector<8x128xf32>
    %239 = arith.addf %200, %238 : vector<8x128xf32>
    %c6_i32 = arith.constant 6 : i32
    %240 = arith.index_cast %c6_i32 : i32 to index
    %c0_54 = arith.constant 0 : index
    %c0_55 = arith.constant 0 : index
    %241 = vector.load %arg2[%240, %c0_54, %c0_55] : memref<8x8x384xf32, #tpu.memory_space<vmem>>, vector<1x8x384xf32>
    %242 = vector.shape_cast %241 : vector<1x8x384xf32> to vector<8x384xf32>
    %243 = arith.index_cast %c6_i32 : i32 to index
    %c0_56 = arith.constant 0 : index
    %c0_57 = arith.constant 0 : index
    %244 = vector.load %arg3[%243, %c0_56, %c0_57] : memref<8x8x1xf32, #tpu.memory_space<vmem>>, vector<1x8x1xf32>
    %245 = vector.shape_cast %244 : vector<1x8x1xf32> to vector<8x1xf32>
    %cst_58 = arith.constant dense<0.000000e+00> : vector<8x384xf32>
    %246 = tpu.matmul %239, %3, %cst_58 {dimension_numbers = #tpu.dot_dimension_numbers<[1], [0], [0], [1], [0, 0, 1, 1], [], []>} : vector<8x128xf32>, vector<128x384xf32>, vector<8x384xf32> -> vector<8x384xf32>
    %247 = vector.broadcast %4 : vector<1x384xf32> to vector<8x384xf32>
    %248 = arith.addf %246, %247 : vector<8x384xf32>
    %249 = vector.extract_strided_slice %242 {offsets = [0, 0], sizes = [8, 128], strides = [1, 1]} : vector<8x384xf32> to vector<8x128xf32>
    %250 = vector.extract_strided_slice %248 {offsets = [0, 0], sizes = [8, 128], strides = [1, 1]} : vector<8x384xf32> to vector<8x128xf32>
    %251 = arith.addf %249, %250 : vector<8x128xf32>
    %252 = arith.negf %251 : vector<8x128xf32>
    %253 = math.exp %252 : vector<8x128xf32>
    %cst_59 = arith.constant 1.000000e+00 : f32
    %254 = vector.broadcast %cst_59 : f32 to vector<8x128xf32>
    %255 = arith.addf %254, %253 : vector<8x128xf32>
    %256 = arith.divf %254, %255 : vector<8x128xf32>
    %257 = vector.extract_strided_slice %242 {offsets = [0, 128], sizes = [8, 128], strides = [1, 1]} : vector<8x384xf32> to vector<8x128xf32>
    %258 = vector.extract_strided_slice %248 {offsets = [0, 128], sizes = [8, 128], strides = [1, 1]} : vector<8x384xf32> to vector<8x128xf32>
    %259 = arith.addf %257, %258 : vector<8x128xf32>
    %260 = arith.negf %259 : vector<8x128xf32>
    %261 = math.exp %260 : vector<8x128xf32>
    %cst_60 = arith.constant 1.000000e+00 : f32
    %262 = vector.broadcast %cst_60 : f32 to vector<8x128xf32>
    %263 = arith.addf %262, %261 : vector<8x128xf32>
    %264 = arith.divf %262, %263 : vector<8x128xf32>
    %265 = vector.extract_strided_slice %242 {offsets = [0, 256], sizes = [8, 128], strides = [1, 1]} : vector<8x384xf32> to vector<8x128xf32>
    %266 = vector.extract_strided_slice %248 {offsets = [0, 256], sizes = [8, 128], strides = [1, 1]} : vector<8x384xf32> to vector<8x128xf32>
    %267 = arith.mulf %256, %266 : vector<8x128xf32>
    %268 = arith.addf %265, %267 : vector<8x128xf32>
    %269 = math.tanh %268 : vector<8x128xf32>
    %cst_61 = arith.constant 1.000000e+00 : f32
    %270 = vector.broadcast %cst_61 : f32 to vector<8x128xf32>
    %271 = arith.subf %270, %264 : vector<8x128xf32>
    %272 = arith.mulf %271, %269 : vector<8x128xf32>
    %273 = arith.mulf %264, %239 : vector<8x128xf32>
    %274 = arith.addf %272, %273 : vector<8x128xf32>
    %275 = arith.subf %274, %239 : vector<8x128xf32>
    %276 = vector.broadcast %245 : vector<8x1xf32> to vector<8x128xf32>
    %277 = arith.mulf %276, %275 : vector<8x128xf32>
    %278 = arith.addf %239, %277 : vector<8x128xf32>
    %c7_i32 = arith.constant 7 : i32
    %279 = arith.index_cast %c7_i32 : i32 to index
    %c0_62 = arith.constant 0 : index
    %c0_63 = arith.constant 0 : index
    %280 = vector.load %arg2[%279, %c0_62, %c0_63] : memref<8x8x384xf32, #tpu.memory_space<vmem>>, vector<1x8x384xf32>
    %281 = vector.shape_cast %280 : vector<1x8x384xf32> to vector<8x384xf32>
    %282 = arith.index_cast %c7_i32 : i32 to index
    %c0_64 = arith.constant 0 : index
    %c0_65 = arith.constant 0 : index
    %283 = vector.load %arg3[%282, %c0_64, %c0_65] : memref<8x8x1xf32, #tpu.memory_space<vmem>>, vector<1x8x1xf32>
    %284 = vector.shape_cast %283 : vector<1x8x1xf32> to vector<8x1xf32>
    %cst_66 = arith.constant dense<0.000000e+00> : vector<8x384xf32>
    %285 = tpu.matmul %278, %3, %cst_66 {dimension_numbers = #tpu.dot_dimension_numbers<[1], [0], [0], [1], [0, 0, 1, 1], [], []>} : vector<8x128xf32>, vector<128x384xf32>, vector<8x384xf32> -> vector<8x384xf32>
    %286 = vector.broadcast %4 : vector<1x384xf32> to vector<8x384xf32>
    %287 = arith.addf %285, %286 : vector<8x384xf32>
    %288 = vector.extract_strided_slice %281 {offsets = [0, 0], sizes = [8, 128], strides = [1, 1]} : vector<8x384xf32> to vector<8x128xf32>
    %289 = vector.extract_strided_slice %287 {offsets = [0, 0], sizes = [8, 128], strides = [1, 1]} : vector<8x384xf32> to vector<8x128xf32>
    %290 = arith.addf %288, %289 : vector<8x128xf32>
    %291 = arith.negf %290 : vector<8x128xf32>
    %292 = math.exp %291 : vector<8x128xf32>
    %cst_67 = arith.constant 1.000000e+00 : f32
    %293 = vector.broadcast %cst_67 : f32 to vector<8x128xf32>
    %294 = arith.addf %293, %292 : vector<8x128xf32>
    %295 = arith.divf %293, %294 : vector<8x128xf32>
    %296 = vector.extract_strided_slice %281 {offsets = [0, 128], sizes = [8, 128], strides = [1, 1]} : vector<8x384xf32> to vector<8x128xf32>
    %297 = vector.extract_strided_slice %287 {offsets = [0, 128], sizes = [8, 128], strides = [1, 1]} : vector<8x384xf32> to vector<8x128xf32>
    %298 = arith.addf %296, %297 : vector<8x128xf32>
    %299 = arith.negf %298 : vector<8x128xf32>
    %300 = math.exp %299 : vector<8x128xf32>
    %cst_68 = arith.constant 1.000000e+00 : f32
    %301 = vector.broadcast %cst_68 : f32 to vector<8x128xf32>
    %302 = arith.addf %301, %300 : vector<8x128xf32>
    %303 = arith.divf %301, %302 : vector<8x128xf32>
    %304 = vector.extract_strided_slice %281 {offsets = [0, 256], sizes = [8, 128], strides = [1, 1]} : vector<8x384xf32> to vector<8x128xf32>
    %305 = vector.extract_strided_slice %287 {offsets = [0, 256], sizes = [8, 128], strides = [1, 1]} : vector<8x384xf32> to vector<8x128xf32>
    %306 = arith.mulf %295, %305 : vector<8x128xf32>
    %307 = arith.addf %304, %306 : vector<8x128xf32>
    %308 = math.tanh %307 : vector<8x128xf32>
    %cst_69 = arith.constant 1.000000e+00 : f32
    %309 = vector.broadcast %cst_69 : f32 to vector<8x128xf32>
    %310 = arith.subf %309, %303 : vector<8x128xf32>
    %311 = arith.mulf %310, %308 : vector<8x128xf32>
    %312 = arith.mulf %303, %278 : vector<8x128xf32>
    %313 = arith.addf %311, %312 : vector<8x128xf32>
    %314 = arith.subf %313, %278 : vector<8x128xf32>
    %315 = vector.broadcast %284 : vector<8x1xf32> to vector<8x128xf32>
    %316 = arith.mulf %315, %314 : vector<8x128xf32>
    %317 = arith.addf %278, %316 : vector<8x128xf32>
    %c8_i32 = arith.constant 8 : i32
    %c0_70 = arith.constant 0 : index
    %c0_71 = arith.constant 0 : index
    %318 = vector.load %arg6[%c0_70, %c0_71] : memref<8x128xf32, #tpu.memory_space<vmem>>, vector<8x128xf32>
    tpu.vector_store %arg6[%c0_70, %c0_71], %317 {strides = array<i32>} : memref<8x128xf32, #tpu.memory_space<vmem>>, vector<8x128xf32>,
    return
  }
  func.func @transform_0(%arg0: i32, %arg1: i32) -> (i32, i32, i32) {
    %c0_i32 = arith.constant 0 : i32
    %c0_i32_0 = arith.constant 0 : i32
    return %arg1, %arg0, %c0_i32 : i32, i32, i32
  }
  func.func @transform_1(%arg0: i32, %arg1: i32) -> (i32, i32, i32) {
    %c0_i32 = arith.constant 0 : i32
    %c0_i32_0 = arith.constant 0 : i32
    return %arg1, %arg0, %c0_i32 : i32, i32, i32
  }
  func.func @transform_2(%arg0: i32, %arg1: i32) -> (i32, i32) {
    %c0_i32 = arith.constant 0 : i32
    %c0_i32_0 = arith.constant 0 : i32
    %c0_i32_1 = arith.constant 0 : i32
    return %c0_i32, %c0_i32_0 : i32, i32
  }
  func.func @transform_3(%arg0: i32, %arg1: i32) -> (i32, i32) {
    %c0_i32 = arith.constant 0 : i32
    %c0_i32_0 = arith.constant 0 : i32
    %c0_i32_1 = arith.constant 0 : i32
    return %c0_i32, %c0_i32_0 : i32, i32
  }
  func.func @transform_4(%arg0: i32, %arg1: i32) -> (i32, i32) {
    %c0_i32 = arith.constant 0 : i32
    %c0_i32_0 = arith.constant 0 : i32
    return %arg0, %c0_i32 : i32, i32
  }
}

module attributes {stable_mosaic.version = 11 : i64} {
  func.func @_gru_kernel(%arg0: i32, %arg1: i32, %arg2: memref<8x8x384xf32, #tpu.memory_space<vmem>>, %arg3: memref<8x8x1xf32, #tpu.memory_space<vmem>>, %arg4: memref<128x384xf32, #tpu.memory_space<vmem>>, %arg5: memref<1x384xf32, #tpu.memory_space<vmem>>, %arg6: memref<8x128xf32, #tpu.memory_space<vmem>>) attributes {dimension_semantics = [#tpu.dimension_semantics<parallel>, #tpu.dimension_semantics<arbitrary>], iteration_bounds = array<i64: 1, 1>, scalar_prefetch = 0 : i64, scratch_operands = 0 : i64, tpu.core_type = #tpu.core_type<tc>, window_params = [{transform_indices = @transform_0, window_bounds = array<i64: 8, 8, 384>}, {transform_indices = @transform_1, window_bounds = array<i64: 8, 8, 1>}, {pipeline_mode = #tpu.pipeline_mode<synchronous>, transform_indices = @transform_2, window_bounds = array<i64: 128, 384>}, {pipeline_mode = #tpu.pipeline_mode<synchronous>, transform_indices = @transform_3, window_bounds = array<i64: 1, 384>}, {transform_indices = @transform_4, window_bounds = array<i64: 8, 128>}]} {
    %c0_i32 = arith.constant 0 : i32
    %0 = arith.cmpi eq, %arg1, %c0_i32 : i32
    %1 = arith.extui %0 : i1 to i32
    %c0_i32_0 = arith.constant 0 : i32
    %2 = arith.cmpi ne, %1, %c0_i32_0 : i32
    scf.if %2 {
      %cst_72 = arith.constant 0.000000e+00 : f32
      %319 = vector.broadcast %cst_72 : f32 to vector<8x128xf32>
      %c0_73 = arith.constant 0 : index
      %c0_74 = arith.constant 0 : index
      %320 = vector.load %arg6[%c0_73, %c0_74] : memref<8x128xf32, #tpu.memory_space<vmem>>, vector<8x128xf32>
      tpu.vector_store %arg6[%c0_73, %c0_74], %319 {strides = array<i32>} : memref<8x128xf32, #tpu.memory_space<vmem>>, vector<8x128xf32>,
    } else {
    }
    %c0 = arith.constant 0 : index
    %c0_1 = arith.constant 0 : index
    %3 = vector.load %arg4[%c0, %c0_1] : memref<128x384xf32, #tpu.memory_space<vmem>>, vector<128x384xf32>
    %c0_2 = arith.constant 0 : index
    %c0_3 = arith.constant 0 : index
    %4 = vector.load %arg5[%c0_2, %c0_3] : memref<1x384xf32, #tpu.memory_space<vmem>>, vector<1x384xf32>
    %c0_4 = arith.constant 0 : index
    %c0_5 = arith.constant 0 : index
    %5 = vector.load %arg6[%c0_4, %c0_5] : memref<8x128xf32, #tpu.memory_space<vmem>>, vector<8x128xf32>
    %c0_i32_6 = arith.constant 0 : i32
    %6 = arith.index_cast %c0_i32_6 : i32 to index
    %c0_7 = arith.constant 0 : index
    %c0_8 = arith.constant 0 : index
    %7 = vector.load %arg2[%6, %c0_7, %c0_8] : memref<8x8x384xf32, #tpu.memory_space<vmem>>, vector<1x8x384xf32>
    %8 = vector.shape_cast %7 : vector<1x8x384xf32> to vector<8x384xf32>
    %9 = arith.index_cast %c0_i32_6 : i32 to index
    %c0_9 = arith.constant 0 : index
    %c0_10 = arith.constant 0 : index
    %10 = vector.load %arg3[%9, %c0_9, %c0_10] : memref<8x8x1xf32, #tpu.memory_space<vmem>>, vector<1x8x1xf32>
    %11 = vector.shape_cast %10 : vector<1x8x1xf32> to vector<8x1xf32>
    %cst = arith.constant dense<0.000000e+00> : vector<8x384xf32>
    %12 = tpu.matmul %5, %3, %cst {dimension_numbers = #tpu.dot_dimension_numbers<[1], [0], [0], [1], [0, 0, 1, 1], [], []>} : vector<8x128xf32>, vector<128x384xf32>, vector<8x384xf32> -> vector<8x384xf32>
    %13 = vector.broadcast %4 : vector<1x384xf32> to vector<8x384xf32>
    %14 = arith.addf %12, %13 : vector<8x384xf32>
    %15 = vector.extract_strided_slice %8 {offsets = [0, 0], sizes = [8, 128], strides = [1, 1]} : vector<8x384xf32> to vector<8x128xf32>
    %16 = vector.extract_strided_slice %14 {offsets = [0, 0], sizes = [8, 128], strides = [1, 1]} : vector<8x384xf32> to vector<8x128xf32>
    %17 = arith.addf %15, %16 : vector<8x128xf32>
    %18 = arith.negf %17 : vector<8x128xf32>
    %19 = math.exp %18 : vector<8x128xf32>
    %cst_11 = arith.constant 1.000000e+00 : f32
    %20 = vector.broadcast %cst_11 : f32 to vector<8x128xf32>
    %21 = arith.addf %20, %19 : vector<8x128xf32>
    %22 = arith.divf %20, %21 : vector<8x128xf32>
    %23 = vector.extract_strided_slice %8 {offsets = [0, 128], sizes = [8, 128], strides = [1, 1]} : vector<8x384xf32> to vector<8x128xf32>
    %24 = vector.extract_strided_slice %14 {offsets = [0, 128], sizes = [8, 128], strides = [1, 1]} : vector<8x384xf32> to vector<8x128xf32>
    %25 = arith.addf %23, %24 : vector<8x128xf32>
    %26 = arith.negf %25 : vector<8x128xf32>
    %27 = math.exp %26 : vector<8x128xf32>
    %cst_12 = arith.constant 1.000000e+00 : f32
    %28 = vector.broadcast %cst_12 : f32 to vector<8x128xf32>
    %29 = arith.addf %28, %27 : vector<8x128xf32>
    %30 = arith.divf %28, %29 : vector<8x128xf32>
    %31 = vector.extract_strided_slice %8 {offsets = [0, 256], sizes = [8, 128], strides = [1, 1]} : vector<8x384xf32> to vector<8x128xf32>
    %32 = vector.extract_strided_slice %14 {offsets = [0, 256], sizes = [8, 128], strides = [1, 1]} : vector<8x384xf32> to vector<8x128xf32>
    %33 = arith.mulf %22, %32 : vector<8x128xf32>
    %34 = arith.addf %31, %33 : vector<8x128xf32>
    %35 = math.tanh %34 : vector<8x128xf32>
    %cst_13 = arith.constant 1.000000e+00 : f32
    %36 = vector.broadcast %cst_13 : f32 to vector<8x128xf32>
    %37 = arith.subf %36, %30 : vector<8x128xf32>
    %38 = arith.mulf %37, %35 : vector<8x128xf32>
    %39 = arith.mulf %30, %5 : vector<8x128xf32>
    %40 = arith.addf %38, %39 : vector<8x128xf32>
    %41 = arith.subf %40, %5 : vector<8x128xf32>
    %42 = vector.broadcast %11 : vector<8x1xf32> to vector<8x128xf32>
    %43 = arith.mulf %42, %41 : vector<8x128xf32>
    %44 = arith.addf %5, %43 : vector<8x128xf32>
    %c1_i32 = arith.constant 1 : i32
    %45 = arith.index_cast %c1_i32 : i32 to index
    %c0_14 = arith.constant 0 : index
    %c0_15 = arith.constant 0 : index
    %46 = vector.load %arg2[%45, %c0_14, %c0_15] : memref<8x8x384xf32, #tpu.memory_space<vmem>>, vector<1x8x384xf32>
    %47 = vector.shape_cast %46 : vector<1x8x384xf32> to vector<8x384xf32>
    %48 = arith.index_cast %c1_i32 : i32 to index
    %c0_16 = arith.constant 0 : index
    %c0_17 = arith.constant 0 : index
    %49 = vector.load %arg3[%48, %c0_16, %c0_17] : memref<8x8x1xf32, #tpu.memory_space<vmem>>, vector<1x8x1xf32>
    %50 = vector.shape_cast %49 : vector<1x8x1xf32> to vector<8x1xf32>
    %cst_18 = arith.constant dense<0.000000e+00> : vector<8x384xf32>
    %51 = tpu.matmul %44, %3, %cst_18 {dimension_numbers = #tpu.dot_dimension_numbers<[1], [0], [0], [1], [0, 0, 1, 1], [], []>} : vector<8x128xf32>, vector<128x384xf32>, vector<8x384xf32> -> vector<8x384xf32>
    %52 = vector.broadcast %4 : vector<1x384xf32> to vector<8x384xf32>
    %53 = arith.addf %51, %52 : vector<8x384xf32>
    %54 = vector.extract_strided_slice %47 {offsets = [0, 0], sizes = [8, 128], strides = [1, 1]} : vector<8x384xf32> to vector<8x128xf32>
    %55 = vector.extract_strided_slice %53 {offsets = [0, 0], sizes = [8, 128], strides = [1, 1]} : vector<8x384xf32> to vector<8x128xf32>
    %56 = arith.addf %54, %55 : vector<8x128xf32>
    %57 = arith.negf %56 : vector<8x128xf32>
    %58 = math.exp %57 : vector<8x128xf32>
    %cst_19 = arith.constant 1.000000e+00 : f32
    %59 = vector.broadcast %cst_19 : f32 to vector<8x128xf32>
    %60 = arith.addf %59, %58 : vector<8x128xf32>
    %61 = arith.divf %59, %60 : vector<8x128xf32>
    %62 = vector.extract_strided_slice %47 {offsets = [0, 128], sizes = [8, 128], strides = [1, 1]} : vector<8x384xf32> to vector<8x128xf32>
    %63 = vector.extract_strided_slice %53 {offsets = [0, 128], sizes = [8, 128], strides = [1, 1]} : vector<8x384xf32> to vector<8x128xf32>
    %64 = arith.addf %62, %63 : vector<8x128xf32>
    %65 = arith.negf %64 : vector<8x128xf32>
    %66 = math.exp %65 : vector<8x128xf32>
    %cst_20 = arith.constant 1.000000e+00 : f32
    %67 = vector.broadcast %cst_20 : f32 to vector<8x128xf32>
    %68 = arith.addf %67, %66 : vector<8x128xf32>
    %69 = arith.divf %67, %68 : vector<8x128xf32>
    %70 = vector.extract_strided_slice %47 {offsets = [0, 256], sizes = [8, 128], strides = [1, 1]} : vector<8x384xf32> to vector<8x128xf32>
    %71 = vector.extract_strided_slice %53 {offsets = [0, 256], sizes = [8, 128], strides = [1, 1]} : vector<8x384xf32> to vector<8x128xf32>
    %72 = arith.mulf %61, %71 : vector<8x128xf32>
    %73 = arith.addf %70, %72 : vector<8x128xf32>
    %74 = math.tanh %73 : vector<8x128xf32>
    %cst_21 = arith.constant 1.000000e+00 : f32
    %75 = vector.broadcast %cst_21 : f32 to vector<8x128xf32>
    %76 = arith.subf %75, %69 : vector<8x128xf32>
    %77 = arith.mulf %76, %74 : vector<8x128xf32>
    %78 = arith.mulf %69, %44 : vector<8x128xf32>
    %79 = arith.addf %77, %78 : vector<8x128xf32>
    %80 = arith.subf %79, %44 : vector<8x128xf32>
    %81 = vector.broadcast %50 : vector<8x1xf32> to vector<8x128xf32>
    %82 = arith.mulf %81, %80 : vector<8x128xf32>
    %83 = arith.addf %44, %82 : vector<8x128xf32>
    %c2_i32 = arith.constant 2 : i32
    %84 = arith.index_cast %c2_i32 : i32 to index
    %c0_22 = arith.constant 0 : index
    %c0_23 = arith.constant 0 : index
    %85 = vector.load %arg2[%84, %c0_22, %c0_23] : memref<8x8x384xf32, #tpu.memory_space<vmem>>, vector<1x8x384xf32>
    %86 = vector.shape_cast %85 : vector<1x8x384xf32> to vector<8x384xf32>
    %87 = arith.index_cast %c2_i32 : i32 to index
    %c0_24 = arith.constant 0 : index
    %c0_25 = arith.constant 0 : index
    %88 = vector.load %arg3[%87, %c0_24, %c0_25] : memref<8x8x1xf32, #tpu.memory_space<vmem>>, vector<1x8x1xf32>
    %89 = vector.shape_cast %88 : vector<1x8x1xf32> to vector<8x1xf32>
    %cst_26 = arith.constant dense<0.000000e+00> : vector<8x384xf32>
    %90 = tpu.matmul %83, %3, %cst_26 {dimension_numbers = #tpu.dot_dimension_numbers<[1], [0], [0], [1], [0, 0, 1, 1], [], []>} : vector<8x128xf32>, vector<128x384xf32>, vector<8x384xf32> -> vector<8x384xf32>
    %91 = vector.broadcast %4 : vector<1x384xf32> to vector<8x384xf32>
    %92 = arith.addf %90, %91 : vector<8x384xf32>
    %93 = vector.extract_strided_slice %86 {offsets = [0, 0], sizes = [8, 128], strides = [1, 1]} : vector<8x384xf32> to vector<8x128xf32>
    %94 = vector.extract_strided_slice %92 {offsets = [0, 0], sizes = [8, 128], strides = [1, 1]} : vector<8x384xf32> to vector<8x128xf32>
    %95 = arith.addf %93, %94 : vector<8x128xf32>
    %96 = arith.negf %95 : vector<8x128xf32>
    %97 = math.exp %96 : vector<8x128xf32>
    %cst_27 = arith.constant 1.000000e+00 : f32
    %98 = vector.broadcast %cst_27 : f32 to vector<8x128xf32>
    %99 = arith.addf %98, %97 : vector<8x128xf32>
    %100 = arith.divf %98, %99 : vector<8x128xf32>
    %101 = vector.extract_strided_slice %86 {offsets = [0, 128], sizes = [8, 128], strides = [1, 1]} : vector<8x384xf32> to vector<8x128xf32>
    %102 = vector.extract_strided_slice %92 {offsets = [0, 128], sizes = [8, 128], strides = [1, 1]} : vector<8x384xf32> to vector<8x128xf32>
    %103 = arith.addf %101, %102 : vector<8x128xf32>
    %104 = arith.negf %103 : vector<8x128xf32>
    %105 = math.exp %104 : vector<8x128xf32>
    %cst_28 = arith.constant 1.000000e+00 : f32
    %106 = vector.broadcast %cst_28 : f32 to vector<8x128xf32>
    %107 = arith.addf %106, %105 : vector<8x128xf32>
    %108 = arith.divf %106, %107 : vector<8x128xf32>
    %109 = vector.extract_strided_slice %86 {offsets = [0, 256], sizes = [8, 128], strides = [1, 1]} : vector<8x384xf32> to vector<8x128xf32>
    %110 = vector.extract_strided_slice %92 {offsets = [0, 256], sizes = [8, 128], strides = [1, 1]} : vector<8x384xf32> to vector<8x128xf32>
    %111 = arith.mulf %100, %110 : vector<8x128xf32>
    %112 = arith.addf %109, %111 : vector<8x128xf32>
    %113 = math.tanh %112 : vector<8x128xf32>
    %cst_29 = arith.constant 1.000000e+00 : f32
    %114 = vector.broadcast %cst_29 : f32 to vector<8x128xf32>
    %115 = arith.subf %114, %108 : vector<8x128xf32>
    %116 = arith.mulf %115, %113 : vector<8x128xf32>
    %117 = arith.mulf %108, %83 : vector<8x128xf32>
    %118 = arith.addf %116, %117 : vector<8x128xf32>
    %119 = arith.subf %118, %83 : vector<8x128xf32>
    %120 = vector.broadcast %89 : vector<8x1xf32> to vector<8x128xf32>
    %121 = arith.mulf %120, %119 : vector<8x128xf32>
    %122 = arith.addf %83, %121 : vector<8x128xf32>
    %c3_i32 = arith.constant 3 : i32
    %123 = arith.index_cast %c3_i32 : i32 to index
    %c0_30 = arith.constant 0 : index
    %c0_31 = arith.constant 0 : index
    %124 = vector.load %arg2[%123, %c0_30, %c0_31] : memref<8x8x384xf32, #tpu.memory_space<vmem>>, vector<1x8x384xf32>
    %125 = vector.shape_cast %124 : vector<1x8x384xf32> to vector<8x384xf32>
    %126 = arith.index_cast %c3_i32 : i32 to index
    %c0_32 = arith.constant 0 : index
    %c0_33 = arith.constant 0 : index
    %127 = vector.load %arg3[%126, %c0_32, %c0_33] : memref<8x8x1xf32, #tpu.memory_space<vmem>>, vector<1x8x1xf32>
    %128 = vector.shape_cast %127 : vector<1x8x1xf32> to vector<8x1xf32>
    %cst_34 = arith.constant dense<0.000000e+00> : vector<8x384xf32>
    %129 = tpu.matmul %122, %3, %cst_34 {dimension_numbers = #tpu.dot_dimension_numbers<[1], [0], [0], [1], [0, 0, 1, 1], [], []>} : vector<8x128xf32>, vector<128x384xf32>, vector<8x384xf32> -> vector<8x384xf32>
    %130 = vector.broadcast %4 : vector<1x384xf32> to vector<8x384xf32>
    %131 = arith.addf %129, %130 : vector<8x384xf32>
    %132 = vector.extract_strided_slice %125 {offsets = [0, 0], sizes = [8, 128], strides = [1, 1]} : vector<8x384xf32> to vector<8x128xf32>
    %133 = vector.extract_strided_slice %131 {offsets = [0, 0], sizes = [8, 128], strides = [1, 1]} : vector<8x384xf32> to vector<8x128xf32>
    %134 = arith.addf %132, %133 : vector<8x128xf32>
    %135 = arith.negf %134 : vector<8x128xf32>
    %136 = math.exp %135 : vector<8x128xf32>
    %cst_35 = arith.constant 1.000000e+00 : f32
    %137 = vector.broadcast %cst_35 : f32 to vector<8x128xf32>
    %138 = arith.addf %137, %136 : vector<8x128xf32>
    %139 = arith.divf %137, %138 : vector<8x128xf32>
    %140 = vector.extract_strided_slice %125 {offsets = [0, 128], sizes = [8, 128], strides = [1, 1]} : vector<8x384xf32> to vector<8x128xf32>
    %141 = vector.extract_strided_slice %131 {offsets = [0, 128], sizes = [8, 128], strides = [1, 1]} : vector<8x384xf32> to vector<8x128xf32>
    %142 = arith.addf %140, %141 : vector<8x128xf32>
    %143 = arith.negf %142 : vector<8x128xf32>
    %144 = math.exp %143 : vector<8x128xf32>
    %cst_36 = arith.constant 1.000000e+00 : f32
    %145 = vector.broadcast %cst_36 : f32 to vector<8x128xf32>
    %146 = arith.addf %145, %144 : vector<8x128xf32>
    %147 = arith.divf %145, %146 : vector<8x128xf32>
    %148 = vector.extract_strided_slice %125 {offsets = [0, 256], sizes = [8, 128], strides = [1, 1]} : vector<8x384xf32> to vector<8x128xf32>
    %149 = vector.extract_strided_slice %131 {offsets = [0, 256], sizes = [8, 128], strides = [1, 1]} : vector<8x384xf32> to vector<8x128xf32>
    %150 = arith.mulf %139, %149 : vector<8x128xf32>
    %151 = arith.addf %148, %150 : vector<8x128xf32>
    %152 = math.tanh %151 : vector<8x128xf32>
    %cst_37 = arith.constant 1.000000e+00 : f32
    %153 = vector.broadcast %cst_37 : f32 to vector<8x128xf32>
    %154 = arith.subf %153, %147 : vector<8x128xf32>
    %155 = arith.mulf %154, %152 : vector<8x128xf32>
    %156 = arith.mulf %147, %122 : vector<8x128xf32>
    %157 = arith.addf %155, %156 : vector<8x128xf32>
    %158 = arith.subf %157, %122 : vector<8x128xf32>
    %159 = vector.broadcast %128 : vector<8x1xf32> to vector<8x128xf32>
    %160 = arith.mulf %159, %158 : vector<8x128xf32>
    %161 = arith.addf %122, %160 : vector<8x128xf32>
    %c4_i32 = arith.constant 4 : i32
    %162 = arith.index_cast %c4_i32 : i32 to index
    %c0_38 = arith.constant 0 : index
    %c0_39 = arith.constant 0 : index
    %163 = vector.load %arg2[%162, %c0_38, %c0_39] : memref<8x8x384xf32, #tpu.memory_space<vmem>>, vector<1x8x384xf32>
    %164 = vector.shape_cast %163 : vector<1x8x384xf32> to vector<8x384xf32>
    %165 = arith.index_cast %c4_i32 : i32 to index
    %c0_40 = arith.constant 0 : index
    %c0_41 = arith.constant 0 : index
    %166 = vector.load %arg3[%165, %c0_40, %c0_41] : memref<8x8x1xf32, #tpu.memory_space<vmem>>, vector<1x8x1xf32>
    %167 = vector.shape_cast %166 : vector<1x8x1xf32> to vector<8x1xf32>
    %cst_42 = arith.constant dense<0.000000e+00> : vector<8x384xf32>
    %168 = tpu.matmul %161, %3, %cst_42 {dimension_numbers = #tpu.dot_dimension_numbers<[1], [0], [0], [1], [0, 0, 1, 1], [], []>} : vector<8x128xf32>, vector<128x384xf32>, vector<8x384xf32> -> vector<8x384xf32>
    %169 = vector.broadcast %4 : vector<1x384xf32> to vector<8x384xf32>
    %170 = arith.addf %168, %169 : vector<8x384xf32>
    %171 = vector.extract_strided_slice %164 {offsets = [0, 0], sizes = [8, 128], strides = [1, 1]} : vector<8x384xf32> to vector<8x128xf32>
    %172 = vector.extract_strided_slice %170 {offsets = [0, 0], sizes = [8, 128], strides = [1, 1]} : vector<8x384xf32> to vector<8x128xf32>
    %173 = arith.addf %171, %172 : vector<8x128xf32>
    %174 = arith.negf %173 : vector<8x128xf32>
    %175 = math.exp %174 : vector<8x128xf32>
    %cst_43 = arith.constant 1.000000e+00 : f32
    %176 = vector.broadcast %cst_43 : f32 to vector<8x128xf32>
    %177 = arith.addf %176, %175 : vector<8x128xf32>
    %178 = arith.divf %176, %177 : vector<8x128xf32>
    %179 = vector.extract_strided_slice %164 {offsets = [0, 128], sizes = [8, 128], strides = [1, 1]} : vector<8x384xf32> to vector<8x128xf32>
    %180 = vector.extract_strided_slice %170 {offsets = [0, 128], sizes = [8, 128], strides = [1, 1]} : vector<8x384xf32> to vector<8x128xf32>
    %181 = arith.addf %179, %180 : vector<8x128xf32>
    %182 = arith.negf %181 : vector<8x128xf32>
    %183 = math.exp %182 : vector<8x128xf32>
    %cst_44 = arith.constant 1.000000e+00 : f32
    %184 = vector.broadcast %cst_44 : f32 to vector<8x128xf32>
    %185 = arith.addf %184, %183 : vector<8x128xf32>
    %186 = arith.divf %184, %185 : vector<8x128xf32>
    %187 = vector.extract_strided_slice %164 {offsets = [0, 256], sizes = [8, 128], strides = [1, 1]} : vector<8x384xf32> to vector<8x128xf32>
    %188 = vector.extract_strided_slice %170 {offsets = [0, 256], sizes = [8, 128], strides = [1, 1]} : vector<8x384xf32> to vector<8x128xf32>
    %189 = arith.mulf %178, %188 : vector<8x128xf32>
    %190 = arith.addf %187, %189 : vector<8x128xf32>
    %191 = math.tanh %190 : vector<8x128xf32>
    %cst_45 = arith.constant 1.000000e+00 : f32
    %192 = vector.broadcast %cst_45 : f32 to vector<8x128xf32>
    %193 = arith.subf %192, %186 : vector<8x128xf32>
    %194 = arith.mulf %193, %191 : vector<8x128xf32>
    %195 = arith.mulf %186, %161 : vector<8x128xf32>
    %196 = arith.addf %194, %195 : vector<8x128xf32>
    %197 = arith.subf %196, %161 : vector<8x128xf32>
    %198 = vector.broadcast %167 : vector<8x1xf32> to vector<8x128xf32>
    %199 = arith.mulf %198, %197 : vector<8x128xf32>
    %200 = arith.addf %161, %199 : vector<8x128xf32>
    %c5_i32 = arith.constant 5 : i32
    %201 = arith.index_cast %c5_i32 : i32 to index
    %c0_46 = arith.constant 0 : index
    %c0_47 = arith.constant 0 : index
    %202 = vector.load %arg2[%201, %c0_46, %c0_47] : memref<8x8x384xf32, #tpu.memory_space<vmem>>, vector<1x8x384xf32>
    %203 = vector.shape_cast %202 : vector<1x8x384xf32> to vector<8x384xf32>
    %204 = arith.index_cast %c5_i32 : i32 to index
    %c0_48 = arith.constant 0 : index
    %c0_49 = arith.constant 0 : index
    %205 = vector.load %arg3[%204, %c0_48, %c0_49] : memref<8x8x1xf32, #tpu.memory_space<vmem>>, vector<1x8x1xf32>
    %206 = vector.shape_cast %205 : vector<1x8x1xf32> to vector<8x1xf32>
    %cst_50 = arith.constant dense<0.000000e+00> : vector<8x384xf32>
    %207 = tpu.matmul %200, %3, %cst_50 {dimension_numbers = #tpu.dot_dimension_numbers<[1], [0], [0], [1], [0, 0, 1, 1], [], []>} : vector<8x128xf32>, vector<128x384xf32>, vector<8x384xf32> -> vector<8x384xf32>
    %208 = vector.broadcast %4 : vector<1x384xf32> to vector<8x384xf32>
    %209 = arith.addf %207, %208 : vector<8x384xf32>
    %210 = vector.extract_strided_slice %203 {offsets = [0, 0], sizes = [8, 128], strides = [1, 1]} : vector<8x384xf32> to vector<8x128xf32>
    %211 = vector.extract_strided_slice %209 {offsets = [0, 0], sizes = [8, 128], strides = [1, 1]} : vector<8x384xf32> to vector<8x128xf32>
    %212 = arith.addf %210, %211 : vector<8x128xf32>
    %213 = arith.negf %212 : vector<8x128xf32>
    %214 = math.exp %213 : vector<8x128xf32>
    %cst_51 = arith.constant 1.000000e+00 : f32
    %215 = vector.broadcast %cst_51 : f32 to vector<8x128xf32>
    %216 = arith.addf %215, %214 : vector<8x128xf32>
    %217 = arith.divf %215, %216 : vector<8x128xf32>
    %218 = vector.extract_strided_slice %203 {offsets = [0, 128], sizes = [8, 128], strides = [1, 1]} : vector<8x384xf32> to vector<8x128xf32>
    %219 = vector.extract_strided_slice %209 {offsets = [0, 128], sizes = [8, 128], strides = [1, 1]} : vector<8x384xf32> to vector<8x128xf32>
    %220 = arith.addf %218, %219 : vector<8x128xf32>
    %221 = arith.negf %220 : vector<8x128xf32>
    %222 = math.exp %221 : vector<8x128xf32>
    %cst_52 = arith.constant 1.000000e+00 : f32
    %223 = vector.broadcast %cst_52 : f32 to vector<8x128xf32>
    %224 = arith.addf %223, %222 : vector<8x128xf32>
    %225 = arith.divf %223, %224 : vector<8x128xf32>
    %226 = vector.extract_strided_slice %203 {offsets = [0, 256], sizes = [8, 128], strides = [1, 1]} : vector<8x384xf32> to vector<8x128xf32>
    %227 = vector.extract_strided_slice %209 {offsets = [0, 256], sizes = [8, 128], strides = [1, 1]} : vector<8x384xf32> to vector<8x128xf32>
    %228 = arith.mulf %217, %227 : vector<8x128xf32>
    %229 = arith.addf %226, %228 : vector<8x128xf32>
    %230 = math.tanh %229 : vector<8x128xf32>
    %cst_53 = arith.constant 1.000000e+00 : f32
    %231 = vector.broadcast %cst_53 : f32 to vector<8x128xf32>
    %232 = arith.subf %231, %225 : vector<8x128xf32>
    %233 = arith.mulf %232, %230 : vector<8x128xf32>
    %234 = arith.mulf %225, %200 : vector<8x128xf32>
    %235 = arith.addf %233, %234 : vector<8x128xf32>
    %236 = arith.subf %235, %200 : vector<8x128xf32>
    %237 = vector.broadcast %206 : vector<8x1xf32> to vector<8x128xf32>
    %238 = arith.mulf %237, %236 : vector<8x128xf32>
    %239 = arith.addf %200, %238 : vector<8x128xf32>
    %c6_i32 = arith.constant 6 : i32
    %240 = arith.index_cast %c6_i32 : i32 to index
    %c0_54 = arith.constant 0 : index
    %c0_55 = arith.constant 0 : index
    %241 = vector.load %arg2[%240, %c0_54, %c0_55] : memref<8x8x384xf32, #tpu.memory_space<vmem>>, vector<1x8x384xf32>
    %242 = vector.shape_cast %241 : vector<1x8x384xf32> to vector<8x384xf32>
    %243 = arith.index_cast %c6_i32 : i32 to index
    %c0_56 = arith.constant 0 : index
    %c0_57 = arith.constant 0 : index
    %244 = vector.load %arg3[%243, %c0_56, %c0_57] : memref<8x8x1xf32, #tpu.memory_space<vmem>>, vector<1x8x1xf32>
    %245 = vector.shape_cast %244 : vector<1x8x1xf32> to vector<8x1xf32>
    %cst_58 = arith.constant dense<0.000000e+00> : vector<8x384xf32>
    %246 = tpu.matmul %239, %3, %cst_58 {dimension_numbers = #tpu.dot_dimension_numbers<[1], [0], [0], [1], [0, 0, 1, 1], [], []>} : vector<8x128xf32>, vector<128x384xf32>, vector<8x384xf32> -> vector<8x384xf32>
    %247 = vector.broadcast %4 : vector<1x384xf32> to vector<8x384xf32>
    %248 = arith.addf %246, %247 : vector<8x384xf32>
    %249 = vector.extract_strided_slice %242 {offsets = [0, 0], sizes = [8, 128], strides = [1, 1]} : vector<8x384xf32> to vector<8x128xf32>
    %250 = vector.extract_strided_slice %248 {offsets = [0, 0], sizes = [8, 128], strides = [1, 1]} : vector<8x384xf32> to vector<8x128xf32>
    %251 = arith.addf %249, %250 : vector<8x128xf32>
    %252 = arith.negf %251 : vector<8x128xf32>
    %253 = math.exp %252 : vector<8x128xf32>
    %cst_59 = arith.constant 1.000000e+00 : f32
    %254 = vector.broadcast %cst_59 : f32 to vector<8x128xf32>
    %255 = arith.addf %254, %253 : vector<8x128xf32>
    %256 = arith.divf %254, %255 : vector<8x128xf32>
    %257 = vector.extract_strided_slice %242 {offsets = [0, 128], sizes = [8, 128], strides = [1, 1]} : vector<8x384xf32> to vector<8x128xf32>
    %258 = vector.extract_strided_slice %248 {offsets = [0, 128], sizes = [8, 128], strides = [1, 1]} : vector<8x384xf32> to vector<8x128xf32>
    %259 = arith.addf %257, %258 : vector<8x128xf32>
    %260 = arith.negf %259 : vector<8x128xf32>
    %261 = math.exp %260 : vector<8x128xf32>
    %cst_60 = arith.constant 1.000000e+00 : f32
    %262 = vector.broadcast %cst_60 : f32 to vector<8x128xf32>
    %263 = arith.addf %262, %261 : vector<8x128xf32>
    %264 = arith.divf %262, %263 : vector<8x128xf32>
    %265 = vector.extract_strided_slice %242 {offsets = [0, 256], sizes = [8, 128], strides = [1, 1]} : vector<8x384xf32> to vector<8x128xf32>
    %266 = vector.extract_strided_slice %248 {offsets = [0, 256], sizes = [8, 128], strides = [1, 1]} : vector<8x384xf32> to vector<8x128xf32>
    %267 = arith.mulf %256, %266 : vector<8x128xf32>
    %268 = arith.addf %265, %267 : vector<8x128xf32>
    %269 = math.tanh %268 : vector<8x128xf32>
    %cst_61 = arith.constant 1.000000e+00 : f32
    %270 = vector.broadcast %cst_61 : f32 to vector<8x128xf32>
    %271 = arith.subf %270, %264 : vector<8x128xf32>
    %272 = arith.mulf %271, %269 : vector<8x128xf32>
    %273 = arith.mulf %264, %239 : vector<8x128xf32>
    %274 = arith.addf %272, %273 : vector<8x128xf32>
    %275 = arith.subf %274, %239 : vector<8x128xf32>
    %276 = vector.broadcast %245 : vector<8x1xf32> to vector<8x128xf32>
    %277 = arith.mulf %276, %275 : vector<8x128xf32>
    %278 = arith.addf %239, %277 : vector<8x128xf32>
    %c7_i32 = arith.constant 7 : i32
    %279 = arith.index_cast %c7_i32 : i32 to index
    %c0_62 = arith.constant 0 : index
    %c0_63 = arith.constant 0 : index
    %280 = vector.load %arg2[%279, %c0_62, %c0_63] : memref<8x8x384xf32, #tpu.memory_space<vmem>>, vector<1x8x384xf32>
    %281 = vector.shape_cast %280 : vector<1x8x384xf32> to vector<8x384xf32>
    %282 = arith.index_cast %c7_i32 : i32 to index
    %c0_64 = arith.constant 0 : index
    %c0_65 = arith.constant 0 : index
    %283 = vector.load %arg3[%282, %c0_64, %c0_65] : memref<8x8x1xf32, #tpu.memory_space<vmem>>, vector<1x8x1xf32>
    %284 = vector.shape_cast %283 : vector<1x8x1xf32> to vector<8x1xf32>
    %cst_66 = arith.constant dense<0.000000e+00> : vector<8x384xf32>
    %285 = tpu.matmul %278, %3, %cst_66 {dimension_numbers = #tpu.dot_dimension_numbers<[1], [0], [0], [1], [0, 0, 1, 1], [], []>} : vector<8x128xf32>, vector<128x384xf32>, vector<8x384xf32> -> vector<8x384xf32>
    %286 = vector.broadcast %4 : vector<1x384xf32> to vector<8x384xf32>
    %287 = arith.addf %285, %286 : vector<8x384xf32>
    %288 = vector.extract_strided_slice %281 {offsets = [0, 0], sizes = [8, 128], strides = [1, 1]} : vector<8x384xf32> to vector<8x128xf32>
    %289 = vector.extract_strided_slice %287 {offsets = [0, 0], sizes = [8, 128], strides = [1, 1]} : vector<8x384xf32> to vector<8x128xf32>
    %290 = arith.addf %288, %289 : vector<8x128xf32>
    %291 = arith.negf %290 : vector<8x128xf32>
    %292 = math.exp %291 : vector<8x128xf32>
    %cst_67 = arith.constant 1.000000e+00 : f32
    %293 = vector.broadcast %cst_67 : f32 to vector<8x128xf32>
    %294 = arith.addf %293, %292 : vector<8x128xf32>
    %295 = arith.divf %293, %294 : vector<8x128xf32>
    %296 = vector.extract_strided_slice %281 {offsets = [0, 128], sizes = [8, 128], strides = [1, 1]} : vector<8x384xf32> to vector<8x128xf32>
    %297 = vector.extract_strided_slice %287 {offsets = [0, 128], sizes = [8, 128], strides = [1, 1]} : vector<8x384xf32> to vector<8x128xf32>
    %298 = arith.addf %296, %297 : vector<8x128xf32>
    %299 = arith.negf %298 : vector<8x128xf32>
    %300 = math.exp %299 : vector<8x128xf32>
    %cst_68 = arith.constant 1.000000e+00 : f32
    %301 = vector.broadcast %cst_68 : f32 to vector<8x128xf32>
    %302 = arith.addf %301, %300 : vector<8x128xf32>
    %303 = arith.divf %301, %302 : vector<8x128xf32>
    %304 = vector.extract_strided_slice %281 {offsets = [0, 256], sizes = [8, 128], strides = [1, 1]} : vector<8x384xf32> to vector<8x128xf32>
    %305 = vector.extract_strided_slice %287 {offsets = [0, 256], sizes = [8, 128], strides = [1, 1]} : vector<8x384xf32> to vector<8x128xf32>
    %306 = arith.mulf %295, %305 : vector<8x128xf32>
    %307 = arith.addf %304, %306 : vector<8x128xf32>
    %308 = math.tanh %307 : vector<8x128xf32>
    %cst_69 = arith.constant 1.000000e+00 : f32
    %309 = vector.broadcast %cst_69 : f32 to vector<8x128xf32>
    %310 = arith.subf %309, %303 : vector<8x128xf32>
    %311 = arith.mulf %310, %308 : vector<8x128xf32>
    %312 = arith.mulf %303, %278 : vector<8x128xf32>
    %313 = arith.addf %311, %312 : vector<8x128xf32>
    %314 = arith.subf %313, %278 : vector<8x128xf32>
    %315 = vector.broadcast %284 : vector<8x1xf32> to vector<8x128xf32>
    %316 = arith.mulf %315, %314 : vector<8x128xf32>
    %317 = arith.addf %278, %316 : vector<8x128xf32>
    %c8_i32 = arith.constant 8 : i32
    %c0_70 = arith.constant 0 : index
    %c0_71 = arith.constant 0 : index
    %318 = vector.load %arg6[%c0_70, %c0_71] : memref<8x128xf32, #tpu.memory_space<vmem>>, vector<8x128xf32>
    tpu.vector_store %arg6[%c0_70, %c0_71], %317 {strides = array<i32>} : memref<8x128xf32, #tpu.memory_space<vmem>>, vector<8x128xf32>,
    return
  }
  func.func @transform_0(%arg0: i32, %arg1: i32) -> (i32, i32, i32) {
    %c0_i32 = arith.constant 0 : i32
    %c0_i32_0 = arith.constant 0 : i32
    return %arg1, %arg0, %c0_i32 : i32, i32, i32
  }
  func.func @transform_1(%arg0: i32, %arg1: i32) -> (i32, i32, i32) {
    %c0_i32 = arith.constant 0 : i32
    %c0_i32_0 = arith.constant 0 : i32
    return %arg1, %arg0, %c0_i32 : i32, i32, i32
  }
  func.func @transform_2(%arg0: i32, %arg1: i32) -> (i32, i32) {
    %c0_i32 = arith.constant 0 : i32
    %c0_i32_0 = arith.constant 0 : i32
    %c0_i32_1 = arith.constant 0 : i32
    return %c0_i32, %c0_i32_0 : i32, i32
  }
  func.func @transform_3(%arg0: i32, %arg1: i32) -> (i32, i32) {
    %c0_i32 = arith.constant 0 : i32
    %c0_i32_0 = arith.constant 0 : i32
    %c0_i32_1 = arith.constant 0 : i32
    return %c0_i32, %c0_i32_0 : i32, i32
  }
  func.func @transform_4(%arg0: i32, %arg1: i32) -> (i32, i32) {
    %c0_i32 = arith.constant 0 : i32
    %c0_i32_0 = arith.constant 0 : i32
    return %arg0, %c0_i32 : i32, i32
  }
}

</mosaic_0001>

<bundles_post_ra>
// kernel: tpu_custom_call.1
= control target key start
LH: loop header
LB: loop body
LE: loop exit
PB: predicated region body
PF: predicated region fallthrough
CT: control target
= control target key end

     0   :  { %9 = vsyncpa [#allocation3], 0  ;;  %s2033_s0 = inlined_call_operand.hbm [shape: f32[8,8,384], index: 0, kind: input, shape index: {}]   ;;  %s2034_s1 = inlined_call_operand.vmem [shape: f32[8,8,1], index: 1, kind: input, shape index: {}]   ;;  %s2035_s2 = inlined_call_operand.hbm [shape: f32[128,384], index: 2, kind: input, shape index: {}]   ;;  %s2036_s3 = inlined_call_operand.vmem [shape: f32[1,384], index: 3, kind: input, shape index: {}]   ;;  %s2037_s4 = inlined_call_operand.hbm [shape: f32[8,128], index: 4, kind: output, shape index: {}]  }
   0x1   :  { %10 = vsyncpa [#allocation6], 0 }
   0x2   :  { %11 = vsyncpa [#allocation4], 0  ;;  %s16_s17 = sshll.u32 %s2033_s0, 4  ;;  %s1336_s18 = smov [#allocation2]   ;;  %s17_s17 = int_to_ptr.hbm [resolvable:$true] %s16_s17 }
   0x3   :  { %s18_s19 = sshll.u32 %s1336_s18, 4  ;;  %s31_s22 = sshll.u32 %s2035_s2, 4  ;;  %s19_s19 = int_to_ptr.vmem [resolvable:$true] %s18_s19  ;;  %s32_s22 = int_to_ptr.hbm [resolvable:$true] %s31_s22 }
   0x4   :  { %s1337_s23 = smov 384   ;;  %s1338_s24 = smov 24  }
   0x5   :  { %24 = dma.hbm_to_vmem [thread:$0]  %s17_s17, 3072, %s19_s19, [#allocation3], %s1337_s23, %s1337_s23, %s1338_s24  }
   0x6   :  { %s1339_s25 = smov [#allocation5]  }
   0x7   :  { %s33_s26 = sshll.u32 %s1339_s25, 4  ;;  %s34_s26 = int_to_ptr.vmem [resolvable:$true] %s33_s26 }
   0x8   :  { %39 = dma.hbm_to_vmem [thread:$0]  %s32_s22, 6144, %s34_s26, [#allocation6], %s1337_s23, %s1337_s23, %s1338_s24  }
   0x9   :  { %1330 = dma.done.wait [#allocation3], 3072  }
   0xa   :  { %1331 = vsyncadd [#allocation3], 4294964224 }
   0xb   :  { %1332 = dma.done.wait [#allocation6], 6144  }
   0xc   :  { %1333 = vsyncadd [#allocation6], 4294961152  ;;  %v1374_v0 = vld [vmem:[#allocation5 + $0x168] sm:$0xff]  ;;  %v1376_v1 = vld [vmem:[#allocation5 + $0x170] sm:$0xff]  ;;  %v1340_v19 = vmov 0   ;;  %v1341_v48 = vmov 0.0  }
   0xd   :  { %v1378_v2 = vld [vmem:[#allocation5 + $0x150] sm:$0xff]  ;;  %116 = vmatpush.msra.mxu0 %v1374_v0  ;;  %136 = vmatpush.msra.mxu1 %v1376_v1  ;;  %v1382_v3 = vld [vmem:[#allocation5 + $0x158] sm:$0xff]  ;;  %v1386_v5 = vld [vmem:[#allocation5 + $0x140] sm:$0xff]  ;;  %s1086_s19 = sshll.u32 %s2037_s4, 4  ;;  %s1087_s19 = int_to_ptr.hbm [resolvable:$true] %s1086_s19 }
   0xe   :  { %v1384_v4 = vld [vmem:[#allocation5 + $0x138] sm:$0xff]  ;;  %237 = vmatpush.msra.mxu3 %v1374_v0  ;;  %v1391_v6 = vld [vmem:[#allocation5 + $0x120] sm:$0xff]  ;;  %v1393_v7 = vld [vmem:[#allocation5 + $0x128] sm:$0xff]  ;;  %1127 = vset.pattern.permute.xlu0 %v1340_v19 }
   0xf   :  { %117 = vmatpush.msra.mxu0 %v1378_v2  ;;  %137 = vmatpush.msra.mxu1 %v1382_v3  ;;  %v1398_v8 = vld [vmem:[#allocation5 + $0x108] sm:$0xff]  ;;  %v1400_v9 = vld [vmem:[#allocation5 + $0x110] sm:$0xff]  ;;  %v1407_v11 = vld [vmem:[#allocation5 + $0xf8] sm:$0xff] }
  0x10   :  { %238 = vmatpush.msra.mxu3 %v1378_v2  ;;  %v1405_v10 = vld [vmem:[#allocation5 + $0xf0] sm:$0xff]  ;;  %v1409_v12 = vld [vmem:[#allocation5 + $0x178] sm:$0xff]  ;;  %v1414_v13 = vld [vmem:[#allocation5 + $0x160] sm:$0xff]  ;;  %1128 = vset.pattern.permute.xlu1 %v1340_v19 }
  0x11   :  { %118 = vmatpush.msra.mxu0 %v1384_v4  ;;  %138 = vmatpush.msra.mxu1 %v1386_v5  ;;  %v1416_v14 = vld [vmem:[#allocation5 + $0xd8] sm:$0xff]  ;;  %v1418_v15 = vld [vmem:[#allocation5 + $0xe0] sm:$0xff]  ;;  %v1424_v16 = vld [vmem:[#allocation5 + $0x148] sm:$0xff] }
  0x12   :  { %239 = vmatpush.msra.mxu3 %v1384_v4  ;;  %156 = vmatpush.msra.mxu2 %v1409_v12  ;;  %v1426_v17 = vld [vmem:[#allocation5 + $0xc0] sm:$0xff]  ;;  %v1428_v18 = vld [vmem:[#allocation5 + $0xc8] sm:$0xff]  ;;  %v1434_v20 = vld [vmem:[#allocation5 + $0x130] sm:$0xff] }
  0x13   :  { %119 = vmatpush.msra.mxu0 %v1391_v6  ;;  %139 = vmatpush.msra.mxu1 %v1393_v7  ;;  %v1436_v21 = vld [vmem:[#allocation5 + $0xa8] sm:$0xff]  ;;  %v1438_v22 = vld [vmem:[#allocation5 + $0xb0] sm:$0xff]  ;;  %v1444_v23 = vld [vmem:[#allocation5 + $0x118] sm:$0xff] }
  0x14   :  { %240 = vmatpush.msra.mxu3 %v1391_v6  ;;  %157 = vmatpush.msra.mxu2 %v1414_v13  ;;  %v1446_v24 = vld [vmem:[#allocation5 + $0x90] sm:$0xff]  ;;  %v1448_v25 = vld [vmem:[#allocation5 + $0x98] sm:$0xff]  ;;  %v108_v26 = vld [vmem:[%s2034_s1] sm:$0xff] }
  0x15   :  { %120 = vmatpush.msra.mxu0 %v1398_v8  ;;  %140 = vmatpush.msra.mxu1 %v1400_v9  ;;  %v1457_v27 = vld [vmem:[#allocation5 + $0x100] sm:$0xff]  ;;  %v1459_v28 = vld [vmem:[#allocation5 + $0x78] sm:$0xff]  ;;  %v1466_v30 = vld [vmem:[#allocation5 + $0xe8] sm:$0xff] }
  0x16   :  { %241 = vmatpush.msra.mxu3 %v1398_v8  ;;  %158 = vmatpush.msra.mxu2 %v1424_v16  ;;  %v1461_v29 = vld [vmem:[#allocation5 + $0x80] sm:$0xff]  ;;  %v1470_v32 = vld [vmem:[#allocation5 + $0x68] sm:$0xff]  ;;  %v1476_v33 = vld [vmem:[#allocation5 + $0xd0] sm:$0xff] }
  0x17   :  { %121 = vmatpush.msra.mxu0 %v1405_v10  ;;  %141 = vmatpush.msra.mxu1 %v1407_v11  ;;  %v1468_v31 = vld [vmem:[#allocation5 + $0x60] sm:$0xff]  ;;  %v1478_v34 = vld [vmem:[#allocation5 + $0x48] sm:$0xff]  ;;  %v1480_v35 = vld [vmem:[#allocation5 + $0x50] sm:$0xff] }
  0x18   :  { %242 = vmatpush.msra.mxu3 %v1405_v10  ;;  %159 = vmatpush.msra.mxu2 %v1434_v20  ;;  %v1486_v36 = vld [vmem:[#allocation5 + $0xb8] sm:$0xff]  ;;  %v1099_v37 = vld [vmem:[%s2034_s1 + $0x8] sm:$0xff]  ;;  %v1491_v38 = vld [vmem:[#allocation5 + $0x30] sm:$0xff] }
  0x19   :  { %122 = vmatpush.msra.mxu0 %v1416_v14  ;;  %142 = vmatpush.msra.mxu1 %v1418_v15  ;;  %v1493_v39 = vld [vmem:[#allocation5 + $0x38] sm:$0xff]  ;;  %v1499_v40 = vld [vmem:[#allocation5 + $0xa0] sm:$0xff]  ;;  %v1508_v43 = vld [vmem:[#allocation5 + $0x88] sm:$0xff] }
  0x1a   :  { %243 = vmatpush.msra.mxu3 %v1416_v14  ;;  %160 = vmatpush.msra.mxu2 %v1444_v23  ;;  %2056 = vst [vmem:[#allocation11_spill] sm:$0xff] %v1493_v39  ;;  %v1501_v41 = vld [vmem:[#allocation5 + $0x18] sm:$0xff]  ;;  %v1503_v42 = vld [vmem:[#allocation5 + $0x20] sm:$0xff]  ;;  %v1512_v45 = vld [vmem:[#allocation5 + $0x8] sm:$0xff] }
  0x1b   :  { %123 = vmatpush.msra.mxu0 %v1426_v17  ;;  %143 = vmatpush.msra.mxu1 %v1428_v18  ;;  %2057 = vst [vmem:[#allocation12_spill] sm:$0xff] %v1501_v41  ;;  %v1510_v44 = vld [vmem:[#allocation5] sm:$0xff]  ;;  %v1519_v46 = vld [vmem:[#allocation5 + $0x70] sm:$0xff]  ;;  %v1527_v49 = vld [vmem:[#allocation5 + $0x58] sm:$0xff] }
  0x1c   :  { %226 = vperm.xlu0 %1127, %v108_v26   ;;  %161 = vmatpush.msra.mxu2 %v1457_v27  ;;  %2058 = vst [vmem:[#allocation13_spill] sm:$0xff] %v1503_v42  ;;  %v1114_v47 = vld [vmem:[%s2034_s1 + $0x30] sm:$0xff]  ;;  %v1531_v50 = vld [vmem:[#allocation5 + $0x40] sm:$0xff]  ;;  %v1536_v51 = vld [vmem:[#allocation5 + $0x28] sm:$0xff] }
  0x1d   :  { %124 = vmatpush.msra.mxu0 %v1436_v21  ;;  %144 = vmatpush.msra.mxu1 %v1438_v22  ;;  %2059 = vst [vmem:[#allocation14_spill] sm:$0xff] %v1510_v44  ;;  %v1542_v52 = vld [vmem:[#allocation5 + $0x10] sm:$0xff]  ;;  %v103_v53 = vld [vmem:[%s2036_s3] sm:$0x7]  ;;  %v106_v58 = vld [vmem:[#allocation2 + $0x8] sm:$0xff] }
  0x1e   :  { %244 = vmatpush.msra.mxu3 %v1426_v17  ;;  %162 = vmatpush.msra.mxu2 %v1466_v30  ;;  %2060 = vst [vmem:[#allocation15_spill] sm:$0xff] %v1512_v45  ;;  %v1661_v54 = vperm.slane %v103_v53, 0  ;;  %v1663_v55 = vperm.slane %v103_v53, 1  ;;  %v105_v56 = vld [vmem:[#allocation2] sm:$0xff] }
  0x1f   :  { %125 = vmatpush.msra.mxu0 %v1446_v24  ;;  %145 = vmatpush.msra.mxu1 %v1448_v25  ;;  %2061 = vst [vmem:[#allocation16_spill] sm:$0xff] %v1536_v51 }
  0x20   :  { %245 = vmatpush.msra.mxu3 %v1436_v21  ;;  %163 = vmatpush.msra.mxu2 %v1476_v33  ;;  %2062 = vst [vmem:[#allocation17_spill] sm:$0xff] %v1542_v52 }
  0x21   :  { %126 = vmatpush.msra.mxu0 %v1459_v28  ;;  %146 = vmatpush.msra.mxu1 %v1461_v29  ;;  %2063 = vst [vmem:[#allocation18_spill] sm:$0xff] %v1661_v54 }
  0x22   :  { %246 = vmatpush.msra.mxu3 %v1446_v24  ;;  %164 = vmatpush.msra.mxu2 %v1486_v36  ;;  %2064 = vst [vmem:[#allocation19_spill] sm:$0xff] %v1663_v55 }
  0x23   :  { %127 = vmatpush.msra.mxu0 %v1468_v31  ;;  %147 = vmatpush.msra.mxu1 %v1470_v32 }
  0x24   :  { %347 = vperm.xlu0 %1127, %v1099_v37   ;;  %165 = vmatpush.msra.mxu2 %v1499_v40 }
  0x25   :  { %128 = vmatpush.msra.mxu0 %v1478_v34  ;;  %148 = vmatpush.msra.mxu1 %v1480_v35 }
  0x26   :  { %247 = vmatpush.msra.mxu3 %v1459_v28  ;;  %166 = vmatpush.msra.mxu2 %v1508_v43 }
  0x27   :  { %129 = vmatpush.msra.mxu0 %v1491_v38  ;;  %149 = vmatpush.msra.mxu1 %v1493_v39 }
  0x28   :  { %248 = vmatpush.msra.mxu3 %v1468_v31  ;;  %167 = vmatpush.msra.mxu2 %v1519_v46 }
  0x29   :  { %130 = vmatpush.msra.mxu0 %v1501_v41  ;;  %150 = vmatpush.msra.mxu1 %v1503_v42 }
  0x2a   :  { %168 = vmatpush.msra.mxu2 %v1527_v49  ;;  %249 = vmatpush.msra.mxu3 %v1478_v34 }
  0x2b   :  { %131 = vmatpush.msra.mxu0 %v1510_v44  ;;  %151 = vmatpush.msra.mxu1 %v1512_v45 }
  0x2c   :  { %132 = vmatmul.f32.vlgmr.msra.gmra.mxu0 %v1341_v48  ;;  %152 = vmatmul.f32.vlgmr.msra.gmra.mxu1 %v1341_v48 }
  0x2d   :  { %257 = vmatpush.msrb.mxu0 %v1376_v1  ;;  %952 = vperm.xlu0 %1127, %v1114_v47  }
  0x2e   :  { %277 = vmatpush.msrb.mxu1 %v1409_v12  ;;  %169 = vmatpush.msra.mxu2 %v1531_v50 }
  0x2f   :  { %258 = vmatpush.msrb.mxu0 %v1382_v3  ;;  %250 = vmatpush.msra.mxu3 %v1491_v38 }
  0x30   :  { %278 = vmatpush.msrb.mxu1 %v1414_v13  ;;  %170 = vmatpush.msra.mxu2 %v1536_v51 }
  0x31   :  { %259 = vmatpush.msrb.mxu0 %v1386_v5  ;;  %251 = vmatpush.msra.mxu3 %v1501_v41 }
  0x32   :  { %279 = vmatpush.msrb.mxu1 %v1424_v16  ;;  %171 = vmatpush.msra.mxu2 %v1542_v52 }
  0x33   :  { %260 = vmatpush.msrb.mxu0 %v1393_v7  ;;  %172 = vmatmul.f32.vlgmr.msra.gmra.mxu2 %v1341_v48 }
  0x34   :  { %280 = vmatpush.msrb.mxu1 %v1434_v20  ;;  %252 = vmatpush.msra.mxu3 %v1510_v44 }
  0x35   :  { %261 = vmatpush.msrb.mxu0 %v1400_v9  ;;  %358 = vmatpush.msrb.mxu2 %v1374_v0 }
  0x36   :  { %281 = vmatpush.msrb.mxu1 %v1444_v23  ;;  %378 = vmatpush.msrb.mxu3 %v1376_v1 }
  0x37   :  { %262 = vmatpush.msrb.mxu0 %v1407_v11  ;;  %359 = vmatpush.msrb.mxu2 %v1378_v2 }
  0x38   :  { %282 = vmatpush.msrb.mxu1 %v1457_v27  ;;  %379 = vmatpush.msrb.mxu3 %v1382_v3 }
  0x39   :  { %263 = vmatpush.msrb.mxu0 %v1418_v15  ;;  %360 = vmatpush.msrb.mxu2 %v1384_v4 }
  0x3a   :  { %283 = vmatpush.msrb.mxu1 %v1466_v30  ;;  %380 = vmatpush.msrb.mxu3 %v1386_v5 }
  0x3b   :  { %264 = vmatpush.msrb.mxu0 %v1428_v18  ;;  %361 = vmatpush.msrb.mxu2 %v1391_v6 }
  0x3c   :  { %284 = vmatpush.msrb.mxu1 %v1476_v33  ;;  %381 = vmatpush.msrb.mxu3 %v1393_v7 }
  0x3d   :  { %265 = vmatpush.msrb.mxu0 %v1438_v22  ;;  %362 = vmatpush.msrb.mxu2 %v1398_v8 }
  0x3e   :  { %285 = vmatpush.msrb.mxu1 %v1486_v36  ;;  %382 = vmatpush.msrb.mxu3 %v1400_v9 }
  0x3f   :  { %266 = vmatpush.msrb.mxu0 %v1448_v25  ;;  %363 = vmatpush.msrb.mxu2 %v1405_v10 }
  0x40   :  { %286 = vmatpush.msrb.mxu1 %v1499_v40  ;;  %383 = vmatpush.msrb.mxu3 %v1407_v11 }
  0x41   :  { %267 = vmatpush.msrb.mxu0 %v1461_v29  ;;  %364 = vmatpush.msrb.mxu2 %v1416_v14 }
  0x42   :  { %287 = vmatpush.msrb.mxu1 %v1508_v43  ;;  %384 = vmatpush.msrb.mxu3 %v1418_v15 }
  0x43   :  { %268 = vmatpush.msrb.mxu0 %v1470_v32  ;;  %365 = vmatpush.msrb.mxu2 %v1426_v17 }
  0x44   :  { %288 = vmatpush.msrb.mxu1 %v1519_v46  ;;  %385 = vmatpush.msrb.mxu3 %v1428_v18 }
  0x45   :  { %269 = vmatpush.msrb.mxu0 %v1480_v35  ;;  %366 = vmatpush.msrb.mxu2 %v1436_v21 }
  0x46   :  { %289 = vmatpush.msrb.mxu1 %v1527_v49  ;;  %386 = vmatpush.msrb.mxu3 %v1438_v22 }
  0x47   :  { %270 = vmatpush.msrb.mxu0 %v1493_v39  ;;  %367 = vmatpush.msrb.mxu2 %v1446_v24 }
  0x48   :  { %290 = vmatpush.msrb.mxu1 %v1531_v50  ;;  %387 = vmatpush.msrb.mxu3 %v1448_v25 }
  0x49   :  { %271 = vmatpush.msrb.mxu0 %v1503_v42  ;;  %368 = vmatpush.msrb.mxu2 %v1459_v28 }
  0x4a   :  { %291 = vmatpush.msrb.mxu1 %v1536_v51  ;;  %388 = vmatpush.msrb.mxu3 %v1461_v29 }
  0x4b   :  { %272 = vmatpush.msrb.mxu0 %v1512_v45  ;;  %369 = vmatpush.msrb.mxu2 %v1468_v31 }
  0x4c   :  { %292 = vmatpush.msrb.mxu1 %v1542_v52  ;;  %389 = vmatpush.msrb.mxu3 %v1470_v32 }
  0x4d   :  { %398 = vmatpush.msra.mxu0 %v1409_v12  ;;  %370 = vmatpush.msrb.mxu2 %v1478_v34 }
  0x4e   :  { %479 = vmatpush.msra.mxu1 %v1374_v0  ;;  %390 = vmatpush.msrb.mxu3 %v1480_v35 }
  0x4f   :  { %399 = vmatpush.msra.mxu0 %v1414_v13  ;;  %371 = vmatpush.msrb.mxu2 %v1491_v38 }
  0x50   :  { %480 = vmatpush.msra.mxu1 %v1378_v2  ;;  %391 = vmatpush.msrb.mxu3 %v1493_v39 }
  0x51   :  { %400 = vmatpush.msra.mxu0 %v1424_v16  ;;  %372 = vmatpush.msrb.mxu2 %v1501_v41 }
  0x52   :  { %481 = vmatpush.msra.mxu1 %v1384_v4  ;;  %392 = vmatpush.msrb.mxu3 %v1503_v42 }
  0x53   :  { %401 = vmatpush.msra.mxu0 %v1434_v20  ;;  %373 = vmatpush.msrb.mxu2 %v1510_v44 }
  0x54   :  { %482 = vmatpush.msra.mxu1 %v1391_v6  ;;  %393 = vmatpush.msrb.mxu3 %v1512_v45 }
  0x55   :  { %402 = vmatpush.msra.mxu0 %v1444_v23  ;;  %499 = vmatpush.msra.mxu2 %v1376_v1 }
  0x56   :  { %483 = vmatpush.msra.mxu1 %v1398_v8  ;;  %1129 = vset.pattern.permute.xlu2 %v1340_v19 }
  0x57   :  { %403 = vmatpush.msra.mxu0 %v1457_v27  ;;  %500 = vmatpush.msra.mxu2 %v1382_v3 }
  0x58   :  { %484 = vmatpush.msra.mxu1 %v1405_v10 }
  0x59   :  { %404 = vmatpush.msra.mxu0 %v1466_v30  ;;  %501 = vmatpush.msra.mxu2 %v1386_v5 }
  0x5a   :  { %485 = vmatpush.msra.mxu1 %v1416_v14 }
  0x5b   :  { %405 = vmatpush.msra.mxu0 %v1476_v33  ;;  %502 = vmatpush.msra.mxu2 %v1393_v7 }
  0x5c   :  { %486 = vmatpush.msra.mxu1 %v1426_v17 }
  0x5d   :  { %406 = vmatpush.msra.mxu0 %v1486_v36  ;;  %503 = vmatpush.msra.mxu2 %v1400_v9 }
  0x5e   :  { %487 = vmatpush.msra.mxu1 %v1436_v21 }
  0x5f   :  { %407 = vmatpush.msra.mxu0 %v1499_v40  ;;  %504 = vmatpush.msra.mxu2 %v1407_v11 }
  0x60   :  { %488 = vmatpush.msra.mxu1 %v1446_v24 }
  0x61   :  { %408 = vmatpush.msra.mxu0 %v1508_v43  ;;  %505 = vmatpush.msra.mxu2 %v1418_v15 }
  0x62   :  { %489 = vmatpush.msra.mxu1 %v1459_v28 }
  0x63   :  { %409 = vmatpush.msra.mxu0 %v1519_v46  ;;  %506 = vmatpush.msra.mxu2 %v1428_v18 }
  0x64   :  { %490 = vmatpush.msra.mxu1 %v1468_v31 }
  0x65   :  { %410 = vmatpush.msra.mxu0 %v1527_v49  ;;  %507 = vmatpush.msra.mxu2 %v1438_v22 }
  0x66   :  { %491 = vmatpush.msra.mxu1 %v1478_v34 }
  0x67   :  { %411 = vmatpush.msra.mxu0 %v1531_v50  ;;  %508 = vmatpush.msra.mxu2 %v1448_v25 }
  0x68   :  { %492 = vmatpush.msra.mxu1 %v1491_v38 }
  0x69   :  { %412 = vmatpush.msra.mxu0 %v1536_v51  ;;  %509 = vmatpush.msra.mxu2 %v1461_v29  ;;  %v1667_v51 = vperm.slane %v103_v53, 2 }
  0x6a   :  { %493 = vmatpush.msra.mxu1 %v1501_v41 }
  0x6b   :  { %413 = vmatpush.msra.mxu0 %v1542_v52  ;;  %510 = vmatpush.msra.mxu2 %v1470_v32 }
  0x6c   :  { %494 = vmatpush.msra.mxu1 %v1510_v44 }
  0x6d   :  { %511 = vmatpush.msra.mxu2 %v1480_v35 }
  0x6f   :  { %512 = vmatpush.msra.mxu2 %v1493_v39 }
  0x71   :  { %513 = vmatpush.msra.mxu2 %v1503_v42 }
  0x73   :  { %514 = vmatpush.msra.mxu2 %v1512_v45 }
  0xa9   :  { %v133_v57 = vpop.f32.mrf.mxu0  ;;  %v153_v59 = vpop.f32.mrf.mxu1 }
  0xaa   :  { %v134_v60 = vadd.f32 %v133_v57, %v1661_v54  ;;  %v154_v61 = vadd.f32 %v153_v59, %v1663_v55 }
  0xac   :  { %v176_v62 = vadd.f32 %v134_v60, %v105_v56  ;;  %v196_v63 = vadd.f32 %v154_v61, %v106_v58 }
  0xae   :  { %v1097_v19 = vmul.f32 -1.442695, %v176_v62  ;;  %v1098_v26 = vmul.f32 -1.442695, %v196_v63 }
  0xb0   :  { %1130 = vpow2.f32 %v1097_v19 }
  0xb1   :  { %1132 = vpow2.f32 %v1098_v26 }
  0xb6   :  { %v1131_v37 = vpop.eup %1130  ;;  %v173_v59 = vpop.f32.mrf.mxu2 }
  0xb7   :  { %v1133_v47 = vpop.eup %1132  ;;  %v180_v48 = vadd.f32 1.0, %v1131_v37  ;;  %v174_v63 = vadd.f32 %v173_v59, %v1667_v51 }
  0xb8   :  { %v200_v45 = vadd.f32 1.0, %v1133_v47  ;;  %v107_v47 = vld [vmem:[#allocation2 + $0x10] sm:$0xff] }
  0xb9   :  { %1134 = vrcp.f32 %v180_v48  ;;  %v192_v56 = vand.u32 2147483648, %v180_v48  ;;  %v190_v61 = vand.u32 2147483647, %v180_v48  ;;  %vm186_vm1 = vweird.f32 %v180_v48 }
  0xba   :  { %1136 = vrcp.f32 %v200_v45  ;;  %vm206_vm4 = vweird.f32 %v200_v45  ;;  %v212_v55 = vand.u32 2147483648, %v200_v45 }
  0xbb   :  { %v193_v26 = vor.u32 1.1754944e-38, %v192_v56  ;;  %vm191_vm3 = vcmp.eq.f32.partialorder %v190_v61, 8.507059e+37 }
  0xbf   :  { %v1135_v44 = vpop.eup %1134 }
  0xc0   :  { %v1137_v52 = vpop.eup %1136  ;;  %v182_v42 = vmul.f32 %v1135_v44, %v180_v48  ;;  %vm187_vm0 = vweird.f32 %v1135_v44 }
  0xc1   :  { %v202_v41 = vmul.f32 %v1137_v52, %v200_v45  ;;  %vm188_vm2 = vmor %vm186_vm1, %vm187_vm0  ;;  %vm207_vm5 = vweird.f32 %v1137_v52 }
  0xc2   :  { %v183_v57 = vsub.f32 1.0, %v182_v42  ;;  %vm208_vm6 = vmor %vm206_vm4, %vm207_vm5 }
  0xc3   :  { %v203_v58 = vsub.f32 1.0, %v202_v41  ;;  %v210_v41 = vand.u32 2147483647, %v200_v45  ;;  %v2066_v45 = vld [vmem:[#allocation16_spill] sm:$0xff] }
  0xc4   :  { %v184_v60 = vmul.f32 %v1135_v44, %v183_v57 }
  0xc5   :  { %v204_v62 = vmul.f32 %v1137_v52, %v203_v58  ;;  %v213_v58 = vor.u32 1.1754944e-38, %v212_v55  ;;  %vm211_vm7 = vcmp.eq.f32.partialorder %v210_v41, 8.507059e+37  ;;  %v2069_v55 = vld [vmem:[#allocation17_spill] sm:$0xff] }
  0xc6   :  { %v185_v19 = vadd.f32 %v1135_v44, %v184_v60 }
  0xc7   :  { %v205_v53 = vadd.f32 %v1137_v52, %v204_v62  ;;  %v2070_v62 = vld [vmem:[#allocation14_spill] sm:$0xff] }
  0xc8   :  { %v189_v37 = vsel %vm188_vm2, %v1135_v44, %v185_v19  ;;  %v227_v19 = vpop.permute.xlu0 %226 }
  0xc9   :  { %v194_v54 = vsel %vm191_vm3, %v193_v26, %v189_v37  ;;  %v209_v39 = vsel %vm208_vm6, %v1137_v52, %v205_v53  ;;  %v2067_v52 = vld [vmem:[#allocation12_spill] sm:$0xff]  ;;  %v233_v37 = vld [vmem:[#allocation2 + $0x20] sm:$0xff]  ;;  %v2072_v53 = vld [vmem:[#allocation19_spill] sm:$0xff] }
  0xca   :  { %v216_v42 = vmul.f32 %v194_v54, %v174_v63  ;;  %v214_v59 = vsel %vm211_vm7, %v213_v58, %v209_v39  ;;  %v2065_v39 = vld [vmem:[#allocation11_spill] sm:$0xff]  ;;  %v2068_v54 = vld [vmem:[#allocation13_spill] sm:$0xff] }
  0xcb   :  { %v219_v48 = vsub.f32 1.0, %v214_v59  ;;  %v221_v44 = vmul.f32 0.0, %v214_v59  ;;  %v2071_v63 = vld [vmem:[#allocation15_spill] sm:$0xff]  ;;  %v232_v58 = vld [vmem:[#allocation2 + $0x18] sm:$0xff] }
  0xcc   :  { %v217_v57 = vadd.f32 %v216_v42, %v107_v47 }
  0xce   :  { %1138 = vtanh.f32 %v217_v57 }
  0xd4   :  { %v1139_v60 = vpop.eup %1138 }
  0xd5   :  { %v220_v56 = vmul.f32 %v1139_v60, %v219_v48  ;;  %v2073_v48 = vld [vmem:[#allocation18_spill] sm:$0xff] }
  0xd7   :  { %v222_v61 = vadd.f32 %v221_v44, %v220_v56 }
  0xd9   :  { %v1670_v26 = vmul.f32 %v227_v19, %v222_v61 }
  0xdb   :  { %253 = vmatmul.f32.vlgmr.msra.gmra.mxu3 %v1670_v26  ;;  %273 = vmatmul.f32.vlgmr.msrb.gmra.mxu0 %v1670_v26 }
  0xdc   :  { %293 = vmatmul.f32.vlgmr.msrb.gmra.mxu1 %v1670_v26  ;;  %519 = vmatpush.msra.mxu3 %v1409_v12 }
  0xdd   :  { %600 = vmatpush.msrb.mxu0 %v1374_v0  ;;  %620 = vmatpush.msrb.mxu1 %v1376_v1 }
  0xde   :  { %520 = vmatpush.msra.mxu3 %v1414_v13 }
  0xdf   :  { %601 = vmatpush.msrb.mxu0 %v1378_v2  ;;  %621 = vmatpush.msrb.mxu1 %v1382_v3 }
  0xe0   :  { %521 = vmatpush.msra.mxu3 %v1424_v16 }
  0xe1   :  { %602 = vmatpush.msrb.mxu0 %v1384_v4  ;;  %622 = vmatpush.msrb.mxu1 %v1386_v5 }
  0xe2   :  { %522 = vmatpush.msra.mxu3 %v1434_v20 }
  0xe3   :  { %603 = vmatpush.msrb.mxu0 %v1391_v6  ;;  %623 = vmatpush.msrb.mxu1 %v1393_v7 }
  0xe4   :  { %523 = vmatpush.msra.mxu3 %v1444_v23 }
  0xe5   :  { %604 = vmatpush.msrb.mxu0 %v1398_v8  ;;  %624 = vmatpush.msrb.mxu1 %v1400_v9 }
  0xe6   :  { %524 = vmatpush.msra.mxu3 %v1457_v27 }
  0xe7   :  { %605 = vmatpush.msrb.mxu0 %v1405_v10  ;;  %625 = vmatpush.msrb.mxu1 %v1407_v11 }
  0xe8   :  { %525 = vmatpush.msra.mxu3 %v1466_v30 }
  0xe9   :  { %606 = vmatpush.msrb.mxu0 %v1416_v14  ;;  %626 = vmatpush.msrb.mxu1 %v1418_v15 }
  0xea   :  { %526 = vmatpush.msra.mxu3 %v1476_v33 }
  0xeb   :  { %607 = vmatpush.msrb.mxu0 %v1426_v17  ;;  %627 = vmatpush.msrb.mxu1 %v1428_v18 }
  0xec   :  { %527 = vmatpush.msra.mxu3 %v1486_v36 }
  0xed   :  { %608 = vmatpush.msrb.mxu0 %v1436_v21  ;;  %628 = vmatpush.msrb.mxu1 %v1438_v22 }
  0xee   :  { %528 = vmatpush.msra.mxu3 %v1499_v40 }
  0xef   :  { %609 = vmatpush.msrb.mxu0 %v1446_v24  ;;  %629 = vmatpush.msrb.mxu1 %v1448_v25 }
  0xf0   :  { %529 = vmatpush.msra.mxu3 %v1508_v43 }
  0xf1   :  { %610 = vmatpush.msrb.mxu0 %v1459_v28  ;;  %630 = vmatpush.msrb.mxu1 %v1461_v29 }
  0xf2   :  { %530 = vmatpush.msra.mxu3 %v1519_v46 }
  0xf3   :  { %611 = vmatpush.msrb.mxu0 %v1468_v31  ;;  %631 = vmatpush.msrb.mxu1 %v1470_v32 }
  0xf4   :  { %531 = vmatpush.msra.mxu3 %v1527_v49 }
  0xf5   :  { %612 = vmatpush.msrb.mxu0 %v1478_v34  ;;  %632 = vmatpush.msrb.mxu1 %v1480_v35 }
  0xf6   :  { %532 = vmatpush.msra.mxu3 %v1531_v50 }
  0xf7   :  { %613 = vmatpush.msrb.mxu0 %v1491_v38  ;;  %633 = vmatpush.msrb.mxu1 %v2065_v39 }
  0xf8   :  { %533 = vmatpush.msra.mxu3 %v2066_v45 }
  0xf9   :  { %614 = vmatpush.msrb.mxu0 %v2067_v52  ;;  %634 = vmatpush.msrb.mxu1 %v2068_v54 }
  0xfa   :  { %534 = vmatpush.msra.mxu3 %v2069_v55 }
  0xfb   :  { %615 = vmatpush.msrb.mxu0 %v2070_v62  ;;  %635 = vmatpush.msrb.mxu1 %v2071_v63 }
 0x158   :  { %v274_v47 = vpop.f32.mrf.mxu0 }
 0x159   :  { %v275_v42 = vadd.f32 %v274_v47, %v2072_v53 }
 0x15b   :  { %v317_v41 = vadd.f32 %v275_v42, %v233_v37  ;;  %v1102_v37 = vld [vmem:[%s2034_s1 + $0x10] sm:$0xff] }
 0x15c   :  { %468 = vperm.xlu1 %1128, %v1102_v37  }
 0x15d   :  { %v1101_v57 = vmul.f32 -1.442695, %v317_v41 }
 0x15e   :  { %v254_v59 = vpop.f32.mrf.mxu3 }
 0x15f   :  { %1140 = vpow2.f32 %v1101_v57  ;;  %v255_v60 = vadd.f32 %v254_v59, %v2073_v48 }
 0x161   :  { %v297_v56 = vadd.f32 %v255_v60, %v232_v58 }
 0x163   :  { %v1100_v44 = vmul.f32 -1.442695, %v297_v56  ;;  %v294_v56 = vpop.f32.mrf.mxu1 }
 0x164   :  { %v295_v53 = vadd.f32 %v294_v56, %v1667_v51 }
 0x165   :  { %v1141_v61 = vpop.eup %1140  ;;  %1142 = vpow2.f32 %v1100_v44 }
 0x166   :  { %v321_v19 = vadd.f32 1.0, %v1141_v61 }
 0x168   :  { %1144 = vrcp.f32 %v321_v19  ;;  %vm327_vm13 = vweird.f32 %v321_v19 }
 0x16b   :  { %v1143_v62 = vpop.eup %1142 }
 0x16c   :  { %v301_v55 = vadd.f32 1.0, %v1143_v62  ;;  %v1105_v62 = vld [vmem:[%s2034_s1 + $0x18] sm:$0xff] }
 0x16d   :  { %589 = vperm.xlu1 %1128, %v1105_v62  }
 0x16e   :  { %1146 = vrcp.f32 %v301_v55  ;;  %v1145_v63 = vpop.eup %1144  ;;  %v313_v57 = vand.u32 2147483648, %v301_v55  ;;  %v311_v59 = vand.u32 2147483647, %v301_v55  ;;  %vm307_vm9 = vweird.f32 %v301_v55 }
 0x16f   :  { %v323_v54 = vmul.f32 %v1145_v63, %v321_v19  ;;  %vm328_vm12 = vweird.f32 %v1145_v63 }
 0x170   :  { %v314_v61 = vor.u32 1.1754944e-38, %v313_v57  ;;  %vm312_vm11 = vcmp.eq.f32.partialorder %v311_v59, 8.507059e+37  ;;  %vm329_vm14 = vmor %vm327_vm13, %vm328_vm12  ;;  %v1117_v57 = vld [vmem:[%s2034_s1 + $0x38] sm:$0xff] }
 0x171   :  { %v324_v42 = vsub.f32 1.0, %v323_v54 }
 0x173   :  { %v325_v60 = vmul.f32 %v1145_v63, %v324_v42 }
 0x174   :  { %v1147_v52 = vpop.eup %1146 }
 0x175   :  { %v303_v47 = vmul.f32 %v1147_v52, %v301_v55  ;;  %vm308_vm8 = vweird.f32 %v1147_v52  ;;  %v326_v54 = vadd.f32 %v1145_v63, %v325_v60  ;;  %1073 = vperm.xlu1 %1128, %v1117_v57  }
 0x176   :  { %vm309_vm10 = vmor %vm307_vm9, %vm308_vm8 }
 0x177   :  { %v304_v41 = vsub.f32 1.0, %v303_v47  ;;  %v234_v47 = vld [vmem:[#allocation2 + $0x28] sm:$0xff]  ;;  %v330_v45 = vsel %vm329_vm14, %v1145_v63, %v326_v54 }
 0x179   :  { %v305_v58 = vmul.f32 %v1147_v52, %v304_v41  ;;  %v333_v41 = vand.u32 2147483648, %v321_v19 }
 0x17b   :  { %v306_v44 = vadd.f32 %v1147_v52, %v305_v58  ;;  %v331_v58 = vand.u32 2147483647, %v321_v19  ;;  %v334_v39 = vor.u32 1.1754944e-38, %v333_v41 }
 0x17d   :  { %v310_v48 = vsel %vm309_vm10, %v1147_v52, %v306_v44  ;;  %vm332_vm15 = vcmp.eq.f32.partialorder %v331_v58, 8.507059e+37  ;;  %v348_v44 = vpop.permute.xlu0 %347 }
 0x17e   :  { %v315_v37 = vsel %vm312_vm11, %v314_v61, %v310_v48  ;;  %v335_v52 = vsel %vm332_vm15, %v334_v39, %v330_v45 }
 0x17f   :  { %v337_v42 = vmul.f32 %v315_v37, %v295_v53  ;;  %v340_v59 = vsub.f32 1.0, %v335_v52  ;;  %v342_v48 = vmul.f32 %v335_v52, %v1670_v26 }
 0x181   :  { %v338_v55 = vadd.f32 %v337_v42, %v234_v47 }
 0x183   :  { %1148 = vtanh.f32 %v338_v55 }
 0x189   :  { %v1149_v60 = vpop.eup %1148 }
 0x18a   :  { %v341_v56 = vmul.f32 %v1149_v60, %v340_v59 }
 0x18c   :  { %v343_v53 = vadd.f32 %v342_v48, %v341_v56  ;;  %v355_v56 = vld [vmem:[#allocation2 + $0x40] sm:$0xff] }
 0x18e   :  { %v344_v19 = vsub.f32 %v343_v53, %v1670_v26 }
 0x190   :  { %v350_v62 = vmul.f32 %v348_v44, %v344_v19 }
 0x192   :  { %v1738_v63 = vadd.f32 %v350_v62, %v1670_v26 }
 0x194   :  { %374 = vmatmul.f32.vlgmr.msrb.gmra.mxu2 %v1738_v63  ;;  %394 = vmatmul.f32.vlgmr.msrb.gmra.mxu3 %v1738_v63 }
 0x195   :  { %414 = vmatmul.f32.vlgmr.msra.gmra.mxu0 %v1738_v63  ;;  %640 = vmatpush.msrb.mxu2 %v1409_v12 }
 0x196   :  { %721 = vmatpush.msrb.mxu3 %v1374_v0  ;;  %741 = vmatpush.msra.mxu0 %v1376_v1  ;;  %v2074_v0 = vld [vmem:[#allocation11_spill] sm:$0xff]  ;;  %v2075_v1 = vld [vmem:[#allocation16_spill] sm:$0xff] }
 0x197   :  { %641 = vmatpush.msrb.mxu2 %v1414_v13  ;;  %v2082_v13 = vld [vmem:[#allocation19_spill] sm:$0xff] }
 0x198   :  { %722 = vmatpush.msrb.mxu3 %v1378_v2  ;;  %742 = vmatpush.msra.mxu0 %v1382_v3  ;;  %v2076_v2 = vld [vmem:[#allocation12_spill] sm:$0xff]  ;;  %v2077_v3 = vld [vmem:[#allocation13_spill] sm:$0xff] }
 0x199   :  { %642 = vmatpush.msrb.mxu2 %v1424_v16 }
 0x19a   :  { %723 = vmatpush.msrb.mxu3 %v1384_v4  ;;  %743 = vmatpush.msra.mxu0 %v1386_v5  ;;  %v2078_v4 = vld [vmem:[#allocation17_spill] sm:$0xff]  ;;  %v2079_v5 = vld [vmem:[#allocation14_spill] sm:$0xff] }
 0x19b   :  { %643 = vmatpush.msrb.mxu2 %v1434_v20 }
 0x19c   :  { %724 = vmatpush.msrb.mxu3 %v1391_v6  ;;  %744 = vmatpush.msra.mxu0 %v1393_v7  ;;  %v2080_v6 = vld [vmem:[#allocation15_spill] sm:$0xff]  ;;  %v353_v7 = vld [vmem:[#allocation2 + $0x30] sm:$0xff] }
 0x19d   :  { %644 = vmatpush.msrb.mxu2 %v1444_v23 }
 0x19e   :  { %725 = vmatpush.msrb.mxu3 %v1398_v8  ;;  %745 = vmatpush.msra.mxu0 %v1400_v9  ;;  %v354_v9 = vld [vmem:[#allocation2 + $0x38] sm:$0xff] }
 0x19f   :  { %645 = vmatpush.msrb.mxu2 %v1457_v27 }
 0x1a0   :  { %726 = vmatpush.msrb.mxu3 %v1405_v10  ;;  %746 = vmatpush.msra.mxu0 %v1407_v11  ;;  %v2081_v11 = vld [vmem:[#allocation18_spill] sm:$0xff] }
 0x1a1   :  { %646 = vmatpush.msrb.mxu2 %v1466_v30 }
 0x1a2   :  { %727 = vmatpush.msrb.mxu3 %v1416_v14  ;;  %747 = vmatpush.msra.mxu0 %v1418_v15 }
 0x1a3   :  { %647 = vmatpush.msrb.mxu2 %v1476_v33 }
 0x1a4   :  { %728 = vmatpush.msrb.mxu3 %v1426_v17  ;;  %748 = vmatpush.msra.mxu0 %v1428_v18 }
 0x1a5   :  { %648 = vmatpush.msrb.mxu2 %v1486_v36 }
 0x1a6   :  { %729 = vmatpush.msrb.mxu3 %v1436_v21  ;;  %749 = vmatpush.msra.mxu0 %v1438_v22 }
 0x1a7   :  { %649 = vmatpush.msrb.mxu2 %v1499_v40 }
 0x1a8   :  { %730 = vmatpush.msrb.mxu3 %v1446_v24  ;;  %750 = vmatpush.msra.mxu0 %v1448_v25 }
 0x1a9   :  { %650 = vmatpush.msrb.mxu2 %v1508_v43 }
 0x1aa   :  { %731 = vmatpush.msrb.mxu3 %v1459_v28  ;;  %751 = vmatpush.msra.mxu0 %v1461_v29 }
 0x1ab   :  { %651 = vmatpush.msrb.mxu2 %v1519_v46 }
 0x1ac   :  { %732 = vmatpush.msrb.mxu3 %v1468_v31  ;;  %752 = vmatpush.msra.mxu0 %v1470_v32 }
 0x1ad   :  { %652 = vmatpush.msrb.mxu2 %v1527_v49 }
 0x1ae   :  { %733 = vmatpush.msrb.mxu3 %v1478_v34  ;;  %753 = vmatpush.msra.mxu0 %v1480_v35 }
 0x1af   :  { %653 = vmatpush.msrb.mxu2 %v1531_v50 }
 0x1b0   :  { %734 = vmatpush.msrb.mxu3 %v1491_v38  ;;  %754 = vmatpush.msra.mxu0 %v2074_v0 }
 0x1b1   :  { %654 = vmatpush.msrb.mxu2 %v2075_v1 }
 0x1b2   :  { %735 = vmatpush.msrb.mxu3 %v2076_v2  ;;  %755 = vmatpush.msra.mxu0 %v2077_v3 }
 0x1b3   :  { %655 = vmatpush.msrb.mxu2 %v2078_v4 }
 0x1b4   :  { %736 = vmatpush.msrb.mxu3 %v2079_v5  ;;  %756 = vmatpush.msra.mxu0 %v2080_v6 }
 0x212   :  { %v415_v55 = vpop.f32.mrf.mxu0 }
 0x213   :  { %v416_v60 = vadd.f32 %v415_v55, %v1667_v51  ;;  %v1838_v55 = vld [vmem:[#allocation5 + $0x110] sm:$0xff] }
 0x217   :  { %v375_v8 = vpop.f32.mrf.mxu2  ;;  %v395_v10 = vpop.f32.mrf.mxu3 }
 0x218   :  { %v376_v12 = vadd.f32 %v375_v8, %v2081_v11  ;;  %v396_v14 = vadd.f32 %v395_v10, %v2082_v13 }
 0x21a   :  { %v418_v15 = vadd.f32 %v376_v12, %v353_v7  ;;  %v438_v17 = vadd.f32 %v396_v14, %v354_v9 }
 0x21c   :  { %v1103_v18 = vmul.f32 -1.442695, %v418_v15  ;;  %v1104_v21 = vmul.f32 -1.442695, %v438_v17 }
 0x21e   :  { %1150 = vpow2.f32 %v1103_v18 }
 0x21f   :  { %1152 = vpow2.f32 %v1104_v21 }
 0x224   :  { %v1151_v22 = vpop.eup %1150 }
 0x225   :  { %v1153_v24 = vpop.eup %1152  ;;  %v422_v25 = vadd.f32 1.0, %v1151_v22 }
 0x226   :  { %v442_v26 = vadd.f32 1.0, %v1153_v24  ;;  %v469_v24 = vpop.permute.xlu1 %468 }
 0x227   :  { %1154 = vrcp.f32 %v422_v25  ;;  %v434_v37 = vand.u32 2147483648, %v422_v25  ;;  %v432_v58 = vand.u32 2147483647, %v422_v25  ;;  %vm428_vm1 = vweird.f32 %v422_v25 }
 0x228   :  { %1156 = vrcp.f32 %v442_v26  ;;  %v454_v44 = vand.u32 2147483648, %v442_v26  ;;  %vm448_vm5 = vweird.f32 %v442_v26  ;;  %v452_v7 = vand.u32 2147483647, %v442_v26 }
 0x229   :  { %v435_v59 = vor.u32 1.1754944e-38, %v434_v37  ;;  %vm433_vm3 = vcmp.eq.f32.partialorder %v432_v58, 8.507059e+37  ;;  %v1821_v37 = vld [vmem:[#allocation5 + $0x138] sm:$0xff]  ;;  %v1831_v58 = vld [vmem:[#allocation5 + $0x128] sm:$0xff] }
 0x22a   :  { %v455_v10 = vor.u32 1.1754944e-38, %v454_v44  ;;  %vm453_vm7 = vcmp.eq.f32.partialorder %v452_v7, 8.507059e+37  ;;  %v1111_v7 = vld [vmem:[%s2034_s1 + $0x28] sm:$0xff] }
 0x22d   :  { %v1155_v39 = vpop.eup %1154 }
 0x22e   :  { %v1157_v45 = vpop.eup %1156  ;;  %v424_v61 = vmul.f32 %v1155_v39, %v422_v25  ;;  %vm429_vm0 = vweird.f32 %v1155_v39 }
 0x22f   :  { %v444_v54 = vmul.f32 %v1157_v45, %v442_v26  ;;  %vm430_vm2 = vmor %vm428_vm1, %vm429_vm0  ;;  %vm449_vm4 = vweird.f32 %v1157_v45  ;;  %v1802_v26 = vld [vmem:[#allocation5 + $0x178] sm:$0xff] }
 0x230   :  { %v425_v47 = vsub.f32 1.0, %v424_v61  ;;  %vm450_vm6 = vmor %vm448_vm5, %vm449_vm4  ;;  %v1808_v61 = vld [vmem:[#allocation5 + $0x170] sm:$0xff] }
 0x231   :  { %v445_v41 = vsub.f32 1.0, %v444_v54  ;;  %v1814_v54 = vld [vmem:[#allocation5 + $0x150] sm:$0xff] }
 0x232   :  { %v426_v42 = vmul.f32 %v1155_v39, %v425_v47  ;;  %v1817_v47 = vld [vmem:[#allocation5 + $0x158] sm:$0xff] }
 0x233   :  { %v446_v57 = vmul.f32 %v1157_v45, %v445_v41  ;;  %v1824_v41 = vld [vmem:[#allocation5 + $0x140] sm:$0xff] }
 0x234   :  { %v427_v52 = vadd.f32 %v1155_v39, %v426_v42  ;;  %v1828_v42 = vld [vmem:[#allocation5 + $0x120] sm:$0xff] }
 0x235   :  { %v447_v19 = vadd.f32 %v1157_v45, %v446_v57  ;;  %v1845_v57 = vld [vmem:[#allocation5 + $0xf8] sm:$0xff] }
 0x236   :  { %v431_v48 = vsel %vm430_vm2, %v1155_v39, %v427_v52  ;;  %v1852_v52 = vld [vmem:[#allocation5 + $0xe0] sm:$0xff] }
 0x237   :  { %v436_v53 = vsel %vm433_vm3, %v435_v59, %v431_v48  ;;  %v451_v9 = vsel %vm450_vm6, %v1157_v45, %v447_v19  ;;  %v1805_v45 = vld [vmem:[#allocation5 + $0x168] sm:$0xff]  ;;  %v1873_v48 = vld [vmem:[#allocation5 + $0x98] sm:$0xff] }
 0x238   :  { %v458_v62 = vmul.f32 %v436_v53, %v416_v60  ;;  %v456_v12 = vsel %vm453_vm7, %v455_v10, %v451_v9  ;;  %v1859_v59 = vld [vmem:[#allocation5 + $0xc8] sm:$0xff]  ;;  %v1866_v60 = vld [vmem:[#allocation5 + $0xb0] sm:$0xff] }
 0x239   :  { %v461_v14 = vsub.f32 1.0, %v456_v12  ;;  %v463_v18 = vmul.f32 %v456_v12, %v1738_v63 }
 0x23a   :  { %v459_v8 = vadd.f32 %v458_v62, %v355_v56 }
 0x23c   :  { %1158 = vtanh.f32 %v459_v8 }
 0x242   :  { %v1159_v15 = vpop.eup %1158 }
 0x243   :  { %v462_v17 = vmul.f32 %v1159_v15, %v461_v14  ;;  %v476_v14 = vld [vmem:[#allocation2 + $0x58] sm:$0xff] }
 0x245   :  { %v464_v21 = vadd.f32 %v463_v18, %v462_v17 }
 0x247   :  { %v465_v22 = vsub.f32 %v464_v21, %v1738_v63 }
 0x249   :  { %v471_v25 = vmul.f32 %v469_v24, %v465_v22 }
 0x24b   :  { %v1797_v39 = vadd.f32 %v471_v25, %v1738_v63  ;;  %v1811_v63 = vld [vmem:[#allocation5 + $0x160] sm:$0xff] }
 0x24d   :  { %495 = vmatmul.f32.vlgmr.msra.gmra.mxu1 %v1797_v39  ;;  %515 = vmatmul.f32.vlgmr.msra.gmra.mxu2 %v1797_v39 }
 0x24e   :  { %535 = vmatmul.f32.vlgmr.msra.gmra.mxu3 %v1797_v39  ;;  %761 = vmatpush.msra.mxu1 %v1802_v26 }
 0x24f   :  { %842 = vmatpush.msra.mxu2 %v1805_v45  ;;  %862 = vmatpush.msra.mxu3 %v1808_v61 }
 0x250   :  { %762 = vmatpush.msra.mxu1 %v1811_v63 }
 0x251   :  { %843 = vmatpush.msra.mxu2 %v1814_v54  ;;  %863 = vmatpush.msra.mxu3 %v1817_v47 }
 0x252   :  { %763 = vmatpush.msra.mxu1 %v1424_v16  ;;  %v1835_v16 = vld [vmem:[#allocation5 + $0x108] sm:$0xff] }
 0x253   :  { %844 = vmatpush.msra.mxu2 %v1821_v37  ;;  %864 = vmatpush.msra.mxu3 %v1824_v41 }
 0x254   :  { %764 = vmatpush.msra.mxu1 %v1434_v20  ;;  %v1842_v20 = vld [vmem:[#allocation5 + $0xf0] sm:$0xff] }
 0x255   :  { %845 = vmatpush.msra.mxu2 %v1828_v42  ;;  %865 = vmatpush.msra.mxu3 %v1831_v58 }
 0x256   :  { %765 = vmatpush.msra.mxu1 %v1444_v23  ;;  %v1849_v23 = vld [vmem:[#allocation5 + $0xd8] sm:$0xff] }
 0x257   :  { %846 = vmatpush.msra.mxu2 %v1835_v16  ;;  %866 = vmatpush.msra.mxu3 %v1838_v55 }
 0x258   :  { %766 = vmatpush.msra.mxu1 %v1457_v27  ;;  %v1856_v27 = vld [vmem:[#allocation5 + $0xc0] sm:$0xff] }
 0x259   :  { %847 = vmatpush.msra.mxu2 %v1842_v20  ;;  %867 = vmatpush.msra.mxu3 %v1845_v57 }
 0x25a   :  { %767 = vmatpush.msra.mxu1 %v1466_v30  ;;  %v1863_v30 = vld [vmem:[#allocation5 + $0xa8] sm:$0xff] }
 0x25b   :  { %848 = vmatpush.msra.mxu2 %v1849_v23  ;;  %868 = vmatpush.msra.mxu3 %v1852_v52 }
 0x25c   :  { %768 = vmatpush.msra.mxu1 %v1476_v33  ;;  %v1870_v33 = vld [vmem:[#allocation5 + $0x90] sm:$0xff] }
 0x25d   :  { %849 = vmatpush.msra.mxu2 %v1856_v27  ;;  %869 = vmatpush.msra.mxu3 %v1859_v59 }
 0x25e   :  { %769 = vmatpush.msra.mxu1 %v1486_v36 }
 0x25f   :  { %850 = vmatpush.msra.mxu2 %v1863_v30  ;;  %870 = vmatpush.msra.mxu3 %v1866_v60 }
 0x260   :  { %770 = vmatpush.msra.mxu1 %v1499_v40 }
 0x261   :  { %851 = vmatpush.msra.mxu2 %v1870_v33  ;;  %871 = vmatpush.msra.mxu3 %v1873_v48 }
 0x262   :  { %771 = vmatpush.msra.mxu1 %v1508_v43 }
 0x263   :  { %852 = vmatpush.msra.mxu2 %v1459_v28  ;;  %872 = vmatpush.msra.mxu3 %v1461_v29  ;;  %v474_v28 = vld [vmem:[#allocation2 + $0x48] sm:$0xff] }
 0x264   :  { %772 = vmatpush.msra.mxu1 %v1519_v46 }
 0x265   :  { %853 = vmatpush.msra.mxu2 %v1468_v31  ;;  %873 = vmatpush.msra.mxu3 %v1470_v32 }
 0x266   :  { %773 = vmatpush.msra.mxu1 %v1527_v49 }
 0x267   :  { %854 = vmatpush.msra.mxu2 %v1478_v34  ;;  %874 = vmatpush.msra.mxu3 %v1480_v35  ;;  %v475_v35 = vld [vmem:[#allocation2 + $0x50] sm:$0xff] }
 0x268   :  { %774 = vmatpush.msra.mxu1 %v1531_v50 }
 0x269   :  { %855 = vmatpush.msra.mxu2 %v1491_v38  ;;  %875 = vmatpush.msra.mxu3 %v2074_v0 }
 0x26a   :  { %775 = vmatpush.msra.mxu1 %v2075_v1 }
 0x26b   :  { %856 = vmatpush.msra.mxu2 %v2076_v2  ;;  %876 = vmatpush.msra.mxu3 %v2077_v3  ;;  %v1108_v3 = vld [vmem:[%s2034_s1 + $0x20] sm:$0xff]  ;;  %s1342_s1 = smov [#allocation7]  }
 0x26c   :  { %776 = vmatpush.msra.mxu1 %v2078_v4  ;;  %710 = vperm.xlu2 %1129, %v1108_v3   ;;  %v1257_v3 = vld [vmem:[#allocation5 + $0x8] sm:$0xff]  ;;  %s1084_s16 = sshll.u32 %s1342_s1, 4  ;;  %s1085_s16 = int_to_ptr.vmem [resolvable:$true] %s1084_s16 }
 0x26d   :  { %857 = vmatpush.msra.mxu2 %v2079_v5  ;;  %877 = vmatpush.msra.mxu3 %v2080_v6 }
 0x274   :  { %831 = vperm.xlu2 %1129, %v1111_v7  }
 0x2ca   :  { %v496_v29 = vpop.f32.mrf.mxu1 }
 0x2cb   :  { %v497_v31 = vadd.f32 %v496_v29, %v2081_v11 }
 0x2cd   :  { %v539_v32 = vadd.f32 %v497_v31, %v474_v28 }
 0x2cf   :  { %v1106_v34 = vmul.f32 -1.442695, %v539_v32 }
 0x2d0   :  { %v516_v36 = vpop.f32.mrf.mxu2 }
 0x2d1   :  { %1160 = vpow2.f32 %v1106_v34  ;;  %v517_v38 = vadd.f32 %v516_v36, %v2082_v13  ;;  %v536_v19 = vpop.f32.mrf.mxu3 }
 0x2d2   :  { %v537_v10 = vadd.f32 %v536_v19, %v1667_v51 }
 0x2d3   :  { %v559_v40 = vadd.f32 %v517_v38, %v475_v35 }
 0x2d5   :  { %v1107_v43 = vmul.f32 -1.442695, %v559_v40 }
 0x2d7   :  { %v1161_v46 = vpop.eup %1160  ;;  %1162 = vpow2.f32 %v1107_v43  ;;  %v590_v43 = vpop.permute.xlu1 %589 }
 0x2d8   :  { %v543_v49 = vadd.f32 1.0, %v1161_v46 }
 0x2da   :  { %1164 = vrcp.f32 %v543_v49  ;;  %v555_v5 = vand.u32 2147483648, %v543_v49  ;;  %v553_v56 = vand.u32 2147483647, %v543_v49  ;;  %vm549_vm9 = vweird.f32 %v543_v49 }
 0x2dc   :  { %v556_v8 = vor.u32 1.1754944e-38, %v555_v5  ;;  %vm554_vm11 = vcmp.eq.f32.partialorder %v553_v56, 8.507059e+37 }
 0x2dd   :  { %v1163_v50 = vpop.eup %1162 }
 0x2de   :  { %v563_v0 = vadd.f32 1.0, %v1163_v50  ;;  %v1922_v50 = vld [vmem:[#allocation5 + $0x130] sm:$0xff] }
 0x2e0   :  { %v1165_v1 = vpop.eup %1164  ;;  %1166 = vrcp.f32 %v563_v0  ;;  %v575_v18 = vand.u32 2147483648, %v563_v0  ;;  %v573_v22 = vand.u32 2147483647, %v563_v0  ;;  %vm569_vm13 = vweird.f32 %v563_v0 }
 0x2e1   :  { %v545_v2 = vmul.f32 %v1165_v1, %v543_v49  ;;  %vm550_vm8 = vweird.f32 %v1165_v1 }
 0x2e2   :  { %vm551_vm10 = vmor %vm549_vm9, %vm550_vm8  ;;  %v576_v28 = vor.u32 1.1754944e-38, %v575_v18  ;;  %vm574_vm15 = vcmp.eq.f32.partialorder %v573_v22, 8.507059e+37 }
 0x2e3   :  { %v546_v4 = vsub.f32 1.0, %v545_v2  ;;  %v1256_v2 = vld [vmem:[#allocation5] sm:$0xff] }
 0x2e5   :  { %v547_v6 = vmul.f32 %v1165_v1, %v546_v4  ;;  %v595_v4 = vld [vmem:[#allocation2 + $0x60] sm:$0xff] }
 0x2e6   :  { %v1167_v53 = vpop.eup %1166 }
 0x2e7   :  { %v565_v44 = vmul.f32 %v1167_v53, %v563_v0  ;;  %v548_v62 = vadd.f32 %v1165_v1, %v547_v6  ;;  %vm570_vm12 = vweird.f32 %v1167_v53  ;;  %v1254_v0 = vld [vmem:[#allocation5 + $0x20] sm:$0xff]  ;;  %v596_v6 = vld [vmem:[#allocation2 + $0x68] sm:$0xff] }
 0x2e8   :  { %vm571_vm14 = vmor %vm569_vm13, %vm570_vm12 }
 0x2e9   :  { %v566_v9 = vsub.f32 1.0, %v565_v44  ;;  %v552_v12 = vsel %vm551_vm10, %v1165_v1, %v548_v62  ;;  %v1972_v1 = vld [vmem:[#allocation5 + $0x10] sm:$0xff] }
 0x2ea   :  { %v557_v15 = vsel %vm554_vm11, %v556_v8, %v552_v12 }
 0x2eb   :  { %v567_v17 = vmul.f32 %v1167_v53, %v566_v9  ;;  %v579_v21 = vmul.f32 %v557_v15, %v537_v10 }
 0x2ed   :  { %v568_v24 = vadd.f32 %v1167_v53, %v567_v17  ;;  %v580_v25 = vadd.f32 %v579_v21, %v476_v14 }
 0x2ef   :  { %v572_v29 = vsel %vm571_vm14, %v1167_v53, %v568_v24  ;;  %1168 = vtanh.f32 %v580_v25 }
 0x2f0   :  { %v577_v31 = vsel %vm574_vm15, %v576_v28, %v572_v29 }
 0x2f1   :  { %v582_v32 = vsub.f32 1.0, %v577_v31  ;;  %v584_v36 = vmul.f32 %v577_v31, %v1797_v39 }
 0x2f5   :  { %v1169_v34 = vpop.eup %1168 }
 0x2f6   :  { %v583_v35 = vmul.f32 %v1169_v34, %v582_v32 }
 0x2f8   :  { %v585_v38 = vadd.f32 %v584_v36, %v583_v35 }
 0x2fa   :  { %v586_v40 = vsub.f32 %v585_v38, %v1797_v39 }
 0x2fc   :  { %v592_v46 = vmul.f32 %v590_v43, %v586_v40  ;;  %v597_v40 = vld [vmem:[#allocation2 + $0x70] sm:$0xff] }
 0x2fe   :  { %v1906_v49 = vadd.f32 %v592_v46, %v1797_v39  ;;  %v1917_v39 = vld [vmem:[#allocation5 + $0x148] sm:$0xff] }
 0x300   :  { %616 = vmatmul.f32.vlgmr.msrb.gmra.mxu0 %v1906_v49  ;;  %636 = vmatmul.f32.vlgmr.msrb.gmra.mxu1 %v1906_v49 }
 0x301   :  { %656 = vmatmul.f32.vlgmr.msrb.gmra.mxu2 %v1906_v49  ;;  %882 = vmatpush.msrb.mxu0 %v1802_v26 }
 0x302   :  { %963 = vmatpush.msrb.mxu1 %v1805_v45  ;;  %983 = vmatpush.msrb.mxu2 %v1808_v61  ;;  %v1927_v45 = vld [vmem:[#allocation5 + $0x118] sm:$0xff]  ;;  %v1932_v61 = vld [vmem:[#allocation5 + $0x100] sm:$0xff] }
 0x303   :  { %883 = vmatpush.msrb.mxu0 %v1811_v63 }
 0x304   :  { %964 = vmatpush.msrb.mxu1 %v1814_v54  ;;  %984 = vmatpush.msrb.mxu2 %v1817_v47  ;;  %v1937_v54 = vld [vmem:[#allocation5 + $0xe8] sm:$0xff]  ;;  %v1942_v47 = vld [vmem:[#allocation5 + $0xd0] sm:$0xff] }
 0x305   :  { %884 = vmatpush.msrb.mxu0 %v1917_v39 }
 0x306   :  { %965 = vmatpush.msrb.mxu1 %v1821_v37  ;;  %985 = vmatpush.msrb.mxu2 %v1824_v41  ;;  %v1947_v37 = vld [vmem:[#allocation5 + $0xb8] sm:$0xff]  ;;  %v1952_v41 = vld [vmem:[#allocation5 + $0xa0] sm:$0xff] }
 0x307   :  { %885 = vmatpush.msrb.mxu0 %v1922_v50 }
 0x308   :  { %966 = vmatpush.msrb.mxu1 %v1828_v42  ;;  %986 = vmatpush.msrb.mxu2 %v1831_v58  ;;  %v1957_v42 = vld [vmem:[#allocation5 + $0x88] sm:$0xff]  ;;  %v1241_v58 = vld [vmem:[#allocation5 + $0x78] sm:$0xff] }
 0x309   :  { %886 = vmatpush.msrb.mxu0 %v1927_v45 }
 0x30a   :  { %967 = vmatpush.msrb.mxu1 %v1835_v16  ;;  %987 = vmatpush.msrb.mxu2 %v1838_v55  ;;  %v1242_v16 = vld [vmem:[#allocation5 + $0x80] sm:$0xff]  ;;  %v1960_v55 = vld [vmem:[#allocation5 + $0x70] sm:$0xff] }
 0x30b   :  { %887 = vmatpush.msrb.mxu0 %v1932_v61 }
 0x30c   :  { %968 = vmatpush.msrb.mxu1 %v1842_v20  ;;  %988 = vmatpush.msrb.mxu2 %v1845_v57  ;;  %v1244_v20 = vld [vmem:[#allocation5 + $0x60] sm:$0xff]  ;;  %v1245_v57 = vld [vmem:[#allocation5 + $0x68] sm:$0xff] }
 0x30d   :  { %888 = vmatpush.msrb.mxu0 %v1937_v54 }
 0x30e   :  { %969 = vmatpush.msrb.mxu1 %v1849_v23  ;;  %989 = vmatpush.msrb.mxu2 %v1852_v52  ;;  %v1963_v23 = vld [vmem:[#allocation5 + $0x58] sm:$0xff]  ;;  %v1247_v52 = vld [vmem:[#allocation5 + $0x48] sm:$0xff] }
 0x30f   :  { %889 = vmatpush.msrb.mxu0 %v1942_v47 }
 0x310   :  { %970 = vmatpush.msrb.mxu1 %v1856_v27  ;;  %990 = vmatpush.msrb.mxu2 %v1859_v59  ;;  %v1248_v27 = vld [vmem:[#allocation5 + $0x50] sm:$0xff]  ;;  %v1966_v59 = vld [vmem:[#allocation5 + $0x40] sm:$0xff] }
 0x311   :  { %890 = vmatpush.msrb.mxu0 %v1947_v37 }
 0x312   :  { %971 = vmatpush.msrb.mxu1 %v1863_v30  ;;  %991 = vmatpush.msrb.mxu2 %v1866_v60  ;;  %v1250_v30 = vld [vmem:[#allocation5 + $0x30] sm:$0xff]  ;;  %v1251_v60 = vld [vmem:[#allocation5 + $0x38] sm:$0xff] }
 0x313   :  { %891 = vmatpush.msrb.mxu0 %v1952_v41 }
 0x314   :  { %972 = vmatpush.msrb.mxu1 %v1870_v33  ;;  %992 = vmatpush.msrb.mxu2 %v1873_v48  ;;  %v1969_v33 = vld [vmem:[#allocation5 + $0x28] sm:$0xff]  ;;  %v1253_v48 = vld [vmem:[#allocation5 + $0x18] sm:$0xff] }
 0x315   :  { %892 = vmatpush.msrb.mxu0 %v1957_v42 }
 0x316   :  { %973 = vmatpush.msrb.mxu1 %v1241_v58  ;;  %993 = vmatpush.msrb.mxu2 %v1242_v16 }
 0x317   :  { %893 = vmatpush.msrb.mxu0 %v1960_v55 }
 0x318   :  { %974 = vmatpush.msrb.mxu1 %v1244_v20  ;;  %994 = vmatpush.msrb.mxu2 %v1245_v57 }
 0x319   :  { %894 = vmatpush.msrb.mxu0 %v1963_v23 }
 0x31a   :  { %975 = vmatpush.msrb.mxu1 %v1247_v52  ;;  %995 = vmatpush.msrb.mxu2 %v1248_v27 }
 0x31b   :  { %895 = vmatpush.msrb.mxu0 %v1966_v59 }
 0x31c   :  { %976 = vmatpush.msrb.mxu1 %v1250_v30  ;;  %996 = vmatpush.msrb.mxu2 %v1251_v60 }
 0x31d   :  { %896 = vmatpush.msrb.mxu0 %v1969_v33 }
 0x31e   :  { %977 = vmatpush.msrb.mxu1 %v1253_v48  ;;  %997 = vmatpush.msrb.mxu2 %v1254_v0 }
 0x31f   :  { %897 = vmatpush.msrb.mxu0 %v1972_v1 }
 0x320   :  { %978 = vmatpush.msrb.mxu1 %v1256_v2  ;;  %998 = vmatpush.msrb.mxu2 %v1257_v3 }
 0x37d   :  { %v617_v5 = vpop.f32.mrf.mxu0  ;;  %v637_v56 = vpop.f32.mrf.mxu1 }
 0x37e   :  { %v618_v53 = vadd.f32 %v617_v5, %v2081_v11  ;;  %v638_v19 = vadd.f32 %v637_v56, %v2082_v13  ;;  %v711_v5 = vpop.permute.xlu2 %710 }
 0x380   :  { %v660_v44 = vadd.f32 %v618_v53, %v595_v4  ;;  %v680_v62 = vadd.f32 %v638_v19, %v596_v6 }
 0x382   :  { %v1109_v7 = vmul.f32 -1.442695, %v660_v44  ;;  %v1110_v8 = vmul.f32 -1.442695, %v680_v62 }
 0x384   :  { %1170 = vpow2.f32 %v1109_v7  ;;  %v657_v31 = vpop.f32.mrf.mxu2 }
 0x385   :  { %1172 = vpow2.f32 %v1110_v8  ;;  %v658_v36 = vadd.f32 %v657_v31, %v1667_v51 }
 0x38a   :  { %v1171_v9 = vpop.eup %1170 }
 0x38b   :  { %v1173_v10 = vpop.eup %1172  ;;  %v664_v12 = vadd.f32 1.0, %v1171_v9 }
 0x38c   :  { %v684_v14 = vadd.f32 1.0, %v1173_v10 }
 0x38d   :  { %1174 = vrcp.f32 %v664_v12  ;;  %v676_v24 = vand.u32 2147483648, %v664_v12  ;;  %v674_v29 = vand.u32 2147483647, %v664_v12  ;;  %vm670_vm1 = vweird.f32 %v664_v12 }
 0x38e   :  { %1176 = vrcp.f32 %v684_v14  ;;  %v696_v16 = vand.u32 2147483648, %v684_v14  ;;  %vm690_vm5 = vweird.f32 %v684_v14  ;;  %v694_v20 = vand.u32 2147483647, %v684_v14 }
 0x38f   :  { %v677_v35 = vor.u32 1.1754944e-38, %v676_v24  ;;  %vm675_vm3 = vcmp.eq.f32.partialorder %v674_v29, 8.507059e+37 }
 0x390   :  { %v697_v27 = vor.u32 1.1754944e-38, %v696_v16  ;;  %vm695_vm7 = vcmp.eq.f32.partialorder %v694_v20, 8.507059e+37 }
 0x393   :  { %v1175_v15 = vpop.eup %1174 }
 0x394   :  { %v1177_v17 = vpop.eup %1176  ;;  %v666_v18 = vmul.f32 %v1175_v15, %v664_v12  ;;  %vm671_vm0 = vweird.f32 %v1175_v15 }
 0x395   :  { %v686_v21 = vmul.f32 %v1177_v17, %v684_v14  ;;  %vm672_vm2 = vmor %vm670_vm1, %vm671_vm0  ;;  %vm691_vm4 = vweird.f32 %v1177_v17 }
 0x396   :  { %v667_v22 = vsub.f32 1.0, %v666_v18  ;;  %vm692_vm6 = vmor %vm690_vm5, %vm691_vm4 }
 0x397   :  { %v687_v25 = vsub.f32 1.0, %v686_v21  ;;  %v718_v21 = vld [vmem:[#allocation2 + $0x88] sm:$0xff] }
 0x398   :  { %v668_v28 = vmul.f32 %v1175_v15, %v667_v22 }
 0x399   :  { %v688_v32 = vmul.f32 %v1177_v17, %v687_v25 }
 0x39a   :  { %v669_v34 = vadd.f32 %v1175_v15, %v668_v28 }
 0x39b   :  { %v689_v46 = vadd.f32 %v1177_v17, %v688_v32 }
 0x39c   :  { %v673_v38 = vsel %vm672_vm2, %v1175_v15, %v669_v34 }
 0x39d   :  { %v678_v43 = vsel %vm675_vm3, %v677_v35, %v673_v38  ;;  %v693_v52 = vsel %vm692_vm6, %v1177_v17, %v689_v46 }
 0x39e   :  { %v700_v58 = vmul.f32 %v678_v43, %v658_v36  ;;  %v698_v30 = vsel %vm695_vm7, %v697_v27, %v693_v52  ;;  %v838_v27 = vld [vmem:[#allocation2 + $0x98] sm:$0xff] }
 0x39f   :  { %v703_v60 = vsub.f32 1.0, %v698_v30  ;;  %v705_v2 = vmul.f32 %v698_v30, %v1906_v49 }
 0x3a0   :  { %v701_v57 = vadd.f32 %v700_v58, %v597_v40  ;;  %v832_v58 = vpop.permute.xlu2 %831 }
 0x3a2   :  { %1178 = vtanh.f32 %v701_v57  ;;  %v837_v57 = vld [vmem:[#allocation2 + $0x90] sm:$0xff] }
 0x3a8   :  { %v1179_v48 = vpop.eup %1178 }
 0x3a9   :  { %v704_v0 = vmul.f32 %v1179_v48, %v703_v60 }
 0x3ab   :  { %v706_v3 = vadd.f32 %v705_v2, %v704_v0 }
 0x3ad   :  { %v707_v4 = vsub.f32 %v706_v3, %v1906_v49 }
 0x3af   :  { %v713_v6 = vmul.f32 %v711_v5, %v707_v4 }
 0x3b1   :  { %v1981_v56 = vadd.f32 %v713_v6, %v1906_v49 }
 0x3b3   :  { %737 = vmatmul.f32.vlgmr.msrb.gmra.mxu3 %v1981_v56  ;;  %757 = vmatmul.f32.vlgmr.msra.gmra.mxu0 %v1981_v56 }
 0x3b4   :  { %777 = vmatmul.f32.vlgmr.msra.gmra.mxu1 %v1981_v56  ;;  %1003 = vmatpush.msrb.mxu3 %v1802_v26  ;;  %v717_v26 = vld [vmem:[#allocation2 + $0x80] sm:$0xff] }
 0x3b6   :  { %1004 = vmatpush.msrb.mxu3 %v1811_v63 }
 0x3b8   :  { %1005 = vmatpush.msrb.mxu3 %v1917_v39 }
 0x3ba   :  { %1006 = vmatpush.msrb.mxu3 %v1922_v50 }
 0x3bc   :  { %1007 = vmatpush.msrb.mxu3 %v1927_v45  ;;  %v716_v45 = vld [vmem:[#allocation2 + $0x78] sm:$0xff] }
 0x3be   :  { %1008 = vmatpush.msrb.mxu3 %v1932_v61 }
 0x3c0   :  { %1009 = vmatpush.msrb.mxu3 %v1937_v54 }
 0x3c2   :  { %1010 = vmatpush.msrb.mxu3 %v1942_v47 }
 0x3c4   :  { %1011 = vmatpush.msrb.mxu3 %v1947_v37 }
 0x3c6   :  { %1012 = vmatpush.msrb.mxu3 %v1952_v41 }
 0x3c8   :  { %1013 = vmatpush.msrb.mxu3 %v1957_v42 }
 0x3ca   :  { %1014 = vmatpush.msrb.mxu3 %v1960_v55 }
 0x3cc   :  { %1015 = vmatpush.msrb.mxu3 %v1963_v23 }
 0x3ce   :  { %1016 = vmatpush.msrb.mxu3 %v1966_v59 }
 0x3d0   :  { %1017 = vmatpush.msrb.mxu3 %v1969_v33 }
 0x3d2   :  { %1018 = vmatpush.msrb.mxu3 %v1972_v1 }
 0x430   :  { %v758_v63 = vpop.f32.mrf.mxu0 }
 0x431   :  { %v759_v49 = vadd.f32 %v758_v63, %v2082_v13  ;;  %v778_v10 = vpop.f32.mrf.mxu1 }
 0x432   :  { %v779_v15 = vadd.f32 %v778_v10, %v1667_v51 }
 0x433   :  { %v801_v39 = vadd.f32 %v759_v49, %v717_v26 }
 0x435   :  { %v1113_v50 = vmul.f32 -1.442695, %v801_v39 }
 0x436   :  { %v738_v61 = vpop.f32.mrf.mxu3 }
 0x437   :  { %1180 = vpow2.f32 %v1113_v50  ;;  %v739_v54 = vadd.f32 %v738_v61, %v2081_v11 }
 0x439   :  { %v781_v47 = vadd.f32 %v739_v54, %v716_v45 }
 0x43b   :  { %v1112_v37 = vmul.f32 -1.442695, %v781_v47 }
 0x43d   :  { %v1181_v41 = vpop.eup %1180  ;;  %1182 = vpow2.f32 %v1112_v37 }
 0x43e   :  { %v805_v42 = vadd.f32 1.0, %v1181_v41 }
 0x440   :  { %1184 = vrcp.f32 %v805_v42  ;;  %v817_v24 = vand.u32 2147483648, %v805_v42  ;;  %vm811_vm13 = vweird.f32 %v805_v42  ;;  %v815_v28 = vand.u32 2147483647, %v805_v42 }
 0x442   :  { %v818_v32 = vor.u32 1.1754944e-38, %v817_v24  ;;  %vm816_vm15 = vcmp.eq.f32.partialorder %v815_v28, 8.507059e+37  ;;  %v953_v24 = vpop.permute.xlu0 %952 }
 0x443   :  { %v1183_v55 = vpop.eup %1182 }
 0x444   :  { %v785_v23 = vadd.f32 1.0, %v1183_v55 }
 0x446   :  { %1186 = vrcp.f32 %v785_v23  ;;  %v1185_v59 = vpop.eup %1184  ;;  %v797_v62 = vand.u32 2147483648, %v785_v23  ;;  %v795_v8 = vand.u32 2147483647, %v785_v23  ;;  %vm791_vm9 = vweird.f32 %v785_v23 }
 0x447   :  { %v807_v33 = vmul.f32 %v1185_v59, %v805_v42  ;;  %vm812_vm12 = vweird.f32 %v1185_v59 }
 0x448   :  { %v798_v14 = vor.u32 1.1754944e-38, %v797_v62  ;;  %vm796_vm11 = vcmp.eq.f32.partialorder %v795_v8, 8.507059e+37  ;;  %vm813_vm14 = vmor %vm811_vm13, %vm812_vm12 }
 0x449   :  { %v808_v19 = vsub.f32 1.0, %v807_v33 }
 0x44b   :  { %v809_v9 = vmul.f32 %v1185_v59, %v808_v19 }
 0x44c   :  { %v1187_v1 = vpop.eup %1186 }
 0x44d   :  { %v787_v53 = vmul.f32 %v1187_v1, %v785_v23  ;;  %vm792_vm8 = vweird.f32 %v1187_v1  ;;  %v810_v18 = vadd.f32 %v1185_v59, %v809_v9 }
 0x44e   :  { %vm793_vm10 = vmor %vm791_vm9, %vm792_vm8 }
 0x44f   :  { %v788_v44 = vsub.f32 1.0, %v787_v53  ;;  %v814_v31 = vsel %vm813_vm14, %v1185_v59, %v810_v18 }
 0x450   :  { %v819_v34 = vsel %vm816_vm15, %v818_v32, %v814_v31 }
 0x451   :  { %v789_v7 = vmul.f32 %v1187_v1, %v788_v44  ;;  %v824_v35 = vsub.f32 1.0, %v819_v34  ;;  %v826_v38 = vmul.f32 %v819_v34, %v1981_v56 }
 0x453   :  { %v790_v12 = vadd.f32 %v1187_v1, %v789_v7 }
 0x455   :  { %v794_v17 = vsel %vm793_vm10, %v1187_v1, %v790_v12  ;;  %v839_v1 = vld [vmem:[#allocation2 + $0xa0] sm:$0xff] }
 0x456   :  { %v799_v22 = vsel %vm796_vm11, %v798_v14, %v794_v17 }
 0x457   :  { %v821_v25 = vmul.f32 %v799_v22, %v779_v15 }
 0x459   :  { %v822_v29 = vadd.f32 %v821_v25, %v718_v21 }
 0x45b   :  { %1188 = vtanh.f32 %v822_v29  ;;  %v958_v29 = vld [vmem:[#allocation2 + $0xa8] sm:$0xff] }
 0x461   :  { %v1189_v36 = vpop.eup %1188 }
 0x462   :  { %v825_v40 = vmul.f32 %v1189_v36, %v824_v35  ;;  %v959_v36 = vld [vmem:[#allocation2 + $0xb0] sm:$0xff] }
 0x464   :  { %v827_v43 = vadd.f32 %v826_v38, %v825_v40 }
 0x466   :  { %v828_v46 = vsub.f32 %v827_v43, %v1981_v56 }
 0x468   :  { %v834_v16 = vmul.f32 %v832_v58, %v828_v46 }
 0x46a   :  { %v2008_v20 = vadd.f32 %v834_v16, %v1981_v56 }
 0x46c   :  { %858 = vmatmul.f32.vlgmr.msra.gmra.mxu2 %v2008_v20  ;;  %878 = vmatmul.f32.vlgmr.msra.gmra.mxu3 %v2008_v20 }
 0x46d   :  { %898 = vmatmul.f32.vlgmr.msrb.gmra.mxu0 %v2008_v20 }
 0x4ea   :  { %v899_v41 = vpop.f32.mrf.mxu0 }
 0x4eb   :  { %v900_v59 = vadd.f32 %v899_v41, %v1667_v51 }
 0x4ef   :  { %v859_v52 = vpop.f32.mrf.mxu2  ;;  %v879_v30 = vpop.f32.mrf.mxu3 }
 0x4f0   :  { %v860_v60 = vadd.f32 %v859_v52, %v2081_v11  ;;  %v880_v48 = vadd.f32 %v879_v30, %v2082_v13 }
 0x4f2   :  { %v902_v0 = vadd.f32 %v860_v60, %v837_v57  ;;  %v922_v2 = vadd.f32 %v880_v48, %v838_v27 }
 0x4f4   :  { %v1115_v3 = vmul.f32 -1.442695, %v902_v0  ;;  %v1116_v4 = vmul.f32 -1.442695, %v922_v2 }
 0x4f6   :  { %1190 = vpow2.f32 %v1115_v3 }
 0x4f7   :  { %1192 = vpow2.f32 %v1116_v4 }
 0x4fc   :  { %v1191_v5 = vpop.eup %1190 }
 0x4fd   :  { %v1193_v6 = vpop.eup %1192  ;;  %v906_v56 = vadd.f32 1.0, %v1191_v5 }
 0x4fe   :  { %v926_v26 = vadd.f32 1.0, %v1193_v6 }
 0x4ff   :  { %1194 = vrcp.f32 %v906_v56  ;;  %v918_v61 = vand.u32 2147483648, %v906_v56  ;;  %v916_v37 = vand.u32 2147483647, %v906_v56  ;;  %vm912_vm1 = vweird.f32 %v906_v56 }
 0x500   :  { %1196 = vrcp.f32 %v926_v26  ;;  %v938_v62 = vand.u32 2147483648, %v926_v26  ;;  %vm932_vm5 = vweird.f32 %v926_v26  ;;  %v936_v7 = vand.u32 2147483647, %v926_v26 }
 0x501   :  { %v919_v23 = vor.u32 1.1754944e-38, %v918_v61  ;;  %vm917_vm3 = vcmp.eq.f32.partialorder %v916_v37, 8.507059e+37 }
 0x502   :  { %v939_v10 = vor.u32 1.1754944e-38, %v938_v62  ;;  %vm937_vm7 = vcmp.eq.f32.partialorder %v936_v7, 8.507059e+37 }
 0x505   :  { %v1195_v63 = vpop.eup %1194 }
 0x506   :  { %v1197_v49 = vpop.eup %1196  ;;  %v908_v39 = vmul.f32 %v1195_v63, %v906_v56  ;;  %vm913_vm0 = vweird.f32 %v1195_v63 }
 0x507   :  { %v928_v50 = vmul.f32 %v1197_v49, %v926_v26  ;;  %vm914_vm2 = vmor %vm912_vm1, %vm913_vm0  ;;  %vm933_vm4 = vweird.f32 %v1197_v49  ;;  %v960_v26 = vld [vmem:[#allocation2 + $0xb8] sm:$0xff] }
 0x508   :  { %v909_v45 = vsub.f32 1.0, %v908_v39  ;;  %vm934_vm6 = vmor %vm932_vm5, %vm933_vm4 }
 0x509   :  { %v929_v54 = vsub.f32 1.0, %v928_v50 }
 0x50a   :  { %v910_v47 = vmul.f32 %v1195_v63, %v909_v45 }
 0x50b   :  { %v930_v42 = vmul.f32 %v1197_v49, %v929_v54 }
 0x50c   :  { %v911_v55 = vadd.f32 %v1195_v63, %v910_v47 }
 0x50d   :  { %v931_v19 = vadd.f32 %v1197_v49, %v930_v42 }
 0x50e   :  { %v915_v33 = vsel %vm914_vm2, %v1195_v63, %v911_v55 }
 0x50f   :  { %v920_v53 = vsel %vm917_vm3, %v919_v23, %v915_v33  ;;  %v935_v9 = vsel %vm934_vm6, %v1197_v49, %v931_v19 }
 0x510   :  { %v942_v44 = vmul.f32 %v920_v53, %v900_v59  ;;  %v940_v12 = vsel %vm937_vm7, %v939_v10, %v935_v9 }
 0x511   :  { %v945_v14 = vsub.f32 1.0, %v940_v12  ;;  %v947_v18 = vmul.f32 %v940_v12, %v2008_v20 }
 0x512   :  { %v943_v8 = vadd.f32 %v942_v44, %v839_v1  ;;  %v1074_v1 = vpop.permute.xlu1 %1073 }
 0x514   :  { %1198 = vtanh.f32 %v943_v8 }
 0x51a   :  { %v1199_v15 = vpop.eup %1198 }
 0x51b   :  { %v946_v17 = vmul.f32 %v1199_v15, %v945_v14 }
 0x51d   :  { %v948_v21 = vadd.f32 %v947_v18, %v946_v17 }
 0x51f   :  { %v949_v22 = vsub.f32 %v948_v21, %v2008_v20 }
 0x521   :  { %v955_v25 = vmul.f32 %v953_v24, %v949_v22 }
 0x523   :  { %v2019_v28 = vadd.f32 %v955_v25, %v2008_v20 }
 0x525   :  { %979 = vmatmul.f32.vlgmr.msrb.gmra.mxu1 %v2019_v28  ;;  %999 = vmatmul.f32.vlgmr.msrb.gmra.mxu2 %v2019_v28 }
 0x526   :  { %1019 = vmatmul.f32.vlgmr.msrb.gmra.mxu3 %v2019_v28 }
 0x5a2   :  { %v980_v31 = vpop.f32.mrf.mxu1 }
 0x5a3   :  { %v981_v32 = vadd.f32 %v980_v31, %v2081_v11 }
 0x5a5   :  { %v1023_v34 = vadd.f32 %v981_v32, %v958_v29 }
 0x5a7   :  { %v1118_v35 = vmul.f32 -1.442695, %v1023_v34 }
 0x5a8   :  { %v1000_v38 = vpop.f32.mrf.mxu2 }
 0x5a9   :  { %1200 = vpow2.f32 %v1118_v35  ;;  %v1001_v40 = vadd.f32 %v1000_v38, %v2082_v13  ;;  %v1020_v2 = vpop.f32.mrf.mxu3 }
 0x5aa   :  { %v1021_v6 = vadd.f32 %v1020_v2, %v1667_v51 }
 0x5ab   :  { %v1043_v43 = vadd.f32 %v1001_v40, %v959_v36 }
 0x5ad   :  { %v1119_v46 = vmul.f32 -1.442695, %v1043_v43 }
 0x5af   :  { %v1201_v58 = vpop.eup %1200  ;;  %1202 = vpow2.f32 %v1119_v46 }
 0x5b0   :  { %v1027_v16 = vadd.f32 1.0, %v1201_v58 }
 0x5b2   :  { %1204 = vrcp.f32 %v1027_v16  ;;  %v1039_v11 = vand.u32 2147483648, %v1027_v16  ;;  %v1037_v48 = vand.u32 2147483647, %v1027_v16  ;;  %vm1033_vm9 = vweird.f32 %v1027_v16 }
 0x5b4   :  { %v1040_v4 = vor.u32 1.1754944e-38, %v1039_v11  ;;  %vm1038_vm11 = vcmp.eq.f32.partialorder %v1037_v48, 8.507059e+37 }
 0x5b5   :  { %v1203_v20 = vpop.eup %1202 }
 0x5b6   :  { %v1047_v57 = vadd.f32 1.0, %v1203_v20 }
 0x5b8   :  { %v1205_v52 = vpop.eup %1204  ;;  %1206 = vrcp.f32 %v1047_v57  ;;  %v1059_v39 = vand.u32 2147483648, %v1047_v57  ;;  %v1057_v45 = vand.u32 2147483647, %v1047_v57  ;;  %vm1053_vm13 = vweird.f32 %v1047_v57 }
 0x5b9   :  { %v1029_v27 = vmul.f32 %v1205_v52, %v1027_v16  ;;  %vm1034_vm8 = vweird.f32 %v1205_v52 }
 0x5ba   :  { %vm1035_vm10 = vmor %vm1033_vm9, %vm1034_vm8  ;;  %v1060_v47 = vor.u32 1.1754944e-38, %v1059_v39  ;;  %vm1058_vm15 = vcmp.eq.f32.partialorder %v1057_v45, 8.507059e+37 }
 0x5bb   :  { %v1030_v30 = vsub.f32 1.0, %v1029_v27 }
 0x5bd   :  { %v1031_v60 = vmul.f32 %v1205_v52, %v1030_v30 }
 0x5be   :  { %v1207_v0 = vpop.eup %1206 }
 0x5bf   :  { %v1049_v3 = vmul.f32 %v1207_v0, %v1047_v57  ;;  %v1032_v13 = vadd.f32 %v1205_v52, %v1031_v60  ;;  %vm1054_vm12 = vweird.f32 %v1207_v0 }
 0x5c0   :  { %vm1055_vm14 = vmor %vm1053_vm13, %vm1054_vm12 }
 0x5c1   :  { %v1050_v5 = vsub.f32 1.0, %v1049_v3  ;;  %v1036_v56 = vsel %vm1035_vm10, %v1205_v52, %v1032_v13 }
 0x5c2   :  { %v1041_v63 = vsel %vm1038_vm11, %v1040_v4, %v1036_v56 }
 0x5c3   :  { %v1051_v49 = vmul.f32 %v1207_v0, %v1050_v5  ;;  %v1063_v50 = vmul.f32 %v1041_v63, %v1021_v6 }
 0x5c5   :  { %v1052_v61 = vadd.f32 %v1207_v0, %v1051_v49  ;;  %v1064_v54 = vadd.f32 %v1063_v50, %v960_v26 }
 0x5c7   :  { %v1056_v37 = vsel %vm1055_vm14, %v1207_v0, %v1052_v61  ;;  %1208 = vtanh.f32 %v1064_v54 }
 0x5c8   :  { %v1061_v41 = vsel %vm1058_vm15, %v1060_v47, %v1056_v37 }
 0x5c9   :  { %v1066_v42 = vsub.f32 1.0, %v1061_v41  ;;  %v1068_v23 = vmul.f32 %v1061_v41, %v2019_v28 }
 0x5cd   :  { %v1209_v51 = vpop.eup %1208 }
 0x5ce   :  { %v1067_v55 = vmul.f32 %v1209_v51, %v1066_v42 }
 0x5d0   :  { %v1069_v59 = vadd.f32 %v1068_v23, %v1067_v55 }
 0x5d2   :  { %v1070_v33 = vsub.f32 %v1069_v59, %v2019_v28 }
 0x5d4   :  { %v1076_v53 = vmul.f32 %v1074_v1, %v1070_v33 }
 0x5d6   :  { %v1077_v19 = vadd.f32 %v1076_v53, %v2019_v28 }
 0x5d8   :  { %1078 = vst [vmem:[#allocation7] sm:$0xff] %v1077_v19 }
 0x5d9   :  { %1089 = dma.vmem_to_hbm [thread:$0]  %s1085_s16, 128, %s1087_s19, [#allocation4]  }
 0x5da   :  { %1334 = dma.done.wait [#allocation4], 128  }
 0x5db   :  { %1335 = vsyncadd [#allocation4], 4294967168 }
 0x5dc   :  { %1094 = vsyncpa [#allocation3], 1 }
 0x5dd   :  { %1095 = vsyncpa [#allocation6], 1 }
 0x5de   :  { %1096 = vsyncpa [#allocation4], 1 }

// kernel: tpu_custom_call.1
= control target key start
LH: loop header
LB: loop body
LE: loop exit
PB: predicated region body
PF: predicated region fallthrough
CT: control target
= control target key end

     0   :  { %9 = vsyncpa [#allocation3], 0  ;;  %s2033_s0 = inlined_call_operand.hbm [shape: f32[8,8,384], index: 0, kind: input, shape index: {}]   ;;  %s2034_s1 = inlined_call_operand.vmem [shape: f32[8,8,1], index: 1, kind: input, shape index: {}]   ;;  %s2035_s2 = inlined_call_operand.hbm [shape: f32[128,384], index: 2, kind: input, shape index: {}]   ;;  %s2036_s3 = inlined_call_operand.vmem [shape: f32[1,384], index: 3, kind: input, shape index: {}]   ;;  %s2037_s4 = inlined_call_operand.hbm [shape: f32[8,128], index: 4, kind: output, shape index: {}]  }
   0x1   :  { %10 = vsyncpa [#allocation6], 0 }
   0x2   :  { %11 = vsyncpa [#allocation4], 0  ;;  %s16_s17 = sshll.u32 %s2033_s0, 4  ;;  %s1336_s18 = smov [#allocation2]   ;;  %s17_s17 = int_to_ptr.hbm [resolvable:$true] %s16_s17 }
   0x3   :  { %s18_s19 = sshll.u32 %s1336_s18, 4  ;;  %s31_s22 = sshll.u32 %s2035_s2, 4  ;;  %s19_s19 = int_to_ptr.vmem [resolvable:$true] %s18_s19  ;;  %s32_s22 = int_to_ptr.hbm [resolvable:$true] %s31_s22 }
   0x4   :  { %s1337_s23 = smov 384   ;;  %s1338_s24 = smov 24  }
   0x5   :  { %24 = dma.hbm_to_vmem [thread:$0]  %s17_s17, 3072, %s19_s19, [#allocation3], %s1337_s23, %s1337_s23, %s1338_s24  }
   0x6   :  { %s1339_s25 = smov [#allocation5]  }
   0x7   :  { %s33_s26 = sshll.u32 %s1339_s25, 4  ;;  %s34_s26 = int_to_ptr.vmem [resolvable:$true] %s33_s26 }
   0x8   :  { %39 = dma.hbm_to_vmem [thread:$0]  %s32_s22, 6144, %s34_s26, [#allocation6], %s1337_s23, %s1337_s23, %s1338_s24  }
   0x9   :  { %1330 = dma.done.wait [#allocation3], 3072  }
   0xa   :  { %1331 = vsyncadd [#allocation3], 4294964224 }
   0xb   :  { %1332 = dma.done.wait [#allocation6], 6144  }
   0xc   :  { %1333 = vsyncadd [#allocation6], 4294961152  ;;  %v1374_v0 = vld [vmem:[#allocation5 + $0x168] sm:$0xff]  ;;  %v1376_v1 = vld [vmem:[#allocation5 + $0x170] sm:$0xff]  ;;  %v1340_v19 = vmov 0   ;;  %v1341_v48 = vmov 0.0  }
   0xd   :  { %v1378_v2 = vld [vmem:[#allocation5 + $0x150] sm:$0xff]  ;;  %116 = vmatpush.msra.mxu0 %v1374_v0  ;;  %136 = vmatpush.msra.mxu1 %v1376_v1  ;;  %v1382_v3 = vld [vmem:[#allocation5 + $0x158] sm:$0xff]  ;;  %v1386_v5 = vld [vmem:[#allocation5 + $0x140] sm:$0xff]  ;;  %s1086_s19 = sshll.u32 %s2037_s4, 4  ;;  %s1087_s19 = int_to_ptr.hbm [resolvable:$true] %s1086_s19 }
   0xe   :  { %v1384_v4 = vld [vmem:[#allocation5 + $0x138] sm:$0xff]  ;;  %237 = vmatpush.msra.mxu3 %v1374_v0  ;;  %v1391_v6 = vld [vmem:[#allocation5 + $0x120] sm:$0xff]  ;;  %v1393_v7 = vld [vmem:[#allocation5 + $0x128] sm:$0xff]  ;;  %1127 = vset.pattern.permute.xlu0 %v1340_v19 }
   0xf   :  { %117 = vmatpush.msra.mxu0 %v1378_v2  ;;  %137 = vmatpush.msra.mxu1 %v1382_v3  ;;  %v1398_v8 = vld [vmem:[#allocation5 + $0x108] sm:$0xff]  ;;  %v1400_v9 = vld [vmem:[#allocation5 + $0x110] sm:$0xff]  ;;  %v1407_v11 = vld [vmem:[#allocation5 + $0xf8] sm:$0xff] }
  0x10   :  { %238 = vmatpush.msra.mxu3 %v1378_v2  ;;  %v1405_v10 = vld [vmem:[#allocation5 + $0xf0] sm:$0xff]  ;;  %v1409_v12 = vld [vmem:[#allocation5 + $0x178] sm:$0xff]  ;;  %v1414_v13 = vld [vmem:[#allocation5 + $0x160] sm:$0xff]  ;;  %1128 = vset.pattern.permute.xlu1 %v1340_v19 }
  0x11   :  { %118 = vmatpush.msra.mxu0 %v1384_v4  ;;  %138 = vmatpush.msra.mxu1 %v1386_v5  ;;  %v1416_v14 = vld [vmem:[#allocation5 + $0xd8] sm:$0xff]  ;;  %v1418_v15 = vld [vmem:[#allocation5 + $0xe0] sm:$0xff]  ;;  %v1424_v16 = vld [vmem:[#allocation5 + $0x148] sm:$0xff] }
  0x12   :  { %239 = vmatpush.msra.mxu3 %v1384_v4  ;;  %156 = vmatpush.msra.mxu2 %v1409_v12  ;;  %v1426_v17 = vld [vmem:[#allocation5 + $0xc0] sm:$0xff]  ;;  %v1428_v18 = vld [vmem:[#allocation5 + $0xc8] sm:$0xff]  ;;  %v1434_v20 = vld [vmem:[#allocation5 + $0x130] sm:$0xff] }
  0x13   :  { %119 = vmatpush.msra.mxu0 %v1391_v6  ;;  %139 = vmatpush.msra.mxu1 %v1393_v7  ;;  %v1436_v21 = vld [vmem:[#allocation5 + $0xa8] sm:$0xff]  ;;  %v1438_v22 = vld [vmem:[#allocation5 + $0xb0] sm:$0xff]  ;;  %v1444_v23 = vld [vmem:[#allocation5 + $0x118] sm:$0xff] }
  0x14   :  { %240 = vmatpush.msra.mxu3 %v1391_v6  ;;  %157 = vmatpush.msra.mxu2 %v1414_v13  ;;  %v1446_v24 = vld [vmem:[#allocation5 + $0x90] sm:$0xff]  ;;  %v1448_v25 = vld [vmem:[#allocation5 + $0x98] sm:$0xff]  ;;  %v108_v26 = vld [vmem:[%s2034_s1] sm:$0xff] }
  0x15   :  { %120 = vmatpush.msra.mxu0 %v1398_v8  ;;  %140 = vmatpush.msra.mxu1 %v1400_v9  ;;  %v1457_v27 = vld [vmem:[#allocation5 + $0x100] sm:$0xff]  ;;  %v1459_v28 = vld [vmem:[#allocation5 + $0x78] sm:$0xff]  ;;  %v1466_v30 = vld [vmem:[#allocation5 + $0xe8] sm:$0xff] }
  0x16   :  { %241 = vmatpush.msra.mxu3 %v1398_v8  ;;  %158 = vmatpush.msra.mxu2 %v1424_v16  ;;  %v1461_v29 = vld [vmem:[#allocation5 + $0x80] sm:$0xff]  ;;  %v1470_v32 = vld [vmem:[#allocation5 + $0x68] sm:$0xff]  ;;  %v1476_v33 = vld [vmem:[#allocation5 + $0xd0] sm:$0xff] }
  0x17   :  { %121 = vmatpush.msra.mxu0 %v1405_v10  ;;  %141 = vmatpush.msra.mxu1 %v1407_v11  ;;  %v1468_v31 = vld [vmem:[#allocation5 + $0x60] sm:$0xff]  ;;  %v1478_v34 = vld [vmem:[#allocation5 + $0x48] sm:$0xff]  ;;  %v1480_v35 = vld [vmem:[#allocation5 + $0x50] sm:$0xff] }
  0x18   :  { %242 = vmatpush.msra.mxu3 %v1405_v10  ;;  %159 = vmatpush.msra.mxu2 %v1434_v20  ;;  %v1486_v36 = vld [vmem:[#allocation5 + $0xb8] sm:$0xff]  ;;  %v1099_v37 = vld [vmem:[%s2034_s1 + $0x8] sm:$0xff]  ;;  %v1491_v38 = vld [vmem:[#allocation5 + $0x30] sm:$0xff] }
  0x19   :  { %122 = vmatpush.msra.mxu0 %v1416_v14  ;;  %142 = vmatpush.msra.mxu1 %v1418_v15  ;;  %v1493_v39 = vld [vmem:[#allocation5 + $0x38] sm:$0xff]  ;;  %v1499_v40 = vld [vmem:[#allocation5 + $0xa0] sm:$0xff]  ;;  %v1508_v43 = vld [vmem:[#allocation5 + $0x88] sm:$0xff] }
  0x1a   :  { %243 = vmatpush.msra.mxu3 %v1416_v14  ;;  %160 = vmatpush.msra.mxu2 %v1444_v23  ;;  %2056 = vst [vmem:[#allocation11_spill] sm:$0xff] %v1493_v39  ;;  %v1501_v41 = vld [vmem:[#allocation5 + $0x18] sm:$0xff]  ;;  %v1503_v42 = vld [vmem:[#allocation5 + $0x20] sm:$0xff]  ;;  %v1512_v45 = vld [vmem:[#allocation5 + $0x8] sm:$0xff] }
  0x1b   :  { %123 = vmatpush.msra.mxu0 %v1426_v17  ;;  %143 = vmatpush.msra.mxu1 %v1428_v18  ;;  %2057 = vst [vmem:[#allocation12_spill] sm:$0xff] %v1501_v41  ;;  %v1510_v44 = vld [vmem:[#allocation5] sm:$0xff]  ;;  %v1519_v46 = vld [vmem:[#allocation5 + $0x70] sm:$0xff]  ;;  %v1527_v49 = vld [vmem:[#allocation5 + $0x58] sm:$0xff] }
  0x1c   :  { %226 = vperm.xlu0 %1127, %v108_v26   ;;  %161 = vmatpush.msra.mxu2 %v1457_v27  ;;  %2058 = vst [vmem:[#allocation13_spill] sm:$0xff] %v1503_v42  ;;  %v1114_v47 = vld [vmem:[%s2034_s1 + $0x30] sm:$0xff]  ;;  %v1531_v50 = vld [vmem:[#allocation5 + $0x40] sm:$0xff]  ;;  %v1536_v51 = vld [vmem:[#allocation5 + $0x28] sm:$0xff] }
  0x1d   :  { %124 = vmatpush.msra.mxu0 %v1436_v21  ;;  %144 = vmatpush.msra.mxu1 %v1438_v22  ;;  %2059 = vst [vmem:[#allocation14_spill] sm:$0xff] %v1510_v44  ;;  %v1542_v52 = vld [vmem:[#allocation5 + $0x10] sm:$0xff]  ;;  %v103_v53 = vld [vmem:[%s2036_s3] sm:$0x7]  ;;  %v106_v58 = vld [vmem:[#allocation2 + $0x8] sm:$0xff] }
  0x1e   :  { %244 = vmatpush.msra.mxu3 %v1426_v17  ;;  %162 = vmatpush.msra.mxu2 %v1466_v30  ;;  %2060 = vst [vmem:[#allocation15_spill] sm:$0xff] %v1512_v45  ;;  %v1661_v54 = vperm.slane %v103_v53, 0  ;;  %v1663_v55 = vperm.slane %v103_v53, 1  ;;  %v105_v56 = vld [vmem:[#allocation2] sm:$0xff] }
  0x1f   :  { %125 = vmatpush.msra.mxu0 %v1446_v24  ;;  %145 = vmatpush.msra.mxu1 %v1448_v25  ;;  %2061 = vst [vmem:[#allocation16_spill] sm:$0xff] %v1536_v51 }
  0x20   :  { %245 = vmatpush.msra.mxu3 %v1436_v21  ;;  %163 = vmatpush.msra.mxu2 %v1476_v33  ;;  %2062 = vst [vmem:[#allocation17_spill] sm:$0xff] %v1542_v52 }
  0x21   :  { %126 = vmatpush.msra.mxu0 %v1459_v28  ;;  %146 = vmatpush.msra.mxu1 %v1461_v29  ;;  %2063 = vst [vmem:[#allocation18_spill] sm:$0xff] %v1661_v54 }
  0x22   :  { %246 = vmatpush.msra.mxu3 %v1446_v24  ;;  %164 = vmatpush.msra.mxu2 %v1486_v36  ;;  %2064 = vst [vmem:[#allocation19_spill] sm:$0xff] %v1663_v55 }
  0x23   :  { %127 = vmatpush.msra.mxu0 %v1468_v31  ;;  %147 = vmatpush.msra.mxu1 %v1470_v32 }
  0x24   :  { %347 = vperm.xlu0 %1127, %v1099_v37   ;;  %165 = vmatpush.msra.mxu2 %v1499_v40 }
  0x25   :  { %128 = vmatpush.msra.mxu0 %v1478_v34  ;;  %148 = vmatpush.msra.mxu1 %v1480_v35 }
  0x26   :  { %247 = vmatpush.msra.mxu3 %v1459_v28  ;;  %166 = vmatpush.msra.mxu2 %v1508_v43 }
  0x27   :  { %129 = vmatpush.msra.mxu0 %v1491_v38  ;;  %149 = vmatpush.msra.mxu1 %v1493_v39 }
  0x28   :  { %248 = vmatpush.msra.mxu3 %v1468_v31  ;;  %167 = vmatpush.msra.mxu2 %v1519_v46 }
  0x29   :  { %130 = vmatpush.msra.mxu0 %v1501_v41  ;;  %150 = vmatpush.msra.mxu1 %v1503_v42 }
  0x2a   :  { %168 = vmatpush.msra.mxu2 %v1527_v49  ;;  %249 = vmatpush.msra.mxu3 %v1478_v34 }
  0x2b   :  { %131 = vmatpush.msra.mxu0 %v1510_v44  ;;  %151 = vmatpush.msra.mxu1 %v1512_v45 }
  0x2c   :  { %132 = vmatmul.f32.vlgmr.msra.gmra.mxu0 %v1341_v48  ;;  %152 = vmatmul.f32.vlgmr.msra.gmra.mxu1 %v1341_v48 }
  0x2d   :  { %257 = vmatpush.msrb.mxu0 %v1376_v1  ;;  %952 = vperm.xlu0 %1127, %v1114_v47  }
  0x2e   :  { %277 = vmatpush.msrb.mxu1 %v1409_v12  ;;  %169 = vmatpush.msra.mxu2 %v1531_v50 }
  0x2f   :  { %258 = vmatpush.msrb.mxu0 %v1382_v3  ;;  %250 = vmatpush.msra.mxu3 %v1491_v38 }
  0x30   :  { %278 = vmatpush.msrb.mxu1 %v1414_v13  ;;  %170 = vmatpush.msra.mxu2 %v1536_v51 }
  0x31   :  { %259 = vmatpush.msrb.mxu0 %v1386_v5  ;;  %251 = vmatpush.msra.mxu3 %v1501_v41 }
  0x32   :  { %279 = vmatpush.msrb.mxu1 %v1424_v16  ;;  %171 = vmatpush.msra.mxu2 %v1542_v52 }
  0x33   :  { %260 = vmatpush.msrb.mxu0 %v1393_v7  ;;  %172 = vmatmul.f32.vlgmr.msra.gmra.mxu2 %v1341_v48 }
  0x34   :  { %280 = vmatpush.msrb.mxu1 %v1434_v20  ;;  %252 = vmatpush.msra.mxu3 %v1510_v44 }
  0x35   :  { %261 = vmatpush.msrb.mxu0 %v1400_v9  ;;  %358 = vmatpush.msrb.mxu2 %v1374_v0 }
  0x36   :  { %281 = vmatpush.msrb.mxu1 %v1444_v23  ;;  %378 = vmatpush.msrb.mxu3 %v1376_v1 }
  0x37   :  { %262 = vmatpush.msrb.mxu0 %v1407_v11  ;;  %359 = vmatpush.msrb.mxu2 %v1378_v2 }
  0x38   :  { %282 = vmatpush.msrb.mxu1 %v1457_v27  ;;  %379 = vmatpush.msrb.mxu3 %v1382_v3 }
  0x39   :  { %263 = vmatpush.msrb.mxu0 %v1418_v15  ;;  %360 = vmatpush.msrb.mxu2 %v1384_v4 }
  0x3a   :  { %283 = vmatpush.msrb.mxu1 %v1466_v30  ;;  %380 = vmatpush.msrb.mxu3 %v1386_v5 }
  0x3b   :  { %264 = vmatpush.msrb.mxu0 %v1428_v18  ;;  %361 = vmatpush.msrb.mxu2 %v1391_v6 }
  0x3c   :  { %284 = vmatpush.msrb.mxu1 %v1476_v33  ;;  %381 = vmatpush.msrb.mxu3 %v1393_v7 }
  0x3d   :  { %265 = vmatpush.msrb.mxu0 %v1438_v22  ;;  %362 = vmatpush.msrb.mxu2 %v1398_v8 }
  0x3e   :  { %285 = vmatpush.msrb.mxu1 %v1486_v36  ;;  %382 = vmatpush.msrb.mxu3 %v1400_v9 }
  0x3f   :  { %266 = vmatpush.msrb.mxu0 %v1448_v25  ;;  %363 = vmatpush.msrb.mxu2 %v1405_v10 }
  0x40   :  { %286 = vmatpush.msrb.mxu1 %v1499_v40  ;;  %383 = vmatpush.msrb.mxu3 %v1407_v11 }
  0x41   :  { %267 = vmatpush.msrb.mxu0 %v1461_v29  ;;  %364 = vmatpush.msrb.mxu2 %v1416_v14 }
  0x42   :  { %287 = vmatpush.msrb.mxu1 %v1508_v43  ;;  %384 = vmatpush.msrb.mxu3 %v1418_v15 }
  0x43   :  { %268 = vmatpush.msrb.mxu0 %v1470_v32  ;;  %365 = vmatpush.msrb.mxu2 %v1426_v17 }
  0x44   :  { %288 = vmatpush.msrb.mxu1 %v1519_v46  ;;  %385 = vmatpush.msrb.mxu3 %v1428_v18 }
  0x45   :  { %269 = vmatpush.msrb.mxu0 %v1480_v35  ;;  %366 = vmatpush.msrb.mxu2 %v1436_v21 }
  0x46   :  { %289 = vmatpush.msrb.mxu1 %v1527_v49  ;;  %386 = vmatpush.msrb.mxu3 %v1438_v22 }
  0x47   :  { %270 = vmatpush.msrb.mxu0 %v1493_v39  ;;  %367 = vmatpush.msrb.mxu2 %v1446_v24 }
  0x48   :  { %290 = vmatpush.msrb.mxu1 %v1531_v50  ;;  %387 = vmatpush.msrb.mxu3 %v1448_v25 }
  0x49   :  { %271 = vmatpush.msrb.mxu0 %v1503_v42  ;;  %368 = vmatpush.msrb.mxu2 %v1459_v28 }
  0x4a   :  { %291 = vmatpush.msrb.mxu1 %v1536_v51  ;;  %388 = vmatpush.msrb.mxu3 %v1461_v29 }
  0x4b   :  { %272 = vmatpush.msrb.mxu0 %v1512_v45  ;;  %369 = vmatpush.msrb.mxu2 %v1468_v31 }
  0x4c   :  { %292 = vmatpush.msrb.mxu1 %v1542_v52  ;;  %389 = vmatpush.msrb.mxu3 %v1470_v32 }
  0x4d   :  { %398 = vmatpush.msra.mxu0 %v1409_v12  ;;  %370 = vmatpush.msrb.mxu2 %v1478_v34 }
  0x4e   :  { %479 = vmatpush.msra.mxu1 %v1374_v0  ;;  %390 = vmatpush.msrb.mxu3 %v1480_v35 }
  0x4f   :  { %399 = vmatpush.msra.mxu0 %v1414_v13  ;;  %371 = vmatpush.msrb.mxu2 %v1491_v38 }
  0x50   :  { %480 = vmatpush.msra.mxu1 %v1378_v2  ;;  %391 = vmatpush.msrb.mxu3 %v1493_v39 }
  0x51   :  { %400 = vmatpush.msra.mxu0 %v1424_v16  ;;  %372 = vmatpush.msrb.mxu2 %v1501_v41 }
  0x52   :  { %481 = vmatpush.msra.mxu1 %v1384_v4  ;;  %392 = vmatpush.msrb.mxu3 %v1503_v42 }
  0x53   :  { %401 = vmatpush.msra.mxu0 %v1434_v20  ;;  %373 = vmatpush.msrb.mxu2 %v1510_v44 }
  0x54   :  { %482 = vmatpush.msra.mxu1 %v1391_v6  ;;  %393 = vmatpush.msrb.mxu3 %v1512_v45 }
  0x55   :  { %402 = vmatpush.msra.mxu0 %v1444_v23  ;;  %499 = vmatpush.msra.mxu2 %v1376_v1 }
  0x56   :  { %483 = vmatpush.msra.mxu1 %v1398_v8  ;;  %1129 = vset.pattern.permute.xlu2 %v1340_v19 }
  0x57   :  { %403 = vmatpush.msra.mxu0 %v1457_v27  ;;  %500 = vmatpush.msra.mxu2 %v1382_v3 }
  0x58   :  { %484 = vmatpush.msra.mxu1 %v1405_v10 }
  0x59   :  { %404 = vmatpush.msra.mxu0 %v1466_v30  ;;  %501 = vmatpush.msra.mxu2 %v1386_v5 }
  0x5a   :  { %485 = vmatpush.msra.mxu1 %v1416_v14 }
  0x5b   :  { %405 = vmatpush.msra.mxu0 %v1476_v33  ;;  %502 = vmatpush.msra.mxu2 %v1393_v7 }
  0x5c   :  { %486 = vmatpush.msra.mxu1 %v1426_v17 }
  0x5d   :  { %406 = vmatpush.msra.mxu0 %v1486_v36  ;;  %503 = vmatpush.msra.mxu2 %v1400_v9 }
  0x5e   :  { %487 = vmatpush.msra.mxu1 %v1436_v21 }
  0x5f   :  { %407 = vmatpush.msra.mxu0 %v1499_v40  ;;  %504 = vmatpush.msra.mxu2 %v1407_v11 }
  0x60   :  { %488 = vmatpush.msra.mxu1 %v1446_v24 }
  0x61   :  { %408 = vmatpush.msra.mxu0 %v1508_v43  ;;  %505 = vmatpush.msra.mxu2 %v1418_v15 }
  0x62   :  { %489 = vmatpush.msra.mxu1 %v1459_v28 }
  0x63   :  { %409 = vmatpush.msra.mxu0 %v1519_v46  ;;  %506 = vmatpush.msra.mxu2 %v1428_v18 }
  0x64   :  { %490 = vmatpush.msra.mxu1 %v1468_v31 }
  0x65   :  { %410 = vmatpush.msra.mxu0 %v1527_v49  ;;  %507 = vmatpush.msra.mxu2 %v1438_v22 }
  0x66   :  { %491 = vmatpush.msra.mxu1 %v1478_v34 }
  0x67   :  { %411 = vmatpush.msra.mxu0 %v1531_v50  ;;  %508 = vmatpush.msra.mxu2 %v1448_v25 }
  0x68   :  { %492 = vmatpush.msra.mxu1 %v1491_v38 }
  0x69   :  { %412 = vmatpush.msra.mxu0 %v1536_v51  ;;  %509 = vmatpush.msra.mxu2 %v1461_v29  ;;  %v1667_v51 = vperm.slane %v103_v53, 2 }
  0x6a   :  { %493 = vmatpush.msra.mxu1 %v1501_v41 }
  0x6b   :  { %413 = vmatpush.msra.mxu0 %v1542_v52  ;;  %510 = vmatpush.msra.mxu2 %v1470_v32 }
  0x6c   :  { %494 = vmatpush.msra.mxu1 %v1510_v44 }
  0x6d   :  { %511 = vmatpush.msra.mxu2 %v1480_v35 }
  0x6f   :  { %512 = vmatpush.msra.mxu2 %v1493_v39 }
  0x71   :  { %513 = vmatpush.msra.mxu2 %v1503_v42 }
  0x73   :  { %514 = vmatpush.msra.mxu2 %v1512_v45 }
  0xa9   :  { %v133_v57 = vpop.f32.mrf.mxu0  ;;  %v153_v59 = vpop.f32.mrf.mxu1 }
  0xaa   :  { %v134_v60 = vadd.f32 %v133_v57, %v1661_v54  ;;  %v154_v61 = vadd.f32 %v153_v59, %v1663_v55 }
  0xac   :  { %v176_v62 = vadd.f32 %v134_v60, %v105_v56  ;;  %v196_v63 = vadd.f32 %v154_v61, %v106_v58 }
  0xae   :  { %v1097_v19 = vmul.f32 -1.442695, %v176_v62  ;;  %v1098_v26 = vmul.f32 -1.442695, %v196_v63 }
  0xb0   :  { %1130 = vpow2.f32 %v1097_v19 }
  0xb1   :  { %1132 = vpow2.f32 %v1098_v26 }
  0xb6   :  { %v1131_v37 = vpop.eup %1130  ;;  %v173_v59 = vpop.f32.mrf.mxu2 }
  0xb7   :  { %v1133_v47 = vpop.eup %1132  ;;  %v180_v48 = vadd.f32 1.0, %v1131_v37  ;;  %v174_v63 = vadd.f32 %v173_v59, %v1667_v51 }
  0xb8   :  { %v200_v45 = vadd.f32 1.0, %v1133_v47  ;;  %v107_v47 = vld [vmem:[#allocation2 + $0x10] sm:$0xff] }
  0xb9   :  { %1134 = vrcp.f32 %v180_v48  ;;  %v192_v56 = vand.u32 2147483648, %v180_v48  ;;  %v190_v61 = vand.u32 2147483647, %v180_v48  ;;  %vm186_vm1 = vweird.f32 %v180_v48 }
  0xba   :  { %1136 = vrcp.f32 %v200_v45  ;;  %vm206_vm4 = vweird.f32 %v200_v45  ;;  %v212_v55 = vand.u32 2147483648, %v200_v45 }
  0xbb   :  { %v193_v26 = vor.u32 1.1754944e-38, %v192_v56  ;;  %vm191_vm3 = vcmp.eq.f32.partialorder %v190_v61, 8.507059e+37 }
  0xbf   :  { %v1135_v44 = vpop.eup %1134 }
  0xc0   :  { %v1137_v52 = vpop.eup %1136  ;;  %v182_v42 = vmul.f32 %v1135_v44, %v180_v48  ;;  %vm187_vm0 = vweird.f32 %v1135_v44 }
  0xc1   :  { %v202_v41 = vmul.f32 %v1137_v52, %v200_v45  ;;  %vm188_vm2 = vmor %vm186_vm1, %vm187_vm0  ;;  %vm207_vm5 = vweird.f32 %v1137_v52 }
  0xc2   :  { %v183_v57 = vsub.f32 1.0, %v182_v42  ;;  %vm208_vm6 = vmor %vm206_vm4, %vm207_vm5 }
  0xc3   :  { %v203_v58 = vsub.f32 1.0, %v202_v41  ;;  %v210_v41 = vand.u32 2147483647, %v200_v45  ;;  %v2066_v45 = vld [vmem:[#allocation16_spill] sm:$0xff] }
  0xc4   :  { %v184_v60 = vmul.f32 %v1135_v44, %v183_v57 }
  0xc5   :  { %v204_v62 = vmul.f32 %v1137_v52, %v203_v58  ;;  %v213_v58 = vor.u32 1.1754944e-38, %v212_v55  ;;  %vm211_vm7 = vcmp.eq.f32.partialorder %v210_v41, 8.507059e+37  ;;  %v2069_v55 = vld [vmem:[#allocation17_spill] sm:$0xff] }
  0xc6   :  { %v185_v19 = vadd.f32 %v1135_v44, %v184_v60 }
  0xc7   :  { %v205_v53 = vadd.f32 %v1137_v52, %v204_v62  ;;  %v2070_v62 = vld [vmem:[#allocation14_spill] sm:$0xff] }
  0xc8   :  { %v189_v37 = vsel %vm188_vm2, %v1135_v44, %v185_v19  ;;  %v227_v19 = vpop.permute.xlu0 %226 }
  0xc9   :  { %v194_v54 = vsel %vm191_vm3, %v193_v26, %v189_v37  ;;  %v209_v39 = vsel %vm208_vm6, %v1137_v52, %v205_v53  ;;  %v2067_v52 = vld [vmem:[#allocation12_spill] sm:$0xff]  ;;  %v233_v37 = vld [vmem:[#allocation2 + $0x20] sm:$0xff]  ;;  %v2072_v53 = vld [vmem:[#allocation19_spill] sm:$0xff] }
  0xca   :  { %v216_v42 = vmul.f32 %v194_v54, %v174_v63  ;;  %v214_v59 = vsel %vm211_vm7, %v213_v58, %v209_v39  ;;  %v2065_v39 = vld [vmem:[#allocation11_spill] sm:$0xff]  ;;  %v2068_v54 = vld [vmem:[#allocation13_spill] sm:$0xff] }
  0xcb   :  { %v219_v48 = vsub.f32 1.0, %v214_v59  ;;  %v221_v44 = vmul.f32 0.0, %v214_v59  ;;  %v2071_v63 = vld [vmem:[#allocation15_spill] sm:$0xff]  ;;  %v232_v58 = vld [vmem:[#allocation2 + $0x18] sm:$0xff] }
  0xcc   :  { %v217_v57 = vadd.f32 %v216_v42, %v107_v47 }
  0xce   :  { %1138 = vtanh.f32 %v217_v57 }
  0xd4   :  { %v1139_v60 = vpop.eup %1138 }
  0xd5   :  { %v220_v56 = vmul.f32 %v1139_v60, %v219_v48  ;;  %v2073_v48 = vld [vmem:[#allocation18_spill] sm:$0xff] }
  0xd7   :  { %v222_v61 = vadd.f32 %v221_v44, %v220_v56 }
  0xd9   :  { %v1670_v26 = vmul.f32 %v227_v19, %v222_v61 }
  0xdb   :  { %253 = vmatmul.f32.vlgmr.msra.gmra.mxu3 %v1670_v26  ;;  %273 = vmatmul.f32.vlgmr.msrb.gmra.mxu0 %v1670_v26 }
  0xdc   :  { %293 = vmatmul.f32.vlgmr.msrb.gmra.mxu1 %v1670_v26  ;;  %519 = vmatpush.msra.mxu3 %v1409_v12 }
  0xdd   :  { %600 = vmatpush.msrb.mxu0 %v1374_v0  ;;  %620 = vmatpush.msrb.mxu1 %v1376_v1 }
  0xde   :  { %520 = vmatpush.msra.mxu3 %v1414_v13 }
  0xdf   :  { %601 = vmatpush.msrb.mxu0 %v1378_v2  ;;  %621 = vmatpush.msrb.mxu1 %v1382_v3 }
  0xe0   :  { %521 = vmatpush.msra.mxu3 %v1424_v16 }
  0xe1   :  { %602 = vmatpush.msrb.mxu0 %v1384_v4  ;;  %622 = vmatpush.msrb.mxu1 %v1386_v5 }
  0xe2   :  { %522 = vmatpush.msra.mxu3 %v1434_v20 }
  0xe3   :  { %603 = vmatpush.msrb.mxu0 %v1391_v6  ;;  %623 = vmatpush.msrb.mxu1 %v1393_v7 }
  0xe4   :  { %523 = vmatpush.msra.mxu3 %v1444_v23 }
  0xe5   :  { %604 = vmatpush.msrb.mxu0 %v1398_v8  ;;  %624 = vmatpush.msrb.mxu1 %v1400_v9 }
  0xe6   :  { %524 = vmatpush.msra.mxu3 %v1457_v27 }
  0xe7   :  { %605 = vmatpush.msrb.mxu0 %v1405_v10  ;;  %625 = vmatpush.msrb.mxu1 %v1407_v11 }
  0xe8   :  { %525 = vmatpush.msra.mxu3 %v1466_v30 }
  0xe9   :  { %606 = vmatpush.msrb.mxu0 %v1416_v14  ;;  %626 = vmatpush.msrb.mxu1 %v1418_v15 }
  0xea   :  { %526 = vmatpush.msra.mxu3 %v1476_v33 }
  0xeb   :  { %607 = vmatpush.msrb.mxu0 %v1426_v17  ;;  %627 = vmatpush.msrb.mxu1 %v1428_v18 }
  0xec   :  { %527 = vmatpush.msra.mxu3 %v1486_v36 }
  0xed   :  { %608 = vmatpush.msrb.mxu0 %v1436_v21  ;;  %628 = vmatpush.msrb.mxu1 %v1438_v22 }
  0xee   :  { %528 = vmatpush.msra.mxu3 %v1499_v40 }
  0xef   :  { %609 = vmatpush.msrb.mxu0 %v1446_v24  ;;  %629 = vmatpush.msrb.mxu1 %v1448_v25 }
  0xf0   :  { %529 = vmatpush.msra.mxu3 %v1508_v43 }
  0xf1   :  { %610 = vmatpush.msrb.mxu0 %v1459_v28  ;;  %630 = vmatpush.msrb.mxu1 %v1461_v29 }
  0xf2   :  { %530 = vmatpush.msra.mxu3 %v1519_v46 }
  0xf3   :  { %611 = vmatpush.msrb.mxu0 %v1468_v31  ;;  %631 = vmatpush.msrb.mxu1 %v1470_v32 }
  0xf4   :  { %531 = vmatpush.msra.mxu3 %v1527_v49 }
  0xf5   :  { %612 = vmatpush.msrb.mxu0 %v1478_v34  ;;  %632 = vmatpush.msrb.mxu1 %v1480_v35 }
  0xf6   :  { %532 = vmatpush.msra.mxu3 %v1531_v50 }
  0xf7   :  { %613 = vmatpush.msrb.mxu0 %v1491_v38  ;;  %633 = vmatpush.msrb.mxu1 %v2065_v39 }
  0xf8   :  { %533 = vmatpush.msra.mxu3 %v2066_v45 }
  0xf9   :  { %614 = vmatpush.msrb.mxu0 %v2067_v52  ;;  %634 = vmatpush.msrb.mxu1 %v2068_v54 }
  0xfa   :  { %534 = vmatpush.msra.mxu3 %v2069_v55 }
  0xfb   :  { %615 = vmatpush.msrb.mxu0 %v2070_v62  ;;  %635 = vmatpush.msrb.mxu1 %v2071_v63 }
 0x158   :  { %v274_v47 = vpop.f32.mrf.mxu0 }
 0x159   :  { %v275_v42 = vadd.f32 %v274_v47, %v2072_v53 }
 0x15b   :  { %v317_v41 = vadd.f32 %v275_v42, %v233_v37  ;;  %v1102_v37 = vld [vmem:[%s2034_s1 + $0x10] sm:$0xff] }
 0x15c   :  { %468 = vperm.xlu1 %1128, %v1102_v37  }
 0x15d   :  { %v1101_v57 = vmul.f32 -1.442695, %v317_v41 }
 0x15e   :  { %v254_v59 = vpop.f32.mrf.mxu3 }
 0x15f   :  { %1140 = vpow2.f32 %v1101_v57  ;;  %v255_v60 = vadd.f32 %v254_v59, %v2073_v48 }
 0x161   :  { %v297_v56 = vadd.f32 %v255_v60, %v232_v58 }
 0x163   :  { %v1100_v44 = vmul.f32 -1.442695, %v297_v56  ;;  %v294_v56 = vpop.f32.mrf.mxu1 }
 0x164   :  { %v295_v53 = vadd.f32 %v294_v56, %v1667_v51 }
 0x165   :  { %v1141_v61 = vpop.eup %1140  ;;  %1142 = vpow2.f32 %v1100_v44 }
 0x166   :  { %v321_v19 = vadd.f32 1.0, %v1141_v61 }
 0x168   :  { %1144 = vrcp.f32 %v321_v19  ;;  %vm327_vm13 = vweird.f32 %v321_v19 }
 0x16b   :  { %v1143_v62 = vpop.eup %1142 }
 0x16c   :  { %v301_v55 = vadd.f32 1.0, %v1143_v62  ;;  %v1105_v62 = vld [vmem:[%s2034_s1 + $0x18] sm:$0xff] }
 0x16d   :  { %589 = vperm.xlu1 %1128, %v1105_v62  }
 0x16e   :  { %1146 = vrcp.f32 %v301_v55  ;;  %v1145_v63 = vpop.eup %1144  ;;  %v313_v57 = vand.u32 2147483648, %v301_v55  ;;  %v311_v59 = vand.u32 2147483647, %v301_v55  ;;  %vm307_vm9 = vweird.f32 %v301_v55 }
 0x16f   :  { %v323_v54 = vmul.f32 %v1145_v63, %v321_v19  ;;  %vm328_vm12 = vweird.f32 %v1145_v63 }
 0x170   :  { %v314_v61 = vor.u32 1.1754944e-38, %v313_v57  ;;  %vm312_vm11 = vcmp.eq.f32.partialorder %v311_v59, 8.507059e+37  ;;  %vm329_vm14 = vmor %vm327_vm13, %vm328_vm12  ;;  %v1117_v57 = vld [vmem:[%s2034_s1 + $0x38] sm:$0xff] }
 0x171   :  { %v324_v42 = vsub.f32 1.0, %v323_v54 }
 0x173   :  { %v325_v60 = vmul.f32 %v1145_v63, %v324_v42 }
 0x174   :  { %v1147_v52 = vpop.eup %1146 }
 0x175   :  { %v303_v47 = vmul.f32 %v1147_v52, %v301_v55  ;;  %vm308_vm8 = vweird.f32 %v1147_v52  ;;  %v326_v54 = vadd.f32 %v1145_v63, %v325_v60  ;;  %1073 = vperm.xlu1 %1128, %v1117_v57  }
 0x176   :  { %vm309_vm10 = vmor %vm307_vm9, %vm308_vm8 }
 0x177   :  { %v304_v41 = vsub.f32 1.0, %v303_v47  ;;  %v234_v47 = vld [vmem:[#allocation2 + $0x28] sm:$0xff]  ;;  %v330_v45 = vsel %vm329_vm14, %v1145_v63, %v326_v54 }
 0x179   :  { %v305_v58 = vmul.f32 %v1147_v52, %v304_v41  ;;  %v333_v41 = vand.u32 2147483648, %v321_v19 }
 0x17b   :  { %v306_v44 = vadd.f32 %v1147_v52, %v305_v58  ;;  %v331_v58 = vand.u32 2147483647, %v321_v19  ;;  %v334_v39 = vor.u32 1.1754944e-38, %v333_v41 }
 0x17d   :  { %v310_v48 = vsel %vm309_vm10, %v1147_v52, %v306_v44  ;;  %vm332_vm15 = vcmp.eq.f32.partialorder %v331_v58, 8.507059e+37  ;;  %v348_v44 = vpop.permute.xlu0 %347 }
 0x17e   :  { %v315_v37 = vsel %vm312_vm11, %v314_v61, %v310_v48  ;;  %v335_v52 = vsel %vm332_vm15, %v334_v39, %v330_v45 }
 0x17f   :  { %v337_v42 = vmul.f32 %v315_v37, %v295_v53  ;;  %v340_v59 = vsub.f32 1.0, %v335_v52  ;;  %v342_v48 = vmul.f32 %v335_v52, %v1670_v26 }
 0x181   :  { %v338_v55 = vadd.f32 %v337_v42, %v234_v47 }
 0x183   :  { %1148 = vtanh.f32 %v338_v55 }
 0x189   :  { %v1149_v60 = vpop.eup %1148 }
 0x18a   :  { %v341_v56 = vmul.f32 %v1149_v60, %v340_v59 }
 0x18c   :  { %v343_v53 = vadd.f32 %v342_v48, %v341_v56  ;;  %v355_v56 = vld [vmem:[#allocation2 + $0x40] sm:$0xff] }
 0x18e   :  { %v344_v19 = vsub.f32 %v343_v53, %v1670_v26 }
 0x190   :  { %v350_v62 = vmul.f32 %v348_v44, %v344_v19 }
 0x192   :  { %v1738_v63 = vadd.f32 %v350_v62, %v1670_v26 }
 0x194   :  { %374 = vmatmul.f32.vlgmr.msrb.gmra.mxu2 %v1738_v63  ;;  %394 = vmatmul.f32.vlgmr.msrb.gmra.mxu3 %v1738_v63 }
 0x195   :  { %414 = vmatmul.f32.vlgmr.msra.gmra.mxu0 %v1738_v63  ;;  %640 = vmatpush.msrb.mxu2 %v1409_v12 }
 0x196   :  { %721 = vmatpush.msrb.mxu3 %v1374_v0  ;;  %741 = vmatpush.msra.mxu0 %v1376_v1  ;;  %v2074_v0 = vld [vmem:[#allocation11_spill] sm:$0xff]  ;;  %v2075_v1 = vld [vmem:[#allocation16_spill] sm:$0xff] }
 0x197   :  { %641 = vmatpush.msrb.mxu2 %v1414_v13  ;;  %v2082_v13 = vld [vmem:[#allocation19_spill] sm:$0xff] }
 0x198   :  { %722 = vmatpush.msrb.mxu3 %v1378_v2  ;;  %742 = vmatpush.msra.mxu0 %v1382_v3  ;;  %v2076_v2 = vld [vmem:[#allocation12_spill] sm:$0xff]  ;;  %v2077_v3 = vld [vmem:[#allocation13_spill] sm:$0xff] }
 0x199   :  { %642 = vmatpush.msrb.mxu2 %v1424_v16 }
 0x19a   :  { %723 = vmatpush.msrb.mxu3 %v1384_v4  ;;  %743 = vmatpush.msra.mxu0 %v1386_v5  ;;  %v2078_v4 = vld [vmem:[#allocation17_spill] sm:$0xff]  ;;  %v2079_v5 = vld [vmem:[#allocation14_spill] sm:$0xff] }
 0x19b   :  { %643 = vmatpush.msrb.mxu2 %v1434_v20 }
 0x19c   :  { %724 = vmatpush.msrb.mxu3 %v1391_v6  ;;  %744 = vmatpush.msra.mxu0 %v1393_v7  ;;  %v2080_v6 = vld [vmem:[#allocation15_spill] sm:$0xff]  ;;  %v353_v7 = vld [vmem:[#allocation2 + $0x30] sm:$0xff] }
 0x19d   :  { %644 = vmatpush.msrb.mxu2 %v1444_v23 }
 0x19e   :  { %725 = vmatpush.msrb.mxu3 %v1398_v8  ;;  %745 = vmatpush.msra.mxu0 %v1400_v9  ;;  %v354_v9 = vld [vmem:[#allocation2 + $0x38] sm:$0xff] }
 0x19f   :  { %645 = vmatpush.msrb.mxu2 %v1457_v27 }
 0x1a0   :  { %726 = vmatpush.msrb.mxu3 %v1405_v10  ;;  %746 = vmatpush.msra.mxu0 %v1407_v11  ;;  %v2081_v11 = vld [vmem:[#allocation18_spill] sm:$0xff] }
 0x1a1   :  { %646 = vmatpush.msrb.mxu2 %v1466_v30 }
 0x1a2   :  { %727 = vmatpush.msrb.mxu3 %v1416_v14  ;;  %747 = vmatpush.msra.mxu0 %v1418_v15 }
 0x1a3   :  { %647 = vmatpush.msrb.mxu2 %v1476_v33 }
 0x1a4   :  { %728 = vmatpush.msrb.mxu3 %v1426_v17  ;;  %748 = vmatpush.msra.mxu0 %v1428_v18 }
 0x1a5   :  { %648 = vmatpush.msrb.mxu2 %v1486_v36 }
 0x1a6   :  { %729 = vmatpush.msrb.mxu3 %v1436_v21  ;;  %749 = vmatpush.msra.mxu0 %v1438_v22 }
 0x1a7   :  { %649 = vmatpush.msrb.mxu2 %v1499_v40 }
 0x1a8   :  { %730 = vmatpush.msrb.mxu3 %v1446_v24  ;;  %750 = vmatpush.msra.mxu0 %v1448_v25 }
 0x1a9   :  { %650 = vmatpush.msrb.mxu2 %v1508_v43 }
 0x1aa   :  { %731 = vmatpush.msrb.mxu3 %v1459_v28  ;;  %751 = vmatpush.msra.mxu0 %v1461_v29 }
 0x1ab   :  { %651 = vmatpush.msrb.mxu2 %v1519_v46 }
 0x1ac   :  { %732 = vmatpush.msrb.mxu3 %v1468_v31  ;;  %752 = vmatpush.msra.mxu0 %v1470_v32 }
 0x1ad   :  { %652 = vmatpush.msrb.mxu2 %v1527_v49 }
 0x1ae   :  { %733 = vmatpush.msrb.mxu3 %v1478_v34  ;;  %753 = vmatpush.msra.mxu0 %v1480_v35 }
 0x1af   :  { %653 = vmatpush.msrb.mxu2 %v1531_v50 }
 0x1b0   :  { %734 = vmatpush.msrb.mxu3 %v1491_v38  ;;  %754 = vmatpush.msra.mxu0 %v2074_v0 }
 0x1b1   :  { %654 = vmatpush.msrb.mxu2 %v2075_v1 }
 0x1b2   :  { %735 = vmatpush.msrb.mxu3 %v2076_v2  ;;  %755 = vmatpush.msra.mxu0 %v2077_v3 }
 0x1b3   :  { %655 = vmatpush.msrb.mxu2 %v2078_v4 }
 0x1b4   :  { %736 = vmatpush.msrb.mxu3 %v2079_v5  ;;  %756 = vmatpush.msra.mxu0 %v2080_v6 }
 0x212   :  { %v415_v55 = vpop.f32.mrf.mxu0 }
 0x213   :  { %v416_v60 = vadd.f32 %v415_v55, %v1667_v51  ;;  %v1838_v55 = vld [vmem:[#allocation5 + $0x110] sm:$0xff] }
 0x217   :  { %v375_v8 = vpop.f32.mrf.mxu2  ;;  %v395_v10 = vpop.f32.mrf.mxu3 }
 0x218   :  { %v376_v12 = vadd.f32 %v375_v8, %v2081_v11  ;;  %v396_v14 = vadd.f32 %v395_v10, %v2082_v13 }
 0x21a   :  { %v418_v15 = vadd.f32 %v376_v12, %v353_v7  ;;  %v438_v17 = vadd.f32 %v396_v14, %v354_v9 }
 0x21c   :  { %v1103_v18 = vmul.f32 -1.442695, %v418_v15  ;;  %v1104_v21 = vmul.f32 -1.442695, %v438_v17 }
 0x21e   :  { %1150 = vpow2.f32 %v1103_v18 }
 0x21f   :  { %1152 = vpow2.f32 %v1104_v21 }
 0x224   :  { %v1151_v22 = vpop.eup %1150 }
 0x225   :  { %v1153_v24 = vpop.eup %1152  ;;  %v422_v25 = vadd.f32 1.0, %v1151_v22 }
 0x226   :  { %v442_v26 = vadd.f32 1.0, %v1153_v24  ;;  %v469_v24 = vpop.permute.xlu1 %468 }
 0x227   :  { %1154 = vrcp.f32 %v422_v25  ;;  %v434_v37 = vand.u32 2147483648, %v422_v25  ;;  %v432_v58 = vand.u32 2147483647, %v422_v25  ;;  %vm428_vm1 = vweird.f32 %v422_v25 }
 0x228   :  { %1156 = vrcp.f32 %v442_v26  ;;  %v454_v44 = vand.u32 2147483648, %v442_v26  ;;  %vm448_vm5 = vweird.f32 %v442_v26  ;;  %v452_v7 = vand.u32 2147483647, %v442_v26 }
 0x229   :  { %v435_v59 = vor.u32 1.1754944e-38, %v434_v37  ;;  %vm433_vm3 = vcmp.eq.f32.partialorder %v432_v58, 8.507059e+37  ;;  %v1821_v37 = vld [vmem:[#allocation5 + $0x138] sm:$0xff]  ;;  %v1831_v58 = vld [vmem:[#allocation5 + $0x128] sm:$0xff] }
 0x22a   :  { %v455_v10 = vor.u32 1.1754944e-38, %v454_v44  ;;  %vm453_vm7 = vcmp.eq.f32.partialorder %v452_v7, 8.507059e+37  ;;  %v1111_v7 = vld [vmem:[%s2034_s1 + $0x28] sm:$0xff] }
 0x22d   :  { %v1155_v39 = vpop.eup %1154 }
 0x22e   :  { %v1157_v45 = vpop.eup %1156  ;;  %v424_v61 = vmul.f32 %v1155_v39, %v422_v25  ;;  %vm429_vm0 = vweird.f32 %v1155_v39 }
 0x22f   :  { %v444_v54 = vmul.f32 %v1157_v45, %v442_v26  ;;  %vm430_vm2 = vmor %vm428_vm1, %vm429_vm0  ;;  %vm449_vm4 = vweird.f32 %v1157_v45  ;;  %v1802_v26 = vld [vmem:[#allocation5 + $0x178] sm:$0xff] }
 0x230   :  { %v425_v47 = vsub.f32 1.0, %v424_v61  ;;  %vm450_vm6 = vmor %vm448_vm5, %vm449_vm4  ;;  %v1808_v61 = vld [vmem:[#allocation5 + $0x170] sm:$0xff] }
 0x231   :  { %v445_v41 = vsub.f32 1.0, %v444_v54  ;;  %v1814_v54 = vld [vmem:[#allocation5 + $0x150] sm:$0xff] }
 0x232   :  { %v426_v42 = vmul.f32 %v1155_v39, %v425_v47  ;;  %v1817_v47 = vld [vmem:[#allocation5 + $0x158] sm:$0xff] }
 0x233   :  { %v446_v57 = vmul.f32 %v1157_v45, %v445_v41  ;;  %v1824_v41 = vld [vmem:[#allocation5 + $0x140] sm:$0xff] }
 0x234   :  { %v427_v52 = vadd.f32 %v1155_v39, %v426_v42  ;;  %v1828_v42 = vld [vmem:[#allocation5 + $0x120] sm:$0xff] }
 0x235   :  { %v447_v19 = vadd.f32 %v1157_v45, %v446_v57  ;;  %v1845_v57 = vld [vmem:[#allocation5 + $0xf8] sm:$0xff] }
 0x236   :  { %v431_v48 = vsel %vm430_vm2, %v1155_v39, %v427_v52  ;;  %v1852_v52 = vld [vmem:[#allocation5 + $0xe0] sm:$0xff] }
 0x237   :  { %v436_v53 = vsel %vm433_vm3, %v435_v59, %v431_v48  ;;  %v451_v9 = vsel %vm450_vm6, %v1157_v45, %v447_v19  ;;  %v1805_v45 = vld [vmem:[#allocation5 + $0x168] sm:$0xff]  ;;  %v1873_v48 = vld [vmem:[#allocation5 + $0x98] sm:$0xff] }
 0x238   :  { %v458_v62 = vmul.f32 %v436_v53, %v416_v60  ;;  %v456_v12 = vsel %vm453_vm7, %v455_v10, %v451_v9  ;;  %v1859_v59 = vld [vmem:[#allocation5 + $0xc8] sm:$0xff]  ;;  %v1866_v60 = vld [vmem:[#allocation5 + $0xb0] sm:$0xff] }
 0x239   :  { %v461_v14 = vsub.f32 1.0, %v456_v12  ;;  %v463_v18 = vmul.f32 %v456_v12, %v1738_v63 }
 0x23a   :  { %v459_v8 = vadd.f32 %v458_v62, %v355_v56 }
 0x23c   :  { %1158 = vtanh.f32 %v459_v8 }
 0x242   :  { %v1159_v15 = vpop.eup %1158 }
 0x243   :  { %v462_v17 = vmul.f32 %v1159_v15, %v461_v14  ;;  %v476_v14 = vld [vmem:[#allocation2 + $0x58] sm:$0xff] }
 0x245   :  { %v464_v21 = vadd.f32 %v463_v18, %v462_v17 }
 0x247   :  { %v465_v22 = vsub.f32 %v464_v21, %v1738_v63 }
 0x249   :  { %v471_v25 = vmul.f32 %v469_v24, %v465_v22 }
 0x24b   :  { %v1797_v39 = vadd.f32 %v471_v25, %v1738_v63  ;;  %v1811_v63 = vld [vmem:[#allocation5 + $0x160] sm:$0xff] }
 0x24d   :  { %495 = vmatmul.f32.vlgmr.msra.gmra.mxu1 %v1797_v39  ;;  %515 = vmatmul.f32.vlgmr.msra.gmra.mxu2 %v1797_v39 }
 0x24e   :  { %535 = vmatmul.f32.vlgmr.msra.gmra.mxu3 %v1797_v39  ;;  %761 = vmatpush.msra.mxu1 %v1802_v26 }
 0x24f   :  { %842 = vmatpush.msra.mxu2 %v1805_v45  ;;  %862 = vmatpush.msra.mxu3 %v1808_v61 }
 0x250   :  { %762 = vmatpush.msra.mxu1 %v1811_v63 }
 0x251   :  { %843 = vmatpush.msra.mxu2 %v1814_v54  ;;  %863 = vmatpush.msra.mxu3 %v1817_v47 }
 0x252   :  { %763 = vmatpush.msra.mxu1 %v1424_v16  ;;  %v1835_v16 = vld [vmem:[#allocation5 + $0x108] sm:$0xff] }
 0x253   :  { %844 = vmatpush.msra.mxu2 %v1821_v37  ;;  %864 = vmatpush.msra.mxu3 %v1824_v41 }
 0x254   :  { %764 = vmatpush.msra.mxu1 %v1434_v20  ;;  %v1842_v20 = vld [vmem:[#allocation5 + $0xf0] sm:$0xff] }
 0x255   :  { %845 = vmatpush.msra.mxu2 %v1828_v42  ;;  %865 = vmatpush.msra.mxu3 %v1831_v58 }
 0x256   :  { %765 = vmatpush.msra.mxu1 %v1444_v23  ;;  %v1849_v23 = vld [vmem:[#allocation5 + $0xd8] sm:$0xff] }
 0x257   :  { %846 = vmatpush.msra.mxu2 %v1835_v16  ;;  %866 = vmatpush.msra.mxu3 %v1838_v55 }
 0x258   :  { %766 = vmatpush.msra.mxu1 %v1457_v27  ;;  %v1856_v27 = vld [vmem:[#allocation5 + $0xc0] sm:$0xff] }
 0x259   :  { %847 = vmatpush.msra.mxu2 %v1842_v20  ;;  %867 = vmatpush.msra.mxu3 %v1845_v57 }
 0x25a   :  { %767 = vmatpush.msra.mxu1 %v1466_v30  ;;  %v1863_v30 = vld [vmem:[#allocation5 + $0xa8] sm:$0xff] }
 0x25b   :  { %848 = vmatpush.msra.mxu2 %v1849_v23  ;;  %868 = vmatpush.msra.mxu3 %v1852_v52 }
 0x25c   :  { %768 = vmatpush.msra.mxu1 %v1476_v33  ;;  %v1870_v33 = vld [vmem:[#allocation5 + $0x90] sm:$0xff] }
 0x25d   :  { %849 = vmatpush.msra.mxu2 %v1856_v27  ;;  %869 = vmatpush.msra.mxu3 %v1859_v59 }
 0x25e   :  { %769 = vmatpush.msra.mxu1 %v1486_v36 }
 0x25f   :  { %850 = vmatpush.msra.mxu2 %v1863_v30  ;;  %870 = vmatpush.msra.mxu3 %v1866_v60 }
 0x260   :  { %770 = vmatpush.msra.mxu1 %v1499_v40 }
 0x261   :  { %851 = vmatpush.msra.mxu2 %v1870_v33  ;;  %871 = vmatpush.msra.mxu3 %v1873_v48 }
 0x262   :  { %771 = vmatpush.msra.mxu1 %v1508_v43 }
 0x263   :  { %852 = vmatpush.msra.mxu2 %v1459_v28  ;;  %872 = vmatpush.msra.mxu3 %v1461_v29  ;;  %v474_v28 = vld [vmem:[#allocation2 + $0x48] sm:$0xff] }
 0x264   :  { %772 = vmatpush.msra.mxu1 %v1519_v46 }
 0x265   :  { %853 = vmatpush.msra.mxu2 %v1468_v31  ;;  %873 = vmatpush.msra.mxu3 %v1470_v32 }
 0x266   :  { %773 = vmatpush.msra.mxu1 %v1527_v49 }
 0x267   :  { %854 = vmatpush.msra.mxu2 %v1478_v34  ;;  %874 = vmatpush.msra.mxu3 %v1480_v35  ;;  %v475_v35 = vld [vmem:[#allocation2 + $0x50] sm:$0xff] }
 0x268   :  { %774 = vmatpush.msra.mxu1 %v1531_v50 }
 0x269   :  { %855 = vmatpush.msra.mxu2 %v1491_v38  ;;  %875 = vmatpush.msra.mxu3 %v2074_v0 }
 0x26a   :  { %775 = vmatpush.msra.mxu1 %v2075_v1 }
 0x26b   :  { %856 = vmatpush.msra.mxu2 %v2076_v2  ;;  %876 = vmatpush.msra.mxu3 %v2077_v3  ;;  %v1108_v3 = vld [vmem:[%s2034_s1 + $0x20] sm:$0xff]  ;;  %s1342_s1 = smov [#allocation7]  }
 0x26c   :  { %776 = vmatpush.msra.mxu1 %v2078_v4  ;;  %710 = vperm.xlu2 %1129, %v1108_v3   ;;  %v1257_v3 = vld [vmem:[#allocation5 + $0x8] sm:$0xff]  ;;  %s1084_s16 = sshll.u32 %s1342_s1, 4  ;;  %s1085_s16 = int_to_ptr.vmem [resolvable:$true] %s1084_s16 }
 0x26d   :  { %857 = vmatpush.msra.mxu2 %v2079_v5  ;;  %877 = vmatpush.msra.mxu3 %v2080_v6 }
 0x274   :  { %831 = vperm.xlu2 %1129, %v1111_v7  }
 0x2ca   :  { %v496_v29 = vpop.f32.mrf.mxu1 }
 0x2cb   :  { %v497_v31 = vadd.f32 %v496_v29, %v2081_v11 }
 0x2cd   :  { %v539_v32 = vadd.f32 %v497_v31, %v474_v28 }
 0x2cf   :  { %v1106_v34 = vmul.f32 -1.442695, %v539_v32 }
 0x2d0   :  { %v516_v36 = vpop.f32.mrf.mxu2 }
 0x2d1   :  { %1160 = vpow2.f32 %v1106_v34  ;;  %v517_v38 = vadd.f32 %v516_v36, %v2082_v13  ;;  %v536_v19 = vpop.f32.mrf.mxu3 }
 0x2d2   :  { %v537_v10 = vadd.f32 %v536_v19, %v1667_v51 }
 0x2d3   :  { %v559_v40 = vadd.f32 %v517_v38, %v475_v35 }
 0x2d5   :  { %v1107_v43 = vmul.f32 -1.442695, %v559_v40 }
 0x2d7   :  { %v1161_v46 = vpop.eup %1160  ;;  %1162 = vpow2.f32 %v1107_v43  ;;  %v590_v43 = vpop.permute.xlu1 %589 }
 0x2d8   :  { %v543_v49 = vadd.f32 1.0, %v1161_v46 }
 0x2da   :  { %1164 = vrcp.f32 %v543_v49  ;;  %v555_v5 = vand.u32 2147483648, %v543_v49  ;;  %v553_v56 = vand.u32 2147483647, %v543_v49  ;;  %vm549_vm9 = vweird.f32 %v543_v49 }
 0x2dc   :  { %v556_v8 = vor.u32 1.1754944e-38, %v555_v5  ;;  %vm554_vm11 = vcmp.eq.f32.partialorder %v553_v56, 8.507059e+37 }
 0x2dd   :  { %v1163_v50 = vpop.eup %1162 }
 0x2de   :  { %v563_v0 = vadd.f32 1.0, %v1163_v50  ;;  %v1922_v50 = vld [vmem:[#allocation5 + $0x130] sm:$0xff] }
 0x2e0   :  { %v1165_v1 = vpop.eup %1164  ;;  %1166 = vrcp.f32 %v563_v0  ;;  %v575_v18 = vand.u32 2147483648, %v563_v0  ;;  %v573_v22 = vand.u32 2147483647, %v563_v0  ;;  %vm569_vm13 = vweird.f32 %v563_v0 }
 0x2e1   :  { %v545_v2 = vmul.f32 %v1165_v1, %v543_v49  ;;  %vm550_vm8 = vweird.f32 %v1165_v1 }
 0x2e2   :  { %vm551_vm10 = vmor %vm549_vm9, %vm550_vm8  ;;  %v576_v28 = vor.u32 1.1754944e-38, %v575_v18  ;;  %vm574_vm15 = vcmp.eq.f32.partialorder %v573_v22, 8.507059e+37 }
 0x2e3   :  { %v546_v4 = vsub.f32 1.0, %v545_v2  ;;  %v1256_v2 = vld [vmem:[#allocation5] sm:$0xff] }
 0x2e5   :  { %v547_v6 = vmul.f32 %v1165_v1, %v546_v4  ;;  %v595_v4 = vld [vmem:[#allocation2 + $0x60] sm:$0xff] }
 0x2e6   :  { %v1167_v53 = vpop.eup %1166 }
 0x2e7   :  { %v565_v44 = vmul.f32 %v1167_v53, %v563_v0  ;;  %v548_v62 = vadd.f32 %v1165_v1, %v547_v6  ;;  %vm570_vm12 = vweird.f32 %v1167_v53  ;;  %v1254_v0 = vld [vmem:[#allocation5 + $0x20] sm:$0xff]  ;;  %v596_v6 = vld [vmem:[#allocation2 + $0x68] sm:$0xff] }
 0x2e8   :  { %vm571_vm14 = vmor %vm569_vm13, %vm570_vm12 }
 0x2e9   :  { %v566_v9 = vsub.f32 1.0, %v565_v44  ;;  %v552_v12 = vsel %vm551_vm10, %v1165_v1, %v548_v62  ;;  %v1972_v1 = vld [vmem:[#allocation5 + $0x10] sm:$0xff] }
 0x2ea   :  { %v557_v15 = vsel %vm554_vm11, %v556_v8, %v552_v12 }
 0x2eb   :  { %v567_v17 = vmul.f32 %v1167_v53, %v566_v9  ;;  %v579_v21 = vmul.f32 %v557_v15, %v537_v10 }
 0x2ed   :  { %v568_v24 = vadd.f32 %v1167_v53, %v567_v17  ;;  %v580_v25 = vadd.f32 %v579_v21, %v476_v14 }
 0x2ef   :  { %v572_v29 = vsel %vm571_vm14, %v1167_v53, %v568_v24  ;;  %1168 = vtanh.f32 %v580_v25 }
 0x2f0   :  { %v577_v31 = vsel %vm574_vm15, %v576_v28, %v572_v29 }
 0x2f1   :  { %v582_v32 = vsub.f32 1.0, %v577_v31  ;;  %v584_v36 = vmul.f32 %v577_v31, %v1797_v39 }
 0x2f5   :  { %v1169_v34 = vpop.eup %1168 }
 0x2f6   :  { %v583_v35 = vmul.f32 %v1169_v34, %v582_v32 }
 0x2f8   :  { %v585_v38 = vadd.f32 %v584_v36, %v583_v35 }
 0x2fa   :  { %v586_v40 = vsub.f32 %v585_v38, %v1797_v39 }
 0x2fc   :  { %v592_v46 = vmul.f32 %v590_v43, %v586_v40  ;;  %v597_v40 = vld [vmem:[#allocation2 + $0x70] sm:$0xff] }
 0x2fe   :  { %v1906_v49 = vadd.f32 %v592_v46, %v1797_v39  ;;  %v1917_v39 = vld [vmem:[#allocation5 + $0x148] sm:$0xff] }
 0x300   :  { %616 = vmatmul.f32.vlgmr.msrb.gmra.mxu0 %v1906_v49  ;;  %636 = vmatmul.f32.vlgmr.msrb.gmra.mxu1 %v1906_v49 }
 0x301   :  { %656 = vmatmul.f32.vlgmr.msrb.gmra.mxu2 %v1906_v49  ;;  %882 = vmatpush.msrb.mxu0 %v1802_v26 }
 0x302   :  { %963 = vmatpush.msrb.mxu1 %v1805_v45  ;;  %983 = vmatpush.msrb.mxu2 %v1808_v61  ;;  %v1927_v45 = vld [vmem:[#allocation5 + $0x118] sm:$0xff]  ;;  %v1932_v61 = vld [vmem:[#allocation5 + $0x100] sm:$0xff] }
 0x303   :  { %883 = vmatpush.msrb.mxu0 %v1811_v63 }
 0x304   :  { %964 = vmatpush.msrb.mxu1 %v1814_v54  ;;  %984 = vmatpush.msrb.mxu2 %v1817_v47  ;;  %v1937_v54 = vld [vmem:[#allocation5 + $0xe8] sm:$0xff]  ;;  %v1942_v47 = vld [vmem:[#allocation5 + $0xd0] sm:$0xff] }
 0x305   :  { %884 = vmatpush.msrb.mxu0 %v1917_v39 }
 0x306   :  { %965 = vmatpush.msrb.mxu1 %v1821_v37  ;;  %985 = vmatpush.msrb.mxu2 %v1824_v41  ;;  %v1947_v37 = vld [vmem:[#allocation5 + $0xb8] sm:$0xff]  ;;  %v1952_v41 = vld [vmem:[#allocation5 + $0xa0] sm:$0xff] }
 0x307   :  { %885 = vmatpush.msrb.mxu0 %v1922_v50 }
 0x308   :  { %966 = vmatpush.msrb.mxu1 %v1828_v42  ;;  %986 = vmatpush.msrb.mxu2 %v1831_v58  ;;  %v1957_v42 = vld [vmem:[#allocation5 + $0x88] sm:$0xff]  ;;  %v1241_v58 = vld [vmem:[#allocation5 + $0x78] sm:$0xff] }
 0x309   :  { %886 = vmatpush.msrb.mxu0 %v1927_v45 }
 0x30a   :  { %967 = vmatpush.msrb.mxu1 %v1835_v16  ;;  %987 = vmatpush.msrb.mxu2 %v1838_v55  ;;  %v1242_v16 = vld [vmem:[#allocation5 + $0x80] sm:$0xff]  ;;  %v1960_v55 = vld [vmem:[#allocation5 + $0x70] sm:$0xff] }
 0x30b   :  { %887 = vmatpush.msrb.mxu0 %v1932_v61 }
 0x30c   :  { %968 = vmatpush.msrb.mxu1 %v1842_v20  ;;  %988 = vmatpush.msrb.mxu2 %v1845_v57  ;;  %v1244_v20 = vld [vmem:[#allocation5 + $0x60] sm:$0xff]  ;;  %v1245_v57 = vld [vmem:[#allocation5 + $0x68] sm:$0xff] }
 0x30d   :  { %888 = vmatpush.msrb.mxu0 %v1937_v54 }
 0x30e   :  { %969 = vmatpush.msrb.mxu1 %v1849_v23  ;;  %989 = vmatpush.msrb.mxu2 %v1852_v52  ;;  %v1963_v23 = vld [vmem:[#allocation5 + $0x58] sm:$0xff]  ;;  %v1247_v52 = vld [vmem:[#allocation5 + $0x48] sm:$0xff] }
 0x30f   :  { %889 = vmatpush.msrb.mxu0 %v1942_v47 }
 0x310   :  { %970 = vmatpush.msrb.mxu1 %v1856_v27  ;;  %990 = vmatpush.msrb.mxu2 %v1859_v59  ;;  %v1248_v27 = vld [vmem:[#allocation5 + $0x50] sm:$0xff]  ;;  %v1966_v59 = vld [vmem:[#allocation5 + $0x40] sm:$0xff] }
 0x311   :  { %890 = vmatpush.msrb.mxu0 %v1947_v37 }
 0x312   :  { %971 = vmatpush.msrb.mxu1 %v1863_v30  ;;  %991 = vmatpush.msrb.mxu2 %v1866_v60  ;;  %v1250_v30 = vld [vmem:[#allocation5 + $0x30] sm:$0xff]  ;;  %v1251_v60 = vld [vmem:[#allocation5 + $0x38] sm:$0xff] }
 0x313   :  { %891 = vmatpush.msrb.mxu0 %v1952_v41 }
 0x314   :  { %972 = vmatpush.msrb.mxu1 %v1870_v33  ;;  %992 = vmatpush.msrb.mxu2 %v1873_v48  ;;  %v1969_v33 = vld [vmem:[#allocation5 + $0x28] sm:$0xff]  ;;  %v1253_v48 = vld [vmem:[#allocation5 + $0x18] sm:$0xff] }
 0x315   :  { %892 = vmatpush.msrb.mxu0 %v1957_v42 }
 0x316   :  { %973 = vmatpush.msrb.mxu1 %v1241_v58  ;;  %993 = vmatpush.msrb.mxu2 %v1242_v16 }
 0x317   :  { %893 = vmatpush.msrb.mxu0 %v1960_v55 }
 0x318   :  { %974 = vmatpush.msrb.mxu1 %v1244_v20  ;;  %994 = vmatpush.msrb.mxu2 %v1245_v57 }
 0x319   :  { %894 = vmatpush.msrb.mxu0 %v1963_v23 }
 0x31a   :  { %975 = vmatpush.msrb.mxu1 %v1247_v52  ;;  %995 = vmatpush.msrb.mxu2 %v1248_v27 }
 0x31b   :  { %895 = vmatpush.msrb.mxu0 %v1966_v59 }
 0x31c   :  { %976 = vmatpush.msrb.mxu1 %v1250_v30  ;;  %996 = vmatpush.msrb.mxu2 %v1251_v60 }
 0x31d   :  { %896 = vmatpush.msrb.mxu0 %v1969_v33 }
 0x31e   :  { %977 = vmatpush.msrb.mxu1 %v1253_v48  ;;  %997 = vmatpush.msrb.mxu2 %v1254_v0 }
 0x31f   :  { %897 = vmatpush.msrb.mxu0 %v1972_v1 }
 0x320   :  { %978 = vmatpush.msrb.mxu1 %v1256_v2  ;;  %998 = vmatpush.msrb.mxu2 %v1257_v3 }
 0x37d   :  { %v617_v5 = vpop.f32.mrf.mxu0  ;;  %v637_v56 = vpop.f32.mrf.mxu1 }
 0x37e   :  { %v618_v53 = vadd.f32 %v617_v5, %v2081_v11  ;;  %v638_v19 = vadd.f32 %v637_v56, %v2082_v13  ;;  %v711_v5 = vpop.permute.xlu2 %710 }
 0x380   :  { %v660_v44 = vadd.f32 %v618_v53, %v595_v4  ;;  %v680_v62 = vadd.f32 %v638_v19, %v596_v6 }
 0x382   :  { %v1109_v7 = vmul.f32 -1.442695, %v660_v44  ;;  %v1110_v8 = vmul.f32 -1.442695, %v680_v62 }
 0x384   :  { %1170 = vpow2.f32 %v1109_v7  ;;  %v657_v31 = vpop.f32.mrf.mxu2 }
 0x385   :  { %1172 = vpow2.f32 %v1110_v8  ;;  %v658_v36 = vadd.f32 %v657_v31, %v1667_v51 }
 0x38a   :  { %v1171_v9 = vpop.eup %1170 }
 0x38b   :  { %v1173_v10 = vpop.eup %1172  ;;  %v664_v12 = vadd.f32 1.0, %v1171_v9 }
 0x38c   :  { %v684_v14 = vadd.f32 1.0, %v1173_v10 }
 0x38d   :  { %1174 = vrcp.f32 %v664_v12  ;;  %v676_v24 = vand.u32 2147483648, %v664_v12  ;;  %v674_v29 = vand.u32 2147483647, %v664_v12  ;;  %vm670_vm1 = vweird.f32 %v664_v12 }
 0x38e   :  { %1176 = vrcp.f32 %v684_v14  ;;  %v696_v16 = vand.u32 2147483648, %v684_v14  ;;  %vm690_vm5 = vweird.f32 %v684_v14  ;;  %v694_v20 = vand.u32 2147483647, %v684_v14 }
 0x38f   :  { %v677_v35 = vor.u32 1.1754944e-38, %v676_v24  ;;  %vm675_vm3 = vcmp.eq.f32.partialorder %v674_v29, 8.507059e+37 }
 0x390   :  { %v697_v27 = vor.u32 1.1754944e-38, %v696_v16  ;;  %vm695_vm7 = vcmp.eq.f32.partialorder %v694_v20, 8.507059e+37 }
 0x393   :  { %v1175_v15 = vpop.eup %1174 }
 0x394   :  { %v1177_v17 = vpop.eup %1176  ;;  %v666_v18 = vmul.f32 %v1175_v15, %v664_v12  ;;  %vm671_vm0 = vweird.f32 %v1175_v15 }
 0x395   :  { %v686_v21 = vmul.f32 %v1177_v17, %v684_v14  ;;  %vm672_vm2 = vmor %vm670_vm1, %vm671_vm0  ;;  %vm691_vm4 = vweird.f32 %v1177_v17 }
 0x396   :  { %v667_v22 = vsub.f32 1.0, %v666_v18  ;;  %vm692_vm6 = vmor %vm690_vm5, %vm691_vm4 }
 0x397   :  { %v687_v25 = vsub.f32 1.0, %v686_v21  ;;  %v718_v21 = vld [vmem:[#allocation2 + $0x88] sm:$0xff] }
 0x398   :  { %v668_v28 = vmul.f32 %v1175_v15, %v667_v22 }
 0x399   :  { %v688_v32 = vmul.f32 %v1177_v17, %v687_v25 }
 0x39a   :  { %v669_v34 = vadd.f32 %v1175_v15, %v668_v28 }
 0x39b   :  { %v689_v46 = vadd.f32 %v1177_v17, %v688_v32 }
 0x39c   :  { %v673_v38 = vsel %vm672_vm2, %v1175_v15, %v669_v34 }
 0x39d   :  { %v678_v43 = vsel %vm675_vm3, %v677_v35, %v673_v38  ;;  %v693_v52 = vsel %vm692_vm6, %v1177_v17, %v689_v46 }
 0x39e   :  { %v700_v58 = vmul.f32 %v678_v43, %v658_v36  ;;  %v698_v30 = vsel %vm695_vm7, %v697_v27, %v693_v52  ;;  %v838_v27 = vld [vmem:[#allocation2 + $0x98] sm:$0xff] }
 0x39f   :  { %v703_v60 = vsub.f32 1.0, %v698_v30  ;;  %v705_v2 = vmul.f32 %v698_v30, %v1906_v49 }
 0x3a0   :  { %v701_v57 = vadd.f32 %v700_v58, %v597_v40  ;;  %v832_v58 = vpop.permute.xlu2 %831 }
 0x3a2   :  { %1178 = vtanh.f32 %v701_v57  ;;  %v837_v57 = vld [vmem:[#allocation2 + $0x90] sm:$0xff] }
 0x3a8   :  { %v1179_v48 = vpop.eup %1178 }
 0x3a9   :  { %v704_v0 = vmul.f32 %v1179_v48, %v703_v60 }
 0x3ab   :  { %v706_v3 = vadd.f32 %v705_v2, %v704_v0 }
 0x3ad   :  { %v707_v4 = vsub.f32 %v706_v3, %v1906_v49 }
 0x3af   :  { %v713_v6 = vmul.f32 %v711_v5, %v707_v4 }
 0x3b1   :  { %v1981_v56 = vadd.f32 %v713_v6, %v1906_v49 }
 0x3b3   :  { %737 = vmatmul.f32.vlgmr.msrb.gmra.mxu3 %v1981_v56  ;;  %757 = vmatmul.f32.vlgmr.msra.gmra.mxu0 %v1981_v56 }
 0x3b4   :  { %777 = vmatmul.f32.vlgmr.msra.gmra.mxu1 %v1981_v56  ;;  %1003 = vmatpush.msrb.mxu3 %v1802_v26  ;;  %v717_v26 = vld [vmem:[#allocation2 + $0x80] sm:$0xff] }
 0x3b6   :  { %1004 = vmatpush.msrb.mxu3 %v1811_v63 }
 0x3b8   :  { %1005 = vmatpush.msrb.mxu3 %v1917_v39 }
 0x3ba   :  { %1006 = vmatpush.msrb.mxu3 %v1922_v50 }
 0x3bc   :  { %1007 = vmatpush.msrb.mxu3 %v1927_v45  ;;  %v716_v45 = vld [vmem:[#allocation2 + $0x78] sm:$0xff] }
 0x3be   :  { %1008 = vmatpush.msrb.mxu3 %v1932_v61 }
 0x3c0   :  { %1009 = vmatpush.msrb.mxu3 %v1937_v54 }
 0x3c2   :  { %1010 = vmatpush.msrb.mxu3 %v1942_v47 }
 0x3c4   :  { %1011 = vmatpush.msrb.mxu3 %v1947_v37 }
 0x3c6   :  { %1012 = vmatpush.msrb.mxu3 %v1952_v41 }
 0x3c8   :  { %1013 = vmatpush.msrb.mxu3 %v1957_v42 }
 0x3ca   :  { %1014 = vmatpush.msrb.mxu3 %v1960_v55 }
 0x3cc   :  { %1015 = vmatpush.msrb.mxu3 %v1963_v23 }
 0x3ce   :  { %1016 = vmatpush.msrb.mxu3 %v1966_v59 }
 0x3d0   :  { %1017 = vmatpush.msrb.mxu3 %v1969_v33 }
 0x3d2   :  { %1018 = vmatpush.msrb.mxu3 %v1972_v1 }
 0x430   :  { %v758_v63 = vpop.f32.mrf.mxu0 }
 0x431   :  { %v759_v49 = vadd.f32 %v758_v63, %v2082_v13  ;;  %v778_v10 = vpop.f32.mrf.mxu1 }
 0x432   :  { %v779_v15 = vadd.f32 %v778_v10, %v1667_v51 }
 0x433   :  { %v801_v39 = vadd.f32 %v759_v49, %v717_v26 }
 0x435   :  { %v1113_v50 = vmul.f32 -1.442695, %v801_v39 }
 0x436   :  { %v738_v61 = vpop.f32.mrf.mxu3 }
 0x437   :  { %1180 = vpow2.f32 %v1113_v50  ;;  %v739_v54 = vadd.f32 %v738_v61, %v2081_v11 }
 0x439   :  { %v781_v47 = vadd.f32 %v739_v54, %v716_v45 }
 0x43b   :  { %v1112_v37 = vmul.f32 -1.442695, %v781_v47 }
 0x43d   :  { %v1181_v41 = vpop.eup %1180  ;;  %1182 = vpow2.f32 %v1112_v37 }
 0x43e   :  { %v805_v42 = vadd.f32 1.0, %v1181_v41 }
 0x440   :  { %1184 = vrcp.f32 %v805_v42  ;;  %v817_v24 = vand.u32 2147483648, %v805_v42  ;;  %vm811_vm13 = vweird.f32 %v805_v42  ;;  %v815_v28 = vand.u32 2147483647, %v805_v42 }
 0x442   :  { %v818_v32 = vor.u32 1.1754944e-38, %v817_v24  ;;  %vm816_vm15 = vcmp.eq.f32.partialorder %v815_v28, 8.507059e+37  ;;  %v953_v24 = vpop.permute.xlu0 %952 }
 0x443   :  { %v1183_v55 = vpop.eup %1182 }
 0x444   :  { %v785_v23 = vadd.f32 1.0, %v1183_v55 }
 0x446   :  { %1186 = vrcp.f32 %v785_v23  ;;  %v1185_v59 = vpop.eup %1184  ;;  %v797_v62 = vand.u32 2147483648, %v785_v23  ;;  %v795_v8 = vand.u32 2147483647, %v785_v23  ;;  %vm791_vm9 = vweird.f32 %v785_v23 }
 0x447   :  { %v807_v33 = vmul.f32 %v1185_v59, %v805_v42  ;;  %vm812_vm12 = vweird.f32 %v1185_v59 }
 0x448   :  { %v798_v14 = vor.u32 1.1754944e-38, %v797_v62  ;;  %vm796_vm11 = vcmp.eq.f32.partialorder %v795_v8, 8.507059e+37  ;;  %vm813_vm14 = vmor %vm811_vm13, %vm812_vm12 }
 0x449   :  { %v808_v19 = vsub.f32 1.0, %v807_v33 }
 0x44b   :  { %v809_v9 = vmul.f32 %v1185_v59, %v808_v19 }
 0x44c   :  { %v1187_v1 = vpop.eup %1186 }
 0x44d   :  { %v787_v53 = vmul.f32 %v1187_v1, %v785_v23  ;;  %vm792_vm8 = vweird.f32 %v1187_v1  ;;  %v810_v18 = vadd.f32 %v1185_v59, %v809_v9 }
 0x44e   :  { %vm793_vm10 = vmor %vm791_vm9, %vm792_vm8 }
 0x44f   :  { %v788_v44 = vsub.f32 1.0, %v787_v53  ;;  %v814_v31 = vsel %vm813_vm14, %v1185_v59, %v810_v18 }
 0x450   :  { %v819_v34 = vsel %vm816_vm15, %v818_v32, %v814_v31 }
 0x451   :  { %v789_v7 = vmul.f32 %v1187_v1, %v788_v44  ;;  %v824_v35 = vsub.f32 1.0, %v819_v34  ;;  %v826_v38 = vmul.f32 %v819_v34, %v1981_v56 }
 0x453   :  { %v790_v12 = vadd.f32 %v1187_v1, %v789_v7 }
 0x455   :  { %v794_v17 = vsel %vm793_vm10, %v1187_v1, %v790_v12  ;;  %v839_v1 = vld [vmem:[#allocation2 + $0xa0] sm:$0xff] }
 0x456   :  { %v799_v22 = vsel %vm796_vm11, %v798_v14, %v794_v17 }
 0x457   :  { %v821_v25 = vmul.f32 %v799_v22, %v779_v15 }
 0x459   :  { %v822_v29 = vadd.f32 %v821_v25, %v718_v21 }
 0x45b   :  { %1188 = vtanh.f32 %v822_v29  ;;  %v958_v29 = vld [vmem:[#allocation2 + $0xa8] sm:$0xff] }
 0x461   :  { %v1189_v36 = vpop.eup %1188 }
 0x462   :  { %v825_v40 = vmul.f32 %v1189_v36, %v824_v35  ;;  %v959_v36 = vld [vmem:[#allocation2 + $0xb0] sm:$0xff] }
 0x464   :  { %v827_v43 = vadd.f32 %v826_v38, %v825_v40 }
 0x466   :  { %v828_v46 = vsub.f32 %v827_v43, %v1981_v56 }
 0x468   :  { %v834_v16 = vmul.f32 %v832_v58, %v828_v46 }
 0x46a   :  { %v2008_v20 = vadd.f32 %v834_v16, %v1981_v56 }
 0x46c   :  { %858 = vmatmul.f32.vlgmr.msra.gmra.mxu2 %v2008_v20  ;;  %878 = vmatmul.f32.vlgmr.msra.gmra.mxu3 %v2008_v20 }
 0x46d   :  { %898 = vmatmul.f32.vlgmr.msrb.gmra.mxu0 %v2008_v20 }
 0x4ea   :  { %v899_v41 = vpop.f32.mrf.mxu0 }
 0x4eb   :  { %v900_v59 = vadd.f32 %v899_v41, %v1667_v51 }
 0x4ef   :  { %v859_v52 = vpop.f32.mrf.mxu2  ;;  %v879_v30 = vpop.f32.mrf.mxu3 }
 0x4f0   :  { %v860_v60 = vadd.f32 %v859_v52, %v2081_v11  ;;  %v880_v48 = vadd.f32 %v879_v30, %v2082_v13 }
 0x4f2   :  { %v902_v0 = vadd.f32 %v860_v60, %v837_v57  ;;  %v922_v2 = vadd.f32 %v880_v48, %v838_v27 }
 0x4f4   :  { %v1115_v3 = vmul.f32 -1.442695, %v902_v0  ;;  %v1116_v4 = vmul.f32 -1.442695, %v922_v2 }
 0x4f6   :  { %1190 = vpow2.f32 %v1115_v3 }
 0x4f7   :  { %1192 = vpow2.f32 %v1116_v4 }
 0x4fc   :  { %v1191_v5 = vpop.eup %1190 }
 0x4fd   :  { %v1193_v6 = vpop.eup %1192  ;;  %v906_v56 = vadd.f32 1.0, %v1191_v5 }
 0x4fe   :  { %v926_v26 = vadd.f32 1.0, %v1193_v6 }
 0x4ff   :  { %1194 = vrcp.f32 %v906_v56  ;;  %v918_v61 = vand.u32 2147483648, %v906_v56  ;;  %v916_v37 = vand.u32 2147483647, %v906_v56  ;;  %vm912_vm1 = vweird.f32 %v906_v56 }
 0x500   :  { %1196 = vrcp.f32 %v926_v26  ;;  %v938_v62 = vand.u32 2147483648, %v926_v26  ;;  %vm932_vm5 = vweird.f32 %v926_v26  ;;  %v936_v7 = vand.u32 2147483647, %v926_v26 }
 0x501   :  { %v919_v23 = vor.u32 1.1754944e-38, %v918_v61  ;;  %vm917_vm3 = vcmp.eq.f32.partialorder %v916_v37, 8.507059e+37 }
 0x502   :  { %v939_v10 = vor.u32 1.1754944e-38, %v938_v62  ;;  %vm937_vm7 = vcmp.eq.f32.partialorder %v936_v7, 8.507059e+37 }
 0x505   :  { %v1195_v63 = vpop.eup %1194 }
 0x506   :  { %v1197_v49 = vpop.eup %1196  ;;  %v908_v39 = vmul.f32 %v1195_v63, %v906_v56  ;;  %vm913_vm0 = vweird.f32 %v1195_v63 }
 0x507   :  { %v928_v50 = vmul.f32 %v1197_v49, %v926_v26  ;;  %vm914_vm2 = vmor %vm912_vm1, %vm913_vm0  ;;  %vm933_vm4 = vweird.f32 %v1197_v49  ;;  %v960_v26 = vld [vmem:[#allocation2 + $0xb8] sm:$0xff] }
 0x508   :  { %v909_v45 = vsub.f32 1.0, %v908_v39  ;;  %vm934_vm6 = vmor %vm932_vm5, %vm933_vm4 }
 0x509   :  { %v929_v54 = vsub.f32 1.0, %v928_v50 }
 0x50a   :  { %v910_v47 = vmul.f32 %v1195_v63, %v909_v45 }
 0x50b   :  { %v930_v42 = vmul.f32 %v1197_v49, %v929_v54 }
 0x50c   :  { %v911_v55 = vadd.f32 %v1195_v63, %v910_v47 }
 0x50d   :  { %v931_v19 = vadd.f32 %v1197_v49, %v930_v42 }
 0x50e   :  { %v915_v33 = vsel %vm914_vm2, %v1195_v63, %v911_v55 }
 0x50f   :  { %v920_v53 = vsel %vm917_vm3, %v919_v23, %v915_v33  ;;  %v935_v9 = vsel %vm934_vm6, %v1197_v49, %v931_v19 }
 0x510   :  { %v942_v44 = vmul.f32 %v920_v53, %v900_v59  ;;  %v940_v12 = vsel %vm937_vm7, %v939_v10, %v935_v9 }
 0x511   :  { %v945_v14 = vsub.f32 1.0, %v940_v12  ;;  %v947_v18 = vmul.f32 %v940_v12, %v2008_v20 }
 0x512   :  { %v943_v8 = vadd.f32 %v942_v44, %v839_v1  ;;  %v1074_v1 = vpop.permute.xlu1 %1073 }
 0x514   :  { %1198 = vtanh.f32 %v943_v8 }
 0x51a   :  { %v1199_v15 = vpop.eup %1198 }
 0x51b   :  { %v946_v17 = vmul.f32 %v1199_v15, %v945_v14 }
 0x51d   :  { %v948_v21 = vadd.f32 %v947_v18, %v946_v17 }
 0x51f   :  { %v949_v22 = vsub.f32 %v948_v21, %v2008_v20 }
 0x521   :  { %v955_v25 = vmul.f32 %v953_v24, %v949_v22 }
 0x523   :  { %v2019_v28 = vadd.f32 %v955_v25, %v2008_v20 }
 0x525   :  { %979 = vmatmul.f32.vlgmr.msrb.gmra.mxu1 %v2019_v28  ;;  %999 = vmatmul.f32.vlgmr.msrb.gmra.mxu2 %v2019_v28 }
 0x526   :  { %1019 = vmatmul.f32.vlgmr.msrb.gmra.mxu3 %v2019_v28 }
 0x5a2   :  { %v980_v31 = vpop.f32.mrf.mxu1 }
 0x5a3   :  { %v981_v32 = vadd.f32 %v980_v31, %v2081_v11 }
 0x5a5   :  { %v1023_v34 = vadd.f32 %v981_v32, %v958_v29 }
 0x5a7   :  { %v1118_v35 = vmul.f32 -1.442695, %v1023_v34 }
 0x5a8   :  { %v1000_v38 = vpop.f32.mrf.mxu2 }
 0x5a9   :  { %1200 = vpow2.f32 %v1118_v35  ;;  %v1001_v40 = vadd.f32 %v1000_v38, %v2082_v13  ;;  %v1020_v2 = vpop.f32.mrf.mxu3 }
 0x5aa   :  { %v1021_v6 = vadd.f32 %v1020_v2, %v1667_v51 }
 0x5ab   :  { %v1043_v43 = vadd.f32 %v1001_v40, %v959_v36 }
 0x5ad   :  { %v1119_v46 = vmul.f32 -1.442695, %v1043_v43 }
 0x5af   :  { %v1201_v58 = vpop.eup %1200  ;;  %1202 = vpow2.f32 %v1119_v46 }
 0x5b0   :  { %v1027_v16 = vadd.f32 1.0, %v1201_v58 }
 0x5b2   :  { %1204 = vrcp.f32 %v1027_v16  ;;  %v1039_v11 = vand.u32 2147483648, %v1027_v16  ;;  %v1037_v48 = vand.u32 2147483647, %v1027_v16  ;;  %vm1033_vm9 = vweird.f32 %v1027_v16 }
 0x5b4   :  { %v1040_v4 = vor.u32 1.1754944e-38, %v1039_v11  ;;  %vm1038_vm11 = vcmp.eq.f32.partialorder %v1037_v48, 8.507059e+37 }
 0x5b5   :  { %v1203_v20 = vpop.eup %1202 }
 0x5b6   :  { %v1047_v57 = vadd.f32 1.0, %v1203_v20 }
 0x5b8   :  { %v1205_v52 = vpop.eup %1204  ;;  %1206 = vrcp.f32 %v1047_v57  ;;  %v1059_v39 = vand.u32 2147483648, %v1047_v57  ;;  %v1057_v45 = vand.u32 2147483647, %v1047_v57  ;;  %vm1053_vm13 = vweird.f32 %v1047_v57 }
 0x5b9   :  { %v1029_v27 = vmul.f32 %v1205_v52, %v1027_v16  ;;  %vm1034_vm8 = vweird.f32 %v1205_v52 }
 0x5ba   :  { %vm1035_vm10 = vmor %vm1033_vm9, %vm1034_vm8  ;;  %v1060_v47 = vor.u32 1.1754944e-38, %v1059_v39  ;;  %vm1058_vm15 = vcmp.eq.f32.partialorder %v1057_v45, 8.507059e+37 }
 0x5bb   :  { %v1030_v30 = vsub.f32 1.0, %v1029_v27 }
 0x5bd   :  { %v1031_v60 = vmul.f32 %v1205_v52, %v1030_v30 }
 0x5be   :  { %v1207_v0 = vpop.eup %1206 }
 0x5bf   :  { %v1049_v3 = vmul.f32 %v1207_v0, %v1047_v57  ;;  %v1032_v13 = vadd.f32 %v1205_v52, %v1031_v60  ;;  %vm1054_vm12 = vweird.f32 %v1207_v0 }
 0x5c0   :  { %vm1055_vm14 = vmor %vm1053_vm13, %vm1054_vm12 }
 0x5c1   :  { %v1050_v5 = vsub.f32 1.0, %v1049_v3  ;;  %v1036_v56 = vsel %vm1035_vm10, %v1205_v52, %v1032_v13 }
 0x5c2   :  { %v1041_v63 = vsel %vm1038_vm11, %v1040_v4, %v1036_v56 }
 0x5c3   :  { %v1051_v49 = vmul.f32 %v1207_v0, %v1050_v5  ;;  %v1063_v50 = vmul.f32 %v1041_v63, %v1021_v6 }
 0x5c5   :  { %v1052_v61 = vadd.f32 %v1207_v0, %v1051_v49  ;;  %v1064_v54 = vadd.f32 %v1063_v50, %v960_v26 }
 0x5c7   :  { %v1056_v37 = vsel %vm1055_vm14, %v1207_v0, %v1052_v61  ;;  %1208 = vtanh.f32 %v1064_v54 }
 0x5c8   :  { %v1061_v41 = vsel %vm1058_vm15, %v1060_v47, %v1056_v37 }
 0x5c9   :  { %v1066_v42 = vsub.f32 1.0, %v1061_v41  ;;  %v1068_v23 = vmul.f32 %v1061_v41, %v2019_v28 }
 0x5cd   :  { %v1209_v51 = vpop.eup %1208 }
 0x5ce   :  { %v1067_v55 = vmul.f32 %v1209_v51, %v1066_v42 }
 0x5d0   :  { %v1069_v59 = vadd.f32 %v1068_v23, %v1067_v55 }
 0x5d2   :  { %v1070_v33 = vsub.f32 %v1069_v59, %v2019_v28 }
 0x5d4   :  { %v1076_v53 = vmul.f32 %v1074_v1, %v1070_v33 }
 0x5d6   :  { %v1077_v19 = vadd.f32 %v1076_v53, %v2019_v28 }
 0x5d8   :  { %1078 = vst [vmem:[#allocation7] sm:$0xff] %v1077_v19 }
 0x5d9   :  { %1089 = dma.vmem_to_hbm [thread:$0]  %s1085_s16, 128, %s1087_s19, [#allocation4]  }
 0x5da   :  { %1334 = dma.done.wait [#allocation4], 128  }
 0x5db   :  { %1335 = vsyncadd [#allocation4], 4294967168 }
 0x5dc   :  { %1094 = vsyncpa [#allocation3], 1 }
 0x5dd   :  { %1095 = vsyncpa [#allocation6], 1 }
 0x5de   :  { %1096 = vsyncpa [#allocation4], 1 }

</bundles_post_ra>
